<compile_context>
chip_gen: v7x
topology: tpu7x:2x2x1
jax: 0.10.0
libtpu: 0.0.40
codegen_flags: <defaults>
</compile_context>

<pallas_src>
import numpy as np
import jax
import jax.numpy as jnp
from jax.experimental import pallas as pl
from jax.experimental.pallas import tpu as pltpu


def _vae_kernel(enc_tok_ref, dec_tok_ref, sel_ref, noise_ref,
                enc_gt_ref, enc_whh_ref, mulv_w_ref, mulv_b_ref,
                l2h_w_ref, l2h_b_ref,
                dec_gt_ref, dec_whh_ref, out_w_ref, out_b_ref,
                logits_ref, mean_ref, logvar_ref,
                enc_g_ref, dec_g_ref, enc_h_ref, dec_h_ref):
    f32 = jnp.float32
    cd = enc_whh_ref.dtype                    # MXU operand dtype (f32 or bf16)

    Bp, Lp = noise_ref.shape                  # padded batch, padded latent
    Hp = enc_whh_ref.shape[0]                 # lane-aligned hidden size
    Vp = enc_gt_ref.shape[0]                  # lane-aligned vocab size
    S = enc_tok_ref.shape[0] // Bp
    T = dec_tok_ref.shape[0] // Bp

    # ---- batched input-side pre-gates: onehot @ (emb @ W_ih + b) table ------
    # (hoisted off the serial recurrence; bias already folded into the table)
    def pre_gates(tok_ref, gt_ref, g_ref):
        n = tok_ref.shape[0]
        iota_v = jax.lax.broadcasted_iota(jnp.int32, (n, Vp), 1)
        onehot = (tok_ref[...] == iota_v).astype(cd)                 # [n, Vp]
        g_ref[...] = jnp.dot(onehot, gt_ref[...], preferred_element_type=f32)

    pre_gates(enc_tok_ref, enc_gt_ref, enc_g_ref)
    pre_gates(dec_tok_ref, dec_gt_ref, dec_g_ref)

    def lstm_cell(pre, h_cd, c, whh_ref):
        # Only h @ W_hh remains on the per-step critical path.
        gates = pre + jnp.dot(h_cd, whh_ref[...], preferred_element_type=f32)
        i_g = jax.nn.sigmoid(gates[:, 0 * Hp:1 * Hp])
        f_g = jax.nn.sigmoid(gates[:, 1 * Hp:2 * Hp])
        g_g = jnp.tanh(gates[:, 2 * Hp:3 * Hp])
        o_g = jax.nn.sigmoid(gates[:, 3 * Hp:4 * Hp])
        c_new = f_g * c + i_g * g_g
        h_new = o_g * jnp.tanh(c_new)
        return h_new, c_new

    # ------------------------------ encoder ----------------------------------
    h_cd = jnp.zeros((Bp, Hp), cd)
    c = jnp.zeros((Bp, Hp), f32)
    for t in range(S):                        # static unroll, S is small
        h, c = lstm_cell(enc_g_ref[t * Bp:(t + 1) * Bp, :], h_cd, c, enc_whh_ref)
        h_cd = h.astype(cd)
        enc_h_ref[t * Bp:(t + 1) * Bp, :] = h     # whole (8,128)-tile store

    # Gather hidden at the last non-pad position with one small matmul
    # (exact 0/1 selection; off the recurrence critical path).
    lat = jnp.dot(sel_ref[...], enc_h_ref[...], preferred_element_type=f32)

    # Fused mean | logvar projection (lane-tile aligned split at Lp).
    mulv = (jnp.dot(lat.astype(cd), mulv_w_ref[...], preferred_element_type=f32)
            + mulv_b_ref[...])
    mean = mulv[:, :Lp]
    logv = mulv[:, Lp:]
    mean_ref[...] = mean
    logvar_ref[...] = logv

    # reparameterize trick (N(0,1) noise supplied by the host)
    z = mean + noise_ref[...] * jnp.exp(0.5 * logv)

    # ------------------------------ decoder ----------------------------------
    h0 = (jnp.dot(z.astype(cd), l2h_w_ref[...], preferred_element_type=f32)
          + l2h_b_ref[...])
    h_cd = h0.astype(cd)
    c = jnp.zeros((Bp, Hp), f32)
    for t in range(T):                        # static unroll, T is small
        h, c = lstm_cell(dec_g_ref[t * Bp:(t + 1) * Bp, :], h_cd, c, dec_whh_ref)
        h_cd = h.astype(cd)
        dec_h_ref[t * Bp:(t + 1) * Bp, :] = h     # whole (8,128)-tile store

    # ------------- batched, lane-dense output projection (one matmul) --------
    logits_ref[...] = (jnp.dot(dec_h_ref[...].astype(cd), out_w_ref[...],
                               preferred_element_type=f32) + out_b_ref[...])


def _round_up(x, m):
    return ((x + m - 1) // m) * m


def _prep_inputs(tokens, noise, params, mxu_dtype):
    """Host-side preprocessing: padding, gate tables, selection matrix."""
    f32 = jnp.float32
    B, S = tokens.shape
    T = S - 2
    V, _ = params["enc_emb"].shape
    H = params["enc_whh"].shape[0]
    L = params["mu_w"].shape[1]

    Bp = _round_up(B, 8)        # f32 sublane tile
    Hp = _round_up(H, 128)      # lane tile -> gate slices are lane-aligned
    Vp = _round_up(V, 128)      # lane-dense logits store
    Lp = _round_up(L, 128)      # lane-dense mean/logvar store

    def pad_gate_cols(w):       # (..., 4H) -> (..., 4Hp), per-gate zero padding
        lead = w.shape[:-1]
        w4 = w.reshape(lead + (4, H))
        w4 = jnp.pad(w4, [(0, 0)] * len(lead) + [(0, 0), (0, Hp - H)])
        return w4.reshape(lead + (4 * Hp,))

    def pad2(w, r, c):          # zero-pad a 2-D array to (r, c)
        return jnp.pad(w, ((0, r - w.shape[0]), (0, c - w.shape[1])))

    # Gate tables (embedding @ W_ih + b): one lookup-matmul replaces the
    # per-step embedding + input projection entirely.
    enc_gt = params["enc_emb"] @ params["enc_wih"] + params["enc_b"]   # [V, 4H]
    dec_gt = params["dec_emb"] @ params["dec_wih"] + params["dec_b"]
    enc_gt = pad2(pad_gate_cols(enc_gt), Vp, 4 * Hp).astype(mxu_dtype)
    dec_gt = pad2(pad_gate_cols(dec_gt), Vp, 4 * Hp).astype(mxu_dtype)

    enc_whh = pad2(pad_gate_cols(params["enc_whh"]), Hp, 4 * Hp).astype(mxu_dtype)
    dec_whh = pad2(pad_gate_cols(params["dec_whh"]), Hp, 4 * Hp).astype(mxu_dtype)

    # Fused mu|logvar projection, each padded to its own lane tile.
    mulv_w = jnp.concatenate([pad2(params["mu_w"], Hp, Lp),
                              pad2(params["lv_w"], Hp, Lp)], axis=1).astype(mxu_dtype)
    mulv_b = jnp.concatenate([pad2(params["mu_b"], 1, Lp),
                              pad2(params["lv_b"], 1, Lp)], axis=1).astype(f32)

    l2h_w = pad2(params["l2h_w"], Lp, Hp).astype(mxu_dtype)
    l2h_b = pad2(params["l2h_b"], 1, Hp).astype(f32)
    out_w = pad2(params["out_w"], Hp, Vp).astype(mxu_dtype)
    out_b = pad2(params["out_b"], 1, Vp).astype(f32)

    # Batch padding (pad token == 0 rows; their outputs are sliced away).
    tokens_p = jnp.pad(tokens.astype(jnp.int32), ((0, Bp - B), (0, 0)))
    noise_p = pad2(noise.astype(f32), Bp, Lp)

    # Time-major flattened token columns: row t*Bp + b == tokens_p[b, t].
    enc_tok = tokens_p.T.reshape(S * Bp, 1)
    dec_tok = tokens_p[:, 1:S - 1].T.reshape(T * Bp, 1)

    # Last non-pad position per row (pad index == 0), computed on the host,
    # turned into a 0/1 selection matrix over the encoder hidden history.
    last_pos = jnp.sum((tokens_p != 0).astype(jnp.int32), axis=1) - 1     # [Bp]
    sel = ((jnp.arange(S)[None, :, None] == last_pos[:, None, None]) &
           (jnp.arange(Bp)[None, None, :] == jnp.arange(Bp)[:, None, None]))
    sel = sel.reshape(Bp, S * Bp).astype(f32)

    args = (enc_tok, dec_tok, sel, noise_p,
            enc_gt, enc_whh, mulv_w, mulv_b, l2h_w, l2h_b,
            dec_gt, dec_whh, out_w, out_b)
    dims = dict(B=B, S=S, T=T, V=V, L=L, Bp=Bp, Hp=Hp, Vp=Vp, Lp=Lp)
    return args, dims


def smvae_forward(tokens, noise, params, mxu_dtype=jnp.float32):
    """Full SmVAE forward (teacher-forcing decoder) as one Pallas kernel.

    mxu_dtype=jnp.bfloat16 enables bf16 MXU operands (v6e/v7x); gate math and
    cell state stay f32 either way.
    """
    args, d = _prep_inputs(tokens, noise, params, mxu_dtype)
    B, S, T, V, L = d["B"], d["S"], d["T"], d["V"], d["L"]
    Bp, Hp, Vp, Lp = d["Bp"], d["Hp"], d["Vp"], d["Lp"]

    vmem = pl.BlockSpec(memory_space=pltpu.MemorySpace.VMEM)
    logits_flat, mean_p, logvar_p = pl.pallas_call(
        _vae_kernel,
        out_shape=(jax.ShapeDtypeStruct((T * Bp, Vp), jnp.float32),
                   jax.ShapeDtypeStruct((Bp, Lp), jnp.float32),
                   jax.ShapeDtypeStruct((Bp, Lp), jnp.float32)),
        in_specs=[vmem] * len(args),
        out_specs=(vmem, vmem, vmem),
        scratch_shapes=[pltpu.VMEM((S * Bp, 4 * Hp), jnp.float32),  # enc pre-gates
                        pltpu.VMEM((T * Bp, 4 * Hp), jnp.float32),  # dec pre-gates
                        pltpu.VMEM((S * Bp, Hp), jnp.float32),      # enc h history
                        pltpu.VMEM((T * Bp, Hp), jnp.float32)],     # dec h history
    )(*args)

    # Time-major [T*Bp, Vp] -> PyTorch torch.stack(dim=1) layout [B, T, V].
    logits = jnp.transpose(logits_flat.reshape(T, Bp, Vp), (1, 0, 2))[:B, :, :V]
    mean = mean_p[:B, :L]
    logvar = logvar_p[:B, :L]
    return logits, mean, logvar


# ------------- pure-JAX reference (for correctness check only) -------------
def _lstm_step_ref(x, h, c, wih, whh, b, H):
    gates = x @ wih + h @ whh + b
    i = jax.nn.sigmoid(gates[:, :H])
    f = jax.nn.sigmoid(gates[:, H:2 * H])
    g = jnp.tanh(gates[:, 2 * H:3 * H])
    o = jax.nn.sigmoid(gates[:, 3 * H:])
    c = f * c + i * g
    h = o * jnp.tanh(c)
    return h, c


def reference_forward(tokens, noise, p):
    B, S = tokens.shape
    H = p["enc_whh"].shape[0]
    h = jnp.zeros((B, H), jnp.float32)
    c = jnp.zeros((B, H), jnp.float32)
    seq = []
    for t in range(S):
        x = p["enc_emb"][tokens[:, t]]
        h, c = _lstm_step_ref(x, h, c, p["enc_wih"], p["enc_whh"], p["enc_b"], H)
        seq.append(h)
    seq = jnp.stack(seq, axis=1)
    last = jnp.sum((tokens != 0).astype(jnp.int32), axis=1) - 1
    lat = seq[jnp.arange(B), last]
    mean = lat @ p["mu_w"] + p["mu_b"]
    logv = lat @ p["lv_w"] + p["lv_b"]
    z = mean + noise * jnp.exp(0.5 * logv)
    tgt = tokens[:, 1:]
    h = z @ p["l2h_w"] + p["l2h_b"]
    c = jnp.zeros((B, H), jnp.float32)
    logits_all = []
    for t in range(1, S - 1):
        x = p["dec_emb"][tgt[:, t - 1]]
        h, c = _lstm_step_ref(x, h, c, p["dec_wih"], p["dec_whh"], p["dec_b"], H)
        logits_all.append(h @ p["out_w"] + p["out_b"])
    return jnp.stack(logits_all, axis=1), mean, logv


def init_params(key, V, E, H, L):
    ks = jax.random.split(key, 16)

    def n(k, shape, scale=0.1):
        return jax.random.normal(k, shape, jnp.float32) * scale

    return dict(
        enc_emb=n(ks[0], (V, E), 1.0),
        enc_wih=n(ks[1], (E, 4 * H)),
        enc_whh=n(ks[2], (H, 4 * H)),
        enc_b=n(ks[3], (1, 4 * H)),
        mu_w=n(ks[4], (H, L)),
        mu_b=n(ks[5], (1, L)),
        lv_w=n(ks[6], (H, L)),
        lv_b=n(ks[7], (1, L)),
        l2h_w=n(ks[8], (L, H)),
        l2h_b=n(ks[9], (1, H)),
        dec_emb=n(ks[10], (V, E), 1.0),
        dec_wih=n(ks[11], (E, 4 * H)),
        dec_whh=n(ks[12], (H, 4 * H)),
        dec_b=n(ks[13], (1, 4 * H)),
        out_w=n(ks[14], (H, V)),
        out_b=n(ks[15], (1, V)),
    )


if __name__ == "__main__":
    V, E, H, L = 16, 8, 32, 8     # vocab, embedding, hidden, latent
    B, S = 2, 8                   # batch, sequence length

    key = jax.random.PRNGKey(0)
    k_params, k_noise = jax.random.split(key)
    params = init_params(k_params, V, E, H, L)

    # pad index is 0; first token is the start token (1); row 0 has trailing pads
    tokens = jnp.array([[1, 5, 3, 7, 2, 4, 0, 0],
                        [1, 8, 9, 2, 3, 6, 5, 4]], dtype=jnp.int32)
    noise = jax.random.normal(k_noise, (B, L), jnp.float32)

    # f32 path (v5e-friendly; exact vs. reference)
    logits, mean, logvar = smvae_forward(tokens, noise, params)
    jax.block_until_ready((logits, mean, logvar))

    ref_logits, ref_mean, ref_logvar = reference_forward(tokens, noise, params)
    assert logits.shape == (B, S - 2, V)
    assert mean.shape == (B, L) and logvar.shape == (B, L)
    assert np.allclose(np.asarray(logits), np.asarray(ref_logits), atol=1e-3, rtol=1e-3)
    assert np.allclose(np.asarray(mean), np.asarray(ref_mean), atol=1e-3, rtol=1e-3)
    assert np.allclose(np.asarray(logvar), np.asarray(ref_logvar), atol=1e-3, rtol=1e-3)

    # bf16 MXU-operand path (v6e/v7x); loose sanity check against the f32 ref.
    logits_bf, mean_bf, logvar_bf = smvae_forward(tokens, noise, params,
                                                  mxu_dtype=jnp.bfloat16)
    jax.block_until_ready((logits_bf, mean_bf, logvar_bf))
    assert np.all(np.isfinite(np.asarray(logits_bf)))
    assert np.allclose(np.asarray(logits_bf), np.asarray(ref_logits), atol=0.1, rtol=0.1)
    assert np.allclose(np.asarray(mean_bf), np.asarray(ref_mean), atol=0.1, rtol=0.1)
    assert np.allclose(np.asarray(logvar_bf), np.asarray(ref_logvar), atol=0.1, rtol=0.1)

    print("KERNEL_OK")
</pallas_src>

<mosaic_0001>
module attributes {stable_mosaic.version = 11 : i64} {
  func.func @_vae_kernel(%arg0: memref<64x1xi32, #tpu.memory_space<vmem>>, %arg1: memref<48x1xi32, #tpu.memory_space<vmem>>, %arg2: memref<8x64xf32, #tpu.memory_space<vmem>>, %arg3: memref<8x128xf32, #tpu.memory_space<vmem>>, %arg4: memref<128x512xf32, #tpu.memory_space<vmem>>, %arg5: memref<128x512xf32, #tpu.memory_space<vmem>>, %arg6: memref<128x256xf32, #tpu.memory_space<vmem>>, %arg7: memref<1x256xf32, #tpu.memory_space<vmem>>, %arg8: memref<128x128xf32, #tpu.memory_space<vmem>>, %arg9: memref<1x128xf32, #tpu.memory_space<vmem>>, %arg10: memref<128x512xf32, #tpu.memory_space<vmem>>, %arg11: memref<128x512xf32, #tpu.memory_space<vmem>>, %arg12: memref<128x128xf32, #tpu.memory_space<vmem>>, %arg13: memref<1x128xf32, #tpu.memory_space<vmem>>, %arg14: memref<48x128xf32, #tpu.memory_space<vmem>>, %arg15: memref<8x128xf32, #tpu.memory_space<vmem>>, %arg16: memref<8x128xf32, #tpu.memory_space<vmem>>, %arg17: memref<64x512xf32, #tpu.memory_space<vmem>>, %arg18: memref<48x512xf32, #tpu.memory_space<vmem>>, %arg19: memref<64x128xf32, #tpu.memory_space<vmem>>, %arg20: memref<48x128xf32, #tpu.memory_space<vmem>>) attributes {dimension_semantics = [], scalar_prefetch = 0 : i64, scratch_operands = 4 : i64, tpu.core_type = #tpu.core_type<tc>} {
    %0 = tpu.iota {dimensions = array<i32: 1>} : vector<64x128xi32>
    %c0 = arith.constant 0 : index
    %c0_0 = arith.constant 0 : index
    %1 = vector.load %arg0[%c0, %c0_0] : memref<64x1xi32, #tpu.memory_space<vmem>>, vector<64x1xi32>
    %2 = vector.broadcast %1 : vector<64x1xi32> to vector<64x128xi32>
    %3 = arith.cmpi eq, %2, %0 : vector<64x128xi32>
    %4 = arith.extui %3 : vector<64x128xi1> to vector<64x128xi32>
    %5 = arith.sitofp %4 : vector<64x128xi32> to vector<64x128xf32>
    %c0_1 = arith.constant 0 : index
    %c0_2 = arith.constant 0 : index
    %6 = vector.load %arg4[%c0_1, %c0_2] : memref<128x512xf32, #tpu.memory_space<vmem>>, vector<128x512xf32>
    %cst = arith.constant dense<0.000000e+00> : vector<64x512xf32>
    %7 = tpu.matmul %5, %6, %cst {dimension_numbers = #tpu.dot_dimension_numbers<[1], [0], [0], [1], [0, 0, 1, 1], [], []>} : vector<64x128xf32>, vector<128x512xf32>, vector<64x512xf32> -> vector<64x512xf32>
    %c0_3 = arith.constant 0 : index
    %c0_4 = arith.constant 0 : index
    %8 = vector.load %arg17[%c0_3, %c0_4] : memref<64x512xf32, #tpu.memory_space<vmem>>, vector<64x512xf32>
    tpu.vector_store %arg17[%c0_3, %c0_4], %7 {strides = array<i32>} : memref<64x512xf32, #tpu.memory_space<vmem>>, vector<64x512xf32>,
    %9 = tpu.iota {dimensions = array<i32: 1>} : vector<48x128xi32>
    %c0_5 = arith.constant 0 : index
    %c0_6 = arith.constant 0 : index
    %10 = vector.load %arg1[%c0_5, %c0_6] : memref<48x1xi32, #tpu.memory_space<vmem>>, vector<48x1xi32>
    %11 = vector.broadcast %10 : vector<48x1xi32> to vector<48x128xi32>
    %12 = arith.cmpi eq, %11, %9 : vector<48x128xi32>
    %13 = arith.extui %12 : vector<48x128xi1> to vector<48x128xi32>
    %14 = arith.sitofp %13 : vector<48x128xi32> to vector<48x128xf32>
    %c0_7 = arith.constant 0 : index
    %c0_8 = arith.constant 0 : index
    %15 = vector.load %arg10[%c0_7, %c0_8] : memref<128x512xf32, #tpu.memory_space<vmem>>, vector<128x512xf32>
    %cst_9 = arith.constant dense<0.000000e+00> : vector<48x512xf32>
    %16 = tpu.matmul %14, %15, %cst_9 {dimension_numbers = #tpu.dot_dimension_numbers<[1], [0], [0], [1], [0, 0, 1, 1], [], []>} : vector<48x128xf32>, vector<128x512xf32>, vector<48x512xf32> -> vector<48x512xf32>
    %c0_10 = arith.constant 0 : index
    %c0_11 = arith.constant 0 : index
    %17 = vector.load %arg18[%c0_10, %c0_11] : memref<48x512xf32, #tpu.memory_space<vmem>>, vector<48x512xf32>
    tpu.vector_store %arg18[%c0_10, %c0_11], %16 {strides = array<i32>} : memref<48x512xf32, #tpu.memory_space<vmem>>, vector<48x512xf32>,
    %cst_12 = arith.constant 0.000000e+00 : f32
    %18 = vector.broadcast %cst_12 : f32 to vector<8x128xf32>
    %cst_13 = arith.constant 0.000000e+00 : f32
    %19 = vector.broadcast %cst_13 : f32 to vector<8x128xf32>
    %c0_14 = arith.constant 0 : index
    %c0_15 = arith.constant 0 : index
    %20 = vector.load %arg17[%c0_14, %c0_15] : memref<64x512xf32, #tpu.memory_space<vmem>>, vector<8x512xf32>
    %c0_16 = arith.constant 0 : index
    %c0_17 = arith.constant 0 : index
    %21 = vector.load %arg5[%c0_16, %c0_17] : memref<128x512xf32, #tpu.memory_space<vmem>>, vector<128x512xf32>
    %cst_18 = arith.constant dense<0.000000e+00> : vector<8x512xf32>
    %22 = tpu.matmul %18, %21, %cst_18 {dimension_numbers = #tpu.dot_dimension_numbers<[1], [0], [0], [1], [0, 0, 1, 1], [], []>} : vector<8x128xf32>, vector<128x512xf32>, vector<8x512xf32> -> vector<8x512xf32>
    %23 = arith.addf %20, %22 : vector<8x512xf32>
    %24 = vector.extract_strided_slice %23 {offsets = [0, 0], sizes = [8, 128], strides = [1, 1]} : vector<8x512xf32> to vector<8x128xf32>
    %25 = arith.negf %24 : vector<8x128xf32>
    %26 = math.exp %25 : vector<8x128xf32>
    %cst_19 = arith.constant 1.000000e+00 : f32
    %27 = vector.broadcast %cst_19 : f32 to vector<8x128xf32>
    %28 = arith.addf %27, %26 : vector<8x128xf32>
    %29 = arith.divf %27, %28 : vector<8x128xf32>
    %30 = vector.extract_strided_slice %23 {offsets = [0, 128], sizes = [8, 128], strides = [1, 1]} : vector<8x512xf32> to vector<8x128xf32>
    %31 = arith.negf %30 : vector<8x128xf32>
    %32 = math.exp %31 : vector<8x128xf32>
    %cst_20 = arith.constant 1.000000e+00 : f32
    %33 = vector.broadcast %cst_20 : f32 to vector<8x128xf32>
    %34 = arith.addf %33, %32 : vector<8x128xf32>
    %35 = arith.divf %33, %34 : vector<8x128xf32>
    %36 = vector.extract_strided_slice %23 {offsets = [0, 256], sizes = [8, 128], strides = [1, 1]} : vector<8x512xf32> to vector<8x128xf32>
    %37 = math.tanh %36 : vector<8x128xf32>
    %38 = vector.extract_strided_slice %23 {offsets = [0, 384], sizes = [8, 128], strides = [1, 1]} : vector<8x512xf32> to vector<8x128xf32>
    %39 = arith.negf %38 : vector<8x128xf32>
    %40 = math.exp %39 : vector<8x128xf32>
    %cst_21 = arith.constant 1.000000e+00 : f32
    %41 = vector.broadcast %cst_21 : f32 to vector<8x128xf32>
    %42 = arith.addf %41, %40 : vector<8x128xf32>
    %43 = arith.divf %41, %42 : vector<8x128xf32>
    %44 = arith.mulf %35, %19 : vector<8x128xf32>
    %45 = arith.mulf %29, %37 : vector<8x128xf32>
    %46 = arith.addf %44, %45 : vector<8x128xf32>
    %47 = math.tanh %46 : vector<8x128xf32>
    %48 = arith.mulf %43, %47 : vector<8x128xf32>
    %c0_22 = arith.constant 0 : index
    %c0_23 = arith.constant 0 : index
    %49 = vector.load %arg19[%c0_22, %c0_23] : memref<64x128xf32, #tpu.memory_space<vmem>>, vector<8x128xf32>
    tpu.vector_store %arg19[%c0_22, %c0_23], %48 {strides = array<i32>} : memref<64x128xf32, #tpu.memory_space<vmem>>, vector<8x128xf32>,
    %c8 = arith.constant 8 : index
    %c0_24 = arith.constant 0 : index
    %50 = vector.load %arg17[%c8, %c0_24] : memref<64x512xf32, #tpu.memory_space<vmem>>, vector<8x512xf32>
    %c0_25 = arith.constant 0 : index
    %c0_26 = arith.constant 0 : index
    %51 = vector.load %arg5[%c0_25, %c0_26] : memref<128x512xf32, #tpu.memory_space<vmem>>, vector<128x512xf32>
    %cst_27 = arith.constant dense<0.000000e+00> : vector<8x512xf32>
    %52 = tpu.matmul %48, %51, %cst_27 {dimension_numbers = #tpu.dot_dimension_numbers<[1], [0], [0], [1], [0, 0, 1, 1], [], []>} : vector<8x128xf32>, vector<128x512xf32>, vector<8x512xf32> -> vector<8x512xf32>
    %53 = arith.addf %50, %52 : vector<8x512xf32>
    %54 = vector.extract_strided_slice %53 {offsets = [0, 0], sizes = [8, 128], strides = [1, 1]} : vector<8x512xf32> to vector<8x128xf32>
    %55 = arith.negf %54 : vector<8x128xf32>
    %56 = math.exp %55 : vector<8x128xf32>
    %cst_28 = arith.constant 1.000000e+00 : f32
    %57 = vector.broadcast %cst_28 : f32 to vector<8x128xf32>
    %58 = arith.addf %57, %56 : vector<8x128xf32>
    %59 = arith.divf %57, %58 : vector<8x128xf32>
    %60 = vector.extract_strided_slice %53 {offsets = [0, 128], sizes = [8, 128], strides = [1, 1]} : vector<8x512xf32> to vector<8x128xf32>
    %61 = arith.negf %60 : vector<8x128xf32>
    %62 = math.exp %61 : vector<8x128xf32>
    %cst_29 = arith.constant 1.000000e+00 : f32
    %63 = vector.broadcast %cst_29 : f32 to vector<8x128xf32>
    %64 = arith.addf %63, %62 : vector<8x128xf32>
    %65 = arith.divf %63, %64 : vector<8x128xf32>
    %66 = vector.extract_strided_slice %53 {offsets = [0, 256], sizes = [8, 128], strides = [1, 1]} : vector<8x512xf32> to vector<8x128xf32>
    %67 = math.tanh %66 : vector<8x128xf32>
    %68 = vector.extract_strided_slice %53 {offsets = [0, 384], sizes = [8, 128], strides = [1, 1]} : vector<8x512xf32> to vector<8x128xf32>
    %69 = arith.negf %68 : vector<8x128xf32>
    %70 = math.exp %69 : vector<8x128xf32>
    %cst_30 = arith.constant 1.000000e+00 : f32
    %71 = vector.broadcast %cst_30 : f32 to vector<8x128xf32>
    %72 = arith.addf %71, %70 : vector<8x128xf32>
    %73 = arith.divf %71, %72 : vector<8x128xf32>
    %74 = arith.mulf %65, %46 : vector<8x128xf32>
    %75 = arith.mulf %59, %67 : vector<8x128xf32>
    %76 = arith.addf %74, %75 : vector<8x128xf32>
    %77 = math.tanh %76 : vector<8x128xf32>
    %78 = arith.mulf %73, %77 : vector<8x128xf32>
    %c8_31 = arith.constant 8 : index
    %c0_32 = arith.constant 0 : index
    %79 = vector.load %arg19[%c8_31, %c0_32] : memref<64x128xf32, #tpu.memory_space<vmem>>, vector<8x128xf32>
    tpu.vector_store %arg19[%c8_31, %c0_32], %78 {strides = array<i32>} : memref<64x128xf32, #tpu.memory_space<vmem>>, vector<8x128xf32>,
    %c16 = arith.constant 16 : index
    %c0_33 = arith.constant 0 : index
    %80 = vector.load %arg17[%c16, %c0_33] : memref<64x512xf32, #tpu.memory_space<vmem>>, vector<8x512xf32>
    %c0_34 = arith.constant 0 : index
    %c0_35 = arith.constant 0 : index
    %81 = vector.load %arg5[%c0_34, %c0_35] : memref<128x512xf32, #tpu.memory_space<vmem>>, vector<128x512xf32>
    %cst_36 = arith.constant dense<0.000000e+00> : vector<8x512xf32>
    %82 = tpu.matmul %78, %81, %cst_36 {dimension_numbers = #tpu.dot_dimension_numbers<[1], [0], [0], [1], [0, 0, 1, 1], [], []>} : vector<8x128xf32>, vector<128x512xf32>, vector<8x512xf32> -> vector<8x512xf32>
    %83 = arith.addf %80, %82 : vector<8x512xf32>
    %84 = vector.extract_strided_slice %83 {offsets = [0, 0], sizes = [8, 128], strides = [1, 1]} : vector<8x512xf32> to vector<8x128xf32>
    %85 = arith.negf %84 : vector<8x128xf32>
    %86 = math.exp %85 : vector<8x128xf32>
    %cst_37 = arith.constant 1.000000e+00 : f32
    %87 = vector.broadcast %cst_37 : f32 to vector<8x128xf32>
    %88 = arith.addf %87, %86 : vector<8x128xf32>
    %89 = arith.divf %87, %88 : vector<8x128xf32>
    %90 = vector.extract_strided_slice %83 {offsets = [0, 128], sizes = [8, 128], strides = [1, 1]} : vector<8x512xf32> to vector<8x128xf32>
    %91 = arith.negf %90 : vector<8x128xf32>
    %92 = math.exp %91 : vector<8x128xf32>
    %cst_38 = arith.constant 1.000000e+00 : f32
    %93 = vector.broadcast %cst_38 : f32 to vector<8x128xf32>
    %94 = arith.addf %93, %92 : vector<8x128xf32>
    %95 = arith.divf %93, %94 : vector<8x128xf32>
    %96 = vector.extract_strided_slice %83 {offsets = [0, 256], sizes = [8, 128], strides = [1, 1]} : vector<8x512xf32> to vector<8x128xf32>
    %97 = math.tanh %96 : vector<8x128xf32>
    %98 = vector.extract_strided_slice %83 {offsets = [0, 384], sizes = [8, 128], strides = [1, 1]} : vector<8x512xf32> to vector<8x128xf32>
    %99 = arith.negf %98 : vector<8x128xf32>
    %100 = math.exp %99 : vector<8x128xf32>
    %cst_39 = arith.constant 1.000000e+00 : f32
    %101 = vector.broadcast %cst_39 : f32 to vector<8x128xf32>
    %102 = arith.addf %101, %100 : vector<8x128xf32>
    %103 = arith.divf %101, %102 : vector<8x128xf32>
    %104 = arith.mulf %95, %76 : vector<8x128xf32>
    %105 = arith.mulf %89, %97 : vector<8x128xf32>
    %106 = arith.addf %104, %105 : vector<8x128xf32>
    %107 = math.tanh %106 : vector<8x128xf32>
    %108 = arith.mulf %103, %107 : vector<8x128xf32>
    %c16_40 = arith.constant 16 : index
    %c0_41 = arith.constant 0 : index
    %109 = vector.load %arg19[%c16_40, %c0_41] : memref<64x128xf32, #tpu.memory_space<vmem>>, vector<8x128xf32>
    tpu.vector_store %arg19[%c16_40, %c0_41], %108 {strides = array<i32>} : memref<64x128xf32, #tpu.memory_space<vmem>>, vector<8x128xf32>,
    %c24 = arith.constant 24 : index
    %c0_42 = arith.constant 0 : index
    %110 = vector.load %arg17[%c24, %c0_42] : memref<64x512xf32, #tpu.memory_space<vmem>>, vector<8x512xf32>
    %c0_43 = arith.constant 0 : index
    %c0_44 = arith.constant 0 : index
    %111 = vector.load %arg5[%c0_43, %c0_44] : memref<128x512xf32, #tpu.memory_space<vmem>>, vector<128x512xf32>
    %cst_45 = arith.constant dense<0.000000e+00> : vector<8x512xf32>
    %112 = tpu.matmul %108, %111, %cst_45 {dimension_numbers = #tpu.dot_dimension_numbers<[1], [0], [0], [1], [0, 0, 1, 1], [], []>} : vector<8x128xf32>, vector<128x512xf32>, vector<8x512xf32> -> vector<8x512xf32>
    %113 = arith.addf %110, %112 : vector<8x512xf32>
    %114 = vector.extract_strided_slice %113 {offsets = [0, 0], sizes = [8, 128], strides = [1, 1]} : vector<8x512xf32> to vector<8x128xf32>
    %115 = arith.negf %114 : vector<8x128xf32>
    %116 = math.exp %115 : vector<8x128xf32>
    %cst_46 = arith.constant 1.000000e+00 : f32
    %117 = vector.broadcast %cst_46 : f32 to vector<8x128xf32>
    %118 = arith.addf %117, %116 : vector<8x128xf32>
    %119 = arith.divf %117, %118 : vector<8x128xf32>
    %120 = vector.extract_strided_slice %113 {offsets = [0, 128], sizes = [8, 128], strides = [1, 1]} : vector<8x512xf32> to vector<8x128xf32>
    %121 = arith.negf %120 : vector<8x128xf32>
    %122 = math.exp %121 : vector<8x128xf32>
    %cst_47 = arith.constant 1.000000e+00 : f32
    %123 = vector.broadcast %cst_47 : f32 to vector<8x128xf32>
    %124 = arith.addf %123, %122 : vector<8x128xf32>
    %125 = arith.divf %123, %124 : vector<8x128xf32>
    %126 = vector.extract_strided_slice %113 {offsets = [0, 256], sizes = [8, 128], strides = [1, 1]} : vector<8x512xf32> to vector<8x128xf32>
    %127 = math.tanh %126 : vector<8x128xf32>
    %128 = vector.extract_strided_slice %113 {offsets = [0, 384], sizes = [8, 128], strides = [1, 1]} : vector<8x512xf32> to vector<8x128xf32>
    %129 = arith.negf %128 : vector<8x128xf32>
    %130 = math.exp %129 : vector<8x128xf32>
    %cst_48 = arith.constant 1.000000e+00 : f32
    %131 = vector.broadcast %cst_48 : f32 to vector<8x128xf32>
    %132 = arith.addf %131, %130 : vector<8x128xf32>
    %133 = arith.divf %131, %132 : vector<8x128xf32>
    %134 = arith.mulf %125, %106 : vector<8x128xf32>
    %135 = arith.mulf %119, %127 : vector<8x128xf32>
    %136 = arith.addf %134, %135 : vector<8x128xf32>
    %137 = math.tanh %136 : vector<8x128xf32>
    %138 = arith.mulf %133, %137 : vector<8x128xf32>
    %c24_49 = arith.constant 24 : index
    %c0_50 = arith.constant 0 : index
    %139 = vector.load %arg19[%c24_49, %c0_50] : memref<64x128xf32, #tpu.memory_space<vmem>>, vector<8x128xf32>
    tpu.vector_store %arg19[%c24_49, %c0_50], %138 {strides = array<i32>} : memref<64x128xf32, #tpu.memory_space<vmem>>, vector<8x128xf32>,
    %c32 = arith.constant 32 : index
    %c0_51 = arith.constant 0 : index
    %140 = vector.load %arg17[%c32, %c0_51] : memref<64x512xf32, #tpu.memory_space<vmem>>, vector<8x512xf32>
    %c0_52 = arith.constant 0 : index
    %c0_53 = arith.constant 0 : index
    %141 = vector.load %arg5[%c0_52, %c0_53] : memref<128x512xf32, #tpu.memory_space<vmem>>, vector<128x512xf32>
    %cst_54 = arith.constant dense<0.000000e+00> : vector<8x512xf32>
    %142 = tpu.matmul %138, %141, %cst_54 {dimension_numbers = #tpu.dot_dimension_numbers<[1], [0], [0], [1], [0, 0, 1, 1], [], []>} : vector<8x128xf32>, vector<128x512xf32>, vector<8x512xf32> -> vector<8x512xf32>
    %143 = arith.addf %140, %142 : vector<8x512xf32>
    %144 = vector.extract_strided_slice %143 {offsets = [0, 0], sizes = [8, 128], strides = [1, 1]} : vector<8x512xf32> to vector<8x128xf32>
    %145 = arith.negf %144 : vector<8x128xf32>
    %146 = math.exp %145 : vector<8x128xf32>
    %cst_55 = arith.constant 1.000000e+00 : f32
    %147 = vector.broadcast %cst_55 : f32 to vector<8x128xf32>
    %148 = arith.addf %147, %146 : vector<8x128xf32>
    %149 = arith.divf %147, %148 : vector<8x128xf32>
    %150 = vector.extract_strided_slice %143 {offsets = [0, 128], sizes = [8, 128], strides = [1, 1]} : vector<8x512xf32> to vector<8x128xf32>
    %151 = arith.negf %150 : vector<8x128xf32>
    %152 = math.exp %151 : vector<8x128xf32>
    %cst_56 = arith.constant 1.000000e+00 : f32
    %153 = vector.broadcast %cst_56 : f32 to vector<8x128xf32>
    %154 = arith.addf %153, %152 : vector<8x128xf32>
    %155 = arith.divf %153, %154 : vector<8x128xf32>
    %156 = vector.extract_strided_slice %143 {offsets = [0, 256], sizes = [8, 128], strides = [1, 1]} : vector<8x512xf32> to vector<8x128xf32>
    %157 = math.tanh %156 : vector<8x128xf32>
    %158 = vector.extract_strided_slice %143 {offsets = [0, 384], sizes = [8, 128], strides = [1, 1]} : vector<8x512xf32> to vector<8x128xf32>
    %159 = arith.negf %158 : vector<8x128xf32>
    %160 = math.exp %159 : vector<8x128xf32>
    %cst_57 = arith.constant 1.000000e+00 : f32
    %161 = vector.broadcast %cst_57 : f32 to vector<8x128xf32>
    %162 = arith.addf %161, %160 : vector<8x128xf32>
    %163 = arith.divf %161, %162 : vector<8x128xf32>
    %164 = arith.mulf %155, %136 : vector<8x128xf32>
    %165 = arith.mulf %149, %157 : vector<8x128xf32>
    %166 = arith.addf %164, %165 : vector<8x128xf32>
    %167 = math.tanh %166 : vector<8x128xf32>
    %168 = arith.mulf %163, %167 : vector<8x128xf32>
    %c32_58 = arith.constant 32 : index
    %c0_59 = arith.constant 0 : index
    %169 = vector.load %arg19[%c32_58, %c0_59] : memref<64x128xf32, #tpu.memory_space<vmem>>, vector<8x128xf32>
    tpu.vector_store %arg19[%c32_58, %c0_59], %168 {strides = array<i32>} : memref<64x128xf32, #tpu.memory_space<vmem>>, vector<8x128xf32>,
    %c40 = arith.constant 40 : index
    %c0_60 = arith.constant 0 : index
    %170 = vector.load %arg17[%c40, %c0_60] : memref<64x512xf32, #tpu.memory_space<vmem>>, vector<8x512xf32>
    %c0_61 = arith.constant 0 : index
    %c0_62 = arith.constant 0 : index
    %171 = vector.load %arg5[%c0_61, %c0_62] : memref<128x512xf32, #tpu.memory_space<vmem>>, vector<128x512xf32>
    %cst_63 = arith.constant dense<0.000000e+00> : vector<8x512xf32>
    %172 = tpu.matmul %168, %171, %cst_63 {dimension_numbers = #tpu.dot_dimension_numbers<[1], [0], [0], [1], [0, 0, 1, 1], [], []>} : vector<8x128xf32>, vector<128x512xf32>, vector<8x512xf32> -> vector<8x512xf32>
    %173 = arith.addf %170, %172 : vector<8x512xf32>
    %174 = vector.extract_strided_slice %173 {offsets = [0, 0], sizes = [8, 128], strides = [1, 1]} : vector<8x512xf32> to vector<8x128xf32>
    %175 = arith.negf %174 : vector<8x128xf32>
    %176 = math.exp %175 : vector<8x128xf32>
    %cst_64 = arith.constant 1.000000e+00 : f32
    %177 = vector.broadcast %cst_64 : f32 to vector<8x128xf32>
    %178 = arith.addf %177, %176 : vector<8x128xf32>
    %179 = arith.divf %177, %178 : vector<8x128xf32>
    %180 = vector.extract_strided_slice %173 {offsets = [0, 128], sizes = [8, 128], strides = [1, 1]} : vector<8x512xf32> to vector<8x128xf32>
    %181 = arith.negf %180 : vector<8x128xf32>
    %182 = math.exp %181 : vector<8x128xf32>
    %cst_65 = arith.constant 1.000000e+00 : f32
    %183 = vector.broadcast %cst_65 : f32 to vector<8x128xf32>
    %184 = arith.addf %183, %182 : vector<8x128xf32>
    %185 = arith.divf %183, %184 : vector<8x128xf32>
    %186 = vector.extract_strided_slice %173 {offsets = [0, 256], sizes = [8, 128], strides = [1, 1]} : vector<8x512xf32> to vector<8x128xf32>
    %187 = math.tanh %186 : vector<8x128xf32>
    %188 = vector.extract_strided_slice %173 {offsets = [0, 384], sizes = [8, 128], strides = [1, 1]} : vector<8x512xf32> to vector<8x128xf32>
    %189 = arith.negf %188 : vector<8x128xf32>
    %190 = math.exp %189 : vector<8x128xf32>
    %cst_66 = arith.constant 1.000000e+00 : f32
    %191 = vector.broadcast %cst_66 : f32 to vector<8x128xf32>
    %192 = arith.addf %191, %190 : vector<8x128xf32>
    %193 = arith.divf %191, %192 : vector<8x128xf32>
    %194 = arith.mulf %185, %166 : vector<8x128xf32>
    %195 = arith.mulf %179, %187 : vector<8x128xf32>
    %196 = arith.addf %194, %195 : vector<8x128xf32>
    %197 = math.tanh %196 : vector<8x128xf32>
    %198 = arith.mulf %193, %197 : vector<8x128xf32>
    %c40_67 = arith.constant 40 : index
    %c0_68 = arith.constant 0 : index
    %199 = vector.load %arg19[%c40_67, %c0_68] : memref<64x128xf32, #tpu.memory_space<vmem>>, vector<8x128xf32>
    tpu.vector_store %arg19[%c40_67, %c0_68], %198 {strides = array<i32>} : memref<64x128xf32, #tpu.memory_space<vmem>>, vector<8x128xf32>,
    %c48 = arith.constant 48 : index
    %c0_69 = arith.constant 0 : index
    %200 = vector.load %arg17[%c48, %c0_69] : memref<64x512xf32, #tpu.memory_space<vmem>>, vector<8x512xf32>
    %c0_70 = arith.constant 0 : index
    %c0_71 = arith.constant 0 : index
    %201 = vector.load %arg5[%c0_70, %c0_71] : memref<128x512xf32, #tpu.memory_space<vmem>>, vector<128x512xf32>
    %cst_72 = arith.constant dense<0.000000e+00> : vector<8x512xf32>
    %202 = tpu.matmul %198, %201, %cst_72 {dimension_numbers = #tpu.dot_dimension_numbers<[1], [0], [0], [1], [0, 0, 1, 1], [], []>} : vector<8x128xf32>, vector<128x512xf32>, vector<8x512xf32> -> vector<8x512xf32>
    %203 = arith.addf %200, %202 : vector<8x512xf32>
    %204 = vector.extract_strided_slice %203 {offsets = [0, 0], sizes = [8, 128], strides = [1, 1]} : vector<8x512xf32> to vector<8x128xf32>
    %205 = arith.negf %204 : vector<8x128xf32>
    %206 = math.exp %205 : vector<8x128xf32>
    %cst_73 = arith.constant 1.000000e+00 : f32
    %207 = vector.broadcast %cst_73 : f32 to vector<8x128xf32>
    %208 = arith.addf %207, %206 : vector<8x128xf32>
    %209 = arith.divf %207, %208 : vector<8x128xf32>
    %210 = vector.extract_strided_slice %203 {offsets = [0, 128], sizes = [8, 128], strides = [1, 1]} : vector<8x512xf32> to vector<8x128xf32>
    %211 = arith.negf %210 : vector<8x128xf32>
    %212 = math.exp %211 : vector<8x128xf32>
    %cst_74 = arith.constant 1.000000e+00 : f32
    %213 = vector.broadcast %cst_74 : f32 to vector<8x128xf32>
    %214 = arith.addf %213, %212 : vector<8x128xf32>
    %215 = arith.divf %213, %214 : vector<8x128xf32>
    %216 = vector.extract_strided_slice %203 {offsets = [0, 256], sizes = [8, 128], strides = [1, 1]} : vector<8x512xf32> to vector<8x128xf32>
    %217 = math.tanh %216 : vector<8x128xf32>
    %218 = vector.extract_strided_slice %203 {offsets = [0, 384], sizes = [8, 128], strides = [1, 1]} : vector<8x512xf32> to vector<8x128xf32>
    %219 = arith.negf %218 : vector<8x128xf32>
    %220 = math.exp %219 : vector<8x128xf32>
    %cst_75 = arith.constant 1.000000e+00 : f32
    %221 = vector.broadcast %cst_75 : f32 to vector<8x128xf32>
    %222 = arith.addf %221, %220 : vector<8x128xf32>
    %223 = arith.divf %221, %222 : vector<8x128xf32>
    %224 = arith.mulf %215, %196 : vector<8x128xf32>
    %225 = arith.mulf %209, %217 : vector<8x128xf32>
    %226 = arith.addf %224, %225 : vector<8x128xf32>
    %227 = math.tanh %226 : vector<8x128xf32>
    %228 = arith.mulf %223, %227 : vector<8x128xf32>
    %c48_76 = arith.constant 48 : index
    %c0_77 = arith.constant 0 : index
    %229 = vector.load %arg19[%c48_76, %c0_77] : memref<64x128xf32, #tpu.memory_space<vmem>>, vector<8x128xf32>
    tpu.vector_store %arg19[%c48_76, %c0_77], %228 {strides = array<i32>} : memref<64x128xf32, #tpu.memory_space<vmem>>, vector<8x128xf32>,
    %c56 = arith.constant 56 : index
    %c0_78 = arith.constant 0 : index
    %230 = vector.load %arg17[%c56, %c0_78] : memref<64x512xf32, #tpu.memory_space<vmem>>, vector<8x512xf32>
    %c0_79 = arith.constant 0 : index
    %c0_80 = arith.constant 0 : index
    %231 = vector.load %arg5[%c0_79, %c0_80] : memref<128x512xf32, #tpu.memory_space<vmem>>, vector<128x512xf32>
    %cst_81 = arith.constant dense<0.000000e+00> : vector<8x512xf32>
    %232 = tpu.matmul %228, %231, %cst_81 {dimension_numbers = #tpu.dot_dimension_numbers<[1], [0], [0], [1], [0, 0, 1, 1], [], []>} : vector<8x128xf32>, vector<128x512xf32>, vector<8x512xf32> -> vector<8x512xf32>
    %233 = arith.addf %230, %232 : vector<8x512xf32>
    %234 = vector.extract_strided_slice %233 {offsets = [0, 0], sizes = [8, 128], strides = [1, 1]} : vector<8x512xf32> to vector<8x128xf32>
    %235 = arith.negf %234 : vector<8x128xf32>
    %236 = math.exp %235 : vector<8x128xf32>
    %cst_82 = arith.constant 1.000000e+00 : f32
    %237 = vector.broadcast %cst_82 : f32 to vector<8x128xf32>
    %238 = arith.addf %237, %236 : vector<8x128xf32>
    %239 = arith.divf %237, %238 : vector<8x128xf32>
    %240 = vector.extract_strided_slice %233 {offsets = [0, 128], sizes = [8, 128], strides = [1, 1]} : vector<8x512xf32> to vector<8x128xf32>
    %241 = arith.negf %240 : vector<8x128xf32>
    %242 = math.exp %241 : vector<8x128xf32>
    %cst_83 = arith.constant 1.000000e+00 : f32
    %243 = vector.broadcast %cst_83 : f32 to vector<8x128xf32>
    %244 = arith.addf %243, %242 : vector<8x128xf32>
    %245 = arith.divf %243, %244 : vector<8x128xf32>
    %246 = vector.extract_strided_slice %233 {offsets = [0, 256], sizes = [8, 128], strides = [1, 1]} : vector<8x512xf32> to vector<8x128xf32>
    %247 = math.tanh %246 : vector<8x128xf32>
    %248 = vector.extract_strided_slice %233 {offsets = [0, 384], sizes = [8, 128], strides = [1, 1]} : vector<8x512xf32> to vector<8x128xf32>
    %249 = arith.negf %248 : vector<8x128xf32>
    %250 = math.exp %249 : vector<8x128xf32>
    %cst_84 = arith.constant 1.000000e+00 : f32
    %251 = vector.broadcast %cst_84 : f32 to vector<8x128xf32>
    %252 = arith.addf %251, %250 : vector<8x128xf32>
    %253 = arith.divf %251, %252 : vector<8x128xf32>
    %254 = arith.mulf %245, %226 : vector<8x128xf32>
    %255 = arith.mulf %239, %247 : vector<8x128xf32>
    %256 = arith.addf %254, %255 : vector<8x128xf32>
    %257 = math.tanh %256 : vector<8x128xf32>
    %258 = arith.mulf %253, %257 : vector<8x128xf32>
    %c56_85 = arith.constant 56 : index
    %c0_86 = arith.constant 0 : index
    %259 = vector.load %arg19[%c56_85, %c0_86] : memref<64x128xf32, #tpu.memory_space<vmem>>, vector<8x128xf32>
    tpu.vector_store %arg19[%c56_85, %c0_86], %258 {strides = array<i32>} : memref<64x128xf32, #tpu.memory_space<vmem>>, vector<8x128xf32>,
    %c0_87 = arith.constant 0 : index
    %c0_88 = arith.constant 0 : index
    %260 = vector.load %arg2[%c0_87, %c0_88] : memref<8x64xf32, #tpu.memory_space<vmem>>, vector<8x64xf32>
    %c0_89 = arith.constant 0 : index
    %c0_90 = arith.constant 0 : index
    %261 = vector.load %arg19[%c0_89, %c0_90] : memref<64x128xf32, #tpu.memory_space<vmem>>, vector<64x128xf32>
    %cst_91 = arith.constant dense<0.000000e+00> : vector<8x128xf32>
    %262 = tpu.matmul %260, %261, %cst_91 {dimension_numbers = #tpu.dot_dimension_numbers<[1], [0], [0], [1], [0, 0, 1, 1], [], []>} : vector<8x64xf32>, vector<64x128xf32>, vector<8x128xf32> -> vector<8x128xf32>
    %c0_92 = arith.constant 0 : index
    %c0_93 = arith.constant 0 : index
    %263 = vector.load %arg6[%c0_92, %c0_93] : memref<128x256xf32, #tpu.memory_space<vmem>>, vector<128x256xf32>
    %cst_94 = arith.constant dense<0.000000e+00> : vector<8x256xf32>
    %264 = tpu.matmul %262, %263, %cst_94 {dimension_numbers = #tpu.dot_dimension_numbers<[1], [0], [0], [1], [0, 0, 1, 1], [], []>} : vector<8x128xf32>, vector<128x256xf32>, vector<8x256xf32> -> vector<8x256xf32>
    %c0_95 = arith.constant 0 : index
    %c0_96 = arith.constant 0 : index
    %265 = vector.load %arg7[%c0_95, %c0_96] : memref<1x256xf32, #tpu.memory_space<vmem>>, vector<1x256xf32>
    %266 = vector.broadcast %265 : vector<1x256xf32> to vector<8x256xf32>
    %267 = arith.addf %264, %266 : vector<8x256xf32>
    %268 = vector.extract_strided_slice %267 {offsets = [0, 0], sizes = [8, 128], strides = [1, 1]} : vector<8x256xf32> to vector<8x128xf32>
    %269 = vector.extract_strided_slice %267 {offsets = [0, 128], sizes = [8, 128], strides = [1, 1]} : vector<8x256xf32> to vector<8x128xf32>
    %c0_97 = arith.constant 0 : index
    %c0_98 = arith.constant 0 : index
    %270 = vector.load %arg15[%c0_97, %c0_98] : memref<8x128xf32, #tpu.memory_space<vmem>>, vector<8x128xf32>
    tpu.vector_store %arg15[%c0_97, %c0_98], %268 {strides = array<i32>} : memref<8x128xf32, #tpu.memory_space<vmem>>, vector<8x128xf32>,
    %c0_99 = arith.constant 0 : index
    %c0_100 = arith.constant 0 : index
    %271 = vector.load %arg16[%c0_99, %c0_100] : memref<8x128xf32, #tpu.memory_space<vmem>>, vector<8x128xf32>
    tpu.vector_store %arg16[%c0_99, %c0_100], %269 {strides = array<i32>} : memref<8x128xf32, #tpu.memory_space<vmem>>, vector<8x128xf32>,
    %c0_101 = arith.constant 0 : index
    %c0_102 = arith.constant 0 : index
    %272 = vector.load %arg3[%c0_101, %c0_102] : memref<8x128xf32, #tpu.memory_space<vmem>>, vector<8x128xf32>
    %cst_103 = arith.constant 5.000000e-01 : f32
    %273 = vector.broadcast %cst_103 : f32 to vector<8x128xf32>
    %274 = arith.mulf %273, %269 : vector<8x128xf32>
    %275 = math.exp %274 : vector<8x128xf32>
    %276 = arith.mulf %272, %275 : vector<8x128xf32>
    %277 = arith.addf %268, %276 : vector<8x128xf32>
    %c0_104 = arith.constant 0 : index
    %c0_105 = arith.constant 0 : index
    %278 = vector.load %arg8[%c0_104, %c0_105] : memref<128x128xf32, #tpu.memory_space<vmem>>, vector<128x128xf32>
    %cst_106 = arith.constant dense<0.000000e+00> : vector<8x128xf32>
    %279 = tpu.matmul %277, %278, %cst_106 {dimension_numbers = #tpu.dot_dimension_numbers<[1], [0], [0], [1], [0, 0, 1, 1], [], []>} : vector<8x128xf32>, vector<128x128xf32>, vector<8x128xf32> -> vector<8x128xf32>
    %c0_107 = arith.constant 0 : index
    %c0_108 = arith.constant 0 : index
    %280 = vector.load %arg9[%c0_107, %c0_108] : memref<1x128xf32, #tpu.memory_space<vmem>>, vector<1x128xf32>
    %281 = vector.broadcast %280 : vector<1x128xf32> to vector<8x128xf32>
    %282 = arith.addf %279, %281 : vector<8x128xf32>
    %cst_109 = arith.constant 0.000000e+00 : f32
    %283 = vector.broadcast %cst_109 : f32 to vector<8x128xf32>
    %c0_110 = arith.constant 0 : index
    %c0_111 = arith.constant 0 : index
    %284 = vector.load %arg18[%c0_110, %c0_111] : memref<48x512xf32, #tpu.memory_space<vmem>>, vector<8x512xf32>
    %c0_112 = arith.constant 0 : index
    %c0_113 = arith.constant 0 : index
    %285 = vector.load %arg11[%c0_112, %c0_113] : memref<128x512xf32, #tpu.memory_space<vmem>>, vector<128x512xf32>
    %cst_114 = arith.constant dense<0.000000e+00> : vector<8x512xf32>
    %286 = tpu.matmul %282, %285, %cst_114 {dimension_numbers = #tpu.dot_dimension_numbers<[1], [0], [0], [1], [0, 0, 1, 1], [], []>} : vector<8x128xf32>, vector<128x512xf32>, vector<8x512xf32> -> vector<8x512xf32>
    %287 = arith.addf %284, %286 : vector<8x512xf32>
    %288 = vector.extract_strided_slice %287 {offsets = [0, 0], sizes = [8, 128], strides = [1, 1]} : vector<8x512xf32> to vector<8x128xf32>
    %289 = arith.negf %288 : vector<8x128xf32>
    %290 = math.exp %289 : vector<8x128xf32>
    %cst_115 = arith.constant 1.000000e+00 : f32
    %291 = vector.broadcast %cst_115 : f32 to vector<8x128xf32>
    %292 = arith.addf %291, %290 : vector<8x128xf32>
    %293 = arith.divf %291, %292 : vector<8x128xf32>
    %294 = vector.extract_strided_slice %287 {offsets = [0, 128], sizes = [8, 128], strides = [1, 1]} : vector<8x512xf32> to vector<8x128xf32>
    %295 = arith.negf %294 : vector<8x128xf32>
    %296 = math.exp %295 : vector<8x128xf32>
    %cst_116 = arith.constant 1.000000e+00 : f32
    %297 = vector.broadcast %cst_116 : f32 to vector<8x128xf32>
    %298 = arith.addf %297, %296 : vector<8x128xf32>
    %299 = arith.divf %297, %298 : vector<8x128xf32>
    %300 = vector.extract_strided_slice %287 {offsets = [0, 256], sizes = [8, 128], strides = [1, 1]} : vector<8x512xf32> to vector<8x128xf32>
    %301 = math.tanh %300 : vector<8x128xf32>
    %302 = vector.extract_strided_slice %287 {offsets = [0, 384], sizes = [8, 128], strides = [1, 1]} : vector<8x512xf32> to vector<8x128xf32>
    %303 = arith.negf %302 : vector<8x128xf32>
    %304 = math.exp %303 : vector<8x128xf32>
    %cst_117 = arith.constant 1.000000e+00 : f32
    %305 = vector.broadcast %cst_117 : f32 to vector<8x128xf32>
    %306 = arith.addf %305, %304 : vector<8x128xf32>
    %307 = arith.divf %305, %306 : vector<8x128xf32>
    %308 = arith.mulf %299, %283 : vector<8x128xf32>
    %309 = arith.mulf %293, %301 : vector<8x128xf32>
    %310 = arith.addf %308, %309 : vector<8x128xf32>
    %311 = math.tanh %310 : vector<8x128xf32>
    %312 = arith.mulf %307, %311 : vector<8x128xf32>
    %c0_118 = arith.constant 0 : index
    %c0_119 = arith.constant 0 : index
    %313 = vector.load %arg20[%c0_118, %c0_119] : memref<48x128xf32, #tpu.memory_space<vmem>>, vector<8x128xf32>
    tpu.vector_store %arg20[%c0_118, %c0_119], %312 {strides = array<i32>} : memref<48x128xf32, #tpu.memory_space<vmem>>, vector<8x128xf32>,
    %c8_120 = arith.constant 8 : index
    %c0_121 = arith.constant 0 : index
    %314 = vector.load %arg18[%c8_120, %c0_121] : memref<48x512xf32, #tpu.memory_space<vmem>>, vector<8x512xf32>
    %c0_122 = arith.constant 0 : index
    %c0_123 = arith.constant 0 : index
    %315 = vector.load %arg11[%c0_122, %c0_123] : memref<128x512xf32, #tpu.memory_space<vmem>>, vector<128x512xf32>
    %cst_124 = arith.constant dense<0.000000e+00> : vector<8x512xf32>
    %316 = tpu.matmul %312, %315, %cst_124 {dimension_numbers = #tpu.dot_dimension_numbers<[1], [0], [0], [1], [0, 0, 1, 1], [], []>} : vector<8x128xf32>, vector<128x512xf32>, vector<8x512xf32> -> vector<8x512xf32>
    %317 = arith.addf %314, %316 : vector<8x512xf32>
    %318 = vector.extract_strided_slice %317 {offsets = [0, 0], sizes = [8, 128], strides = [1, 1]} : vector<8x512xf32> to vector<8x128xf32>
    %319 = arith.negf %318 : vector<8x128xf32>
    %320 = math.exp %319 : vector<8x128xf32>
    %cst_125 = arith.constant 1.000000e+00 : f32
    %321 = vector.broadcast %cst_125 : f32 to vector<8x128xf32>
    %322 = arith.addf %321, %320 : vector<8x128xf32>
    %323 = arith.divf %321, %322 : vector<8x128xf32>
    %324 = vector.extract_strided_slice %317 {offsets = [0, 128], sizes = [8, 128], strides = [1, 1]} : vector<8x512xf32> to vector<8x128xf32>
    %325 = arith.negf %324 : vector<8x128xf32>
    %326 = math.exp %325 : vector<8x128xf32>
    %cst_126 = arith.constant 1.000000e+00 : f32
    %327 = vector.broadcast %cst_126 : f32 to vector<8x128xf32>
    %328 = arith.addf %327, %326 : vector<8x128xf32>
    %329 = arith.divf %327, %328 : vector<8x128xf32>
    %330 = vector.extract_strided_slice %317 {offsets = [0, 256], sizes = [8, 128], strides = [1, 1]} : vector<8x512xf32> to vector<8x128xf32>
    %331 = math.tanh %330 : vector<8x128xf32>
    %332 = vector.extract_strided_slice %317 {offsets = [0, 384], sizes = [8, 128], strides = [1, 1]} : vector<8x512xf32> to vector<8x128xf32>
    %333 = arith.negf %332 : vector<8x128xf32>
    %334 = math.exp %333 : vector<8x128xf32>
    %cst_127 = arith.constant 1.000000e+00 : f32
    %335 = vector.broadcast %cst_127 : f32 to vector<8x128xf32>
    %336 = arith.addf %335, %334 : vector<8x128xf32>
    %337 = arith.divf %335, %336 : vector<8x128xf32>
    %338 = arith.mulf %329, %310 : vector<8x128xf32>
    %339 = arith.mulf %323, %331 : vector<8x128xf32>
    %340 = arith.addf %338, %339 : vector<8x128xf32>
    %341 = math.tanh %340 : vector<8x128xf32>
    %342 = arith.mulf %337, %341 : vector<8x128xf32>
    %c8_128 = arith.constant 8 : index
    %c0_129 = arith.constant 0 : index
    %343 = vector.load %arg20[%c8_128, %c0_129] : memref<48x128xf32, #tpu.memory_space<vmem>>, vector<8x128xf32>
    tpu.vector_store %arg20[%c8_128, %c0_129], %342 {strides = array<i32>} : memref<48x128xf32, #tpu.memory_space<vmem>>, vector<8x128xf32>,
    %c16_130 = arith.constant 16 : index
    %c0_131 = arith.constant 0 : index
    %344 = vector.load %arg18[%c16_130, %c0_131] : memref<48x512xf32, #tpu.memory_space<vmem>>, vector<8x512xf32>
    %c0_132 = arith.constant 0 : index
    %c0_133 = arith.constant 0 : index
    %345 = vector.load %arg11[%c0_132, %c0_133] : memref<128x512xf32, #tpu.memory_space<vmem>>, vector<128x512xf32>
    %cst_134 = arith.constant dense<0.000000e+00> : vector<8x512xf32>
    %346 = tpu.matmul %342, %345, %cst_134 {dimension_numbers = #tpu.dot_dimension_numbers<[1], [0], [0], [1], [0, 0, 1, 1], [], []>} : vector<8x128xf32>, vector<128x512xf32>, vector<8x512xf32> -> vector<8x512xf32>
    %347 = arith.addf %344, %346 : vector<8x512xf32>
    %348 = vector.extract_strided_slice %347 {offsets = [0, 0], sizes = [8, 128], strides = [1, 1]} : vector<8x512xf32> to vector<8x128xf32>
    %349 = arith.negf %348 : vector<8x128xf32>
    %350 = math.exp %349 : vector<8x128xf32>
    %cst_135 = arith.constant 1.000000e+00 : f32
    %351 = vector.broadcast %cst_135 : f32 to vector<8x128xf32>
    %352 = arith.addf %351, %350 : vector<8x128xf32>
    %353 = arith.divf %351, %352 : vector<8x128xf32>
    %354 = vector.extract_strided_slice %347 {offsets = [0, 128], sizes = [8, 128], strides = [1, 1]} : vector<8x512xf32> to vector<8x128xf32>
    %355 = arith.negf %354 : vector<8x128xf32>
    %356 = math.exp %355 : vector<8x128xf32>
    %cst_136 = arith.constant 1.000000e+00 : f32
    %357 = vector.broadcast %cst_136 : f32 to vector<8x128xf32>
    %358 = arith.addf %357, %356 : vector<8x128xf32>
    %359 = arith.divf %357, %358 : vector<8x128xf32>
    %360 = vector.extract_strided_slice %347 {offsets = [0, 256], sizes = [8, 128], strides = [1, 1]} : vector<8x512xf32> to vector<8x128xf32>
    %361 = math.tanh %360 : vector<8x128xf32>
    %362 = vector.extract_strided_slice %347 {offsets = [0, 384], sizes = [8, 128], strides = [1, 1]} : vector<8x512xf32> to vector<8x128xf32>
    %363 = arith.negf %362 : vector<8x128xf32>
    %364 = math.exp %363 : vector<8x128xf32>
    %cst_137 = arith.constant 1.000000e+00 : f32
    %365 = vector.broadcast %cst_137 : f32 to vector<8x128xf32>
    %366 = arith.addf %365, %364 : vector<8x128xf32>
    %367 = arith.divf %365, %366 : vector<8x128xf32>
    %368 = arith.mulf %359, %340 : vector<8x128xf32>
    %369 = arith.mulf %353, %361 : vector<8x128xf32>
    %370 = arith.addf %368, %369 : vector<8x128xf32>
    %371 = math.tanh %370 : vector<8x128xf32>
    %372 = arith.mulf %367, %371 : vector<8x128xf32>
    %c16_138 = arith.constant 16 : index
    %c0_139 = arith.constant 0 : index
    %373 = vector.load %arg20[%c16_138, %c0_139] : memref<48x128xf32, #tpu.memory_space<vmem>>, vector<8x128xf32>
    tpu.vector_store %arg20[%c16_138, %c0_139], %372 {strides = array<i32>} : memref<48x128xf32, #tpu.memory_space<vmem>>, vector<8x128xf32>,
    %c24_140 = arith.constant 24 : index
    %c0_141 = arith.constant 0 : index
    %374 = vector.load %arg18[%c24_140, %c0_141] : memref<48x512xf32, #tpu.memory_space<vmem>>, vector<8x512xf32>
    %c0_142 = arith.constant 0 : index
    %c0_143 = arith.constant 0 : index
    %375 = vector.load %arg11[%c0_142, %c0_143] : memref<128x512xf32, #tpu.memory_space<vmem>>, vector<128x512xf32>
    %cst_144 = arith.constant dense<0.000000e+00> : vector<8x512xf32>
    %376 = tpu.matmul %372, %375, %cst_144 {dimension_numbers = #tpu.dot_dimension_numbers<[1], [0], [0], [1], [0, 0, 1, 1], [], []>} : vector<8x128xf32>, vector<128x512xf32>, vector<8x512xf32> -> vector<8x512xf32>
    %377 = arith.addf %374, %376 : vector<8x512xf32>
    %378 = vector.extract_strided_slice %377 {offsets = [0, 0], sizes = [8, 128], strides = [1, 1]} : vector<8x512xf32> to vector<8x128xf32>
    %379 = arith.negf %378 : vector<8x128xf32>
    %380 = math.exp %379 : vector<8x128xf32>
    %cst_145 = arith.constant 1.000000e+00 : f32
    %381 = vector.broadcast %cst_145 : f32 to vector<8x128xf32>
    %382 = arith.addf %381, %380 : vector<8x128xf32>
    %383 = arith.divf %381, %382 : vector<8x128xf32>
    %384 = vector.extract_strided_slice %377 {offsets = [0, 128], sizes = [8, 128], strides = [1, 1]} : vector<8x512xf32> to vector<8x128xf32>
    %385 = arith.negf %384 : vector<8x128xf32>
    %386 = math.exp %385 : vector<8x128xf32>
    %cst_146 = arith.constant 1.000000e+00 : f32
    %387 = vector.broadcast %cst_146 : f32 to vector<8x128xf32>
    %388 = arith.addf %387, %386 : vector<8x128xf32>
    %389 = arith.divf %387, %388 : vector<8x128xf32>
    %390 = vector.extract_strided_slice %377 {offsets = [0, 256], sizes = [8, 128], strides = [1, 1]} : vector<8x512xf32> to vector<8x128xf32>
    %391 = math.tanh %390 : vector<8x128xf32>
    %392 = vector.extract_strided_slice %377 {offsets = [0, 384], sizes = [8, 128], strides = [1, 1]} : vector<8x512xf32> to vector<8x128xf32>
    %393 = arith.negf %392 : vector<8x128xf32>
    %394 = math.exp %393 : vector<8x128xf32>
    %cst_147 = arith.constant 1.000000e+00 : f32
    %395 = vector.broadcast %cst_147 : f32 to vector<8x128xf32>
    %396 = arith.addf %395, %394 : vector<8x128xf32>
    %397 = arith.divf %395, %396 : vector<8x128xf32>
    %398 = arith.mulf %389, %370 : vector<8x128xf32>
    %399 = arith.mulf %383, %391 : vector<8x128xf32>
    %400 = arith.addf %398, %399 : vector<8x128xf32>
    %401 = math.tanh %400 : vector<8x128xf32>
    %402 = arith.mulf %397, %401 : vector<8x128xf32>
    %c24_148 = arith.constant 24 : index
    %c0_149 = arith.constant 0 : index
    %403 = vector.load %arg20[%c24_148, %c0_149] : memref<48x128xf32, #tpu.memory_space<vmem>>, vector<8x128xf32>
    tpu.vector_store %arg20[%c24_148, %c0_149], %402 {strides = array<i32>} : memref<48x128xf32, #tpu.memory_space<vmem>>, vector<8x128xf32>,
    %c32_150 = arith.constant 32 : index
    %c0_151 = arith.constant 0 : index
    %404 = vector.load %arg18[%c32_150, %c0_151] : memref<48x512xf32, #tpu.memory_space<vmem>>, vector<8x512xf32>
    %c0_152 = arith.constant 0 : index
    %c0_153 = arith.constant 0 : index
    %405 = vector.load %arg11[%c0_152, %c0_153] : memref<128x512xf32, #tpu.memory_space<vmem>>, vector<128x512xf32>
    %cst_154 = arith.constant dense<0.000000e+00> : vector<8x512xf32>
    %406 = tpu.matmul %402, %405, %cst_154 {dimension_numbers = #tpu.dot_dimension_numbers<[1], [0], [0], [1], [0, 0, 1, 1], [], []>} : vector<8x128xf32>, vector<128x512xf32>, vector<8x512xf32> -> vector<8x512xf32>
    %407 = arith.addf %404, %406 : vector<8x512xf32>
    %408 = vector.extract_strided_slice %407 {offsets = [0, 0], sizes = [8, 128], strides = [1, 1]} : vector<8x512xf32> to vector<8x128xf32>
    %409 = arith.negf %408 : vector<8x128xf32>
    %410 = math.exp %409 : vector<8x128xf32>
    %cst_155 = arith.constant 1.000000e+00 : f32
    %411 = vector.broadcast %cst_155 : f32 to vector<8x128xf32>
    %412 = arith.addf %411, %410 : vector<8x128xf32>
    %413 = arith.divf %411, %412 : vector<8x128xf32>
    %414 = vector.extract_strided_slice %407 {offsets = [0, 128], sizes = [8, 128], strides = [1, 1]} : vector<8x512xf32> to vector<8x128xf32>
    %415 = arith.negf %414 : vector<8x128xf32>
    %416 = math.exp %415 : vector<8x128xf32>
    %cst_156 = arith.constant 1.000000e+00 : f32
    %417 = vector.broadcast %cst_156 : f32 to vector<8x128xf32>
    %418 = arith.addf %417, %416 : vector<8x128xf32>
    %419 = arith.divf %417, %418 : vector<8x128xf32>
    %420 = vector.extract_strided_slice %407 {offsets = [0, 256], sizes = [8, 128], strides = [1, 1]} : vector<8x512xf32> to vector<8x128xf32>
    %421 = math.tanh %420 : vector<8x128xf32>
    %422 = vector.extract_strided_slice %407 {offsets = [0, 384], sizes = [8, 128], strides = [1, 1]} : vector<8x512xf32> to vector<8x128xf32>
    %423 = arith.negf %422 : vector<8x128xf32>
    %424 = math.exp %423 : vector<8x128xf32>
    %cst_157 = arith.constant 1.000000e+00 : f32
    %425 = vector.broadcast %cst_157 : f32 to vector<8x128xf32>
    %426 = arith.addf %425, %424 : vector<8x128xf32>
    %427 = arith.divf %425, %426 : vector<8x128xf32>
    %428 = arith.mulf %419, %400 : vector<8x128xf32>
    %429 = arith.mulf %413, %421 : vector<8x128xf32>
    %430 = arith.addf %428, %429 : vector<8x128xf32>
    %431 = math.tanh %430 : vector<8x128xf32>
    %432 = arith.mulf %427, %431 : vector<8x128xf32>
    %c32_158 = arith.constant 32 : index
    %c0_159 = arith.constant 0 : index
    %433 = vector.load %arg20[%c32_158, %c0_159] : memref<48x128xf32, #tpu.memory_space<vmem>>, vector<8x128xf32>
    tpu.vector_store %arg20[%c32_158, %c0_159], %432 {strides = array<i32>} : memref<48x128xf32, #tpu.memory_space<vmem>>, vector<8x128xf32>,
    %c40_160 = arith.constant 40 : index
    %c0_161 = arith.constant 0 : index
    %434 = vector.load %arg18[%c40_160, %c0_161] : memref<48x512xf32, #tpu.memory_space<vmem>>, vector<8x512xf32>
    %c0_162 = arith.constant 0 : index
    %c0_163 = arith.constant 0 : index
    %435 = vector.load %arg11[%c0_162, %c0_163] : memref<128x512xf32, #tpu.memory_space<vmem>>, vector<128x512xf32>
    %cst_164 = arith.constant dense<0.000000e+00> : vector<8x512xf32>
    %436 = tpu.matmul %432, %435, %cst_164 {dimension_numbers = #tpu.dot_dimension_numbers<[1], [0], [0], [1], [0, 0, 1, 1], [], []>} : vector<8x128xf32>, vector<128x512xf32>, vector<8x512xf32> -> vector<8x512xf32>
    %437 = arith.addf %434, %436 : vector<8x512xf32>
    %438 = vector.extract_strided_slice %437 {offsets = [0, 0], sizes = [8, 128], strides = [1, 1]} : vector<8x512xf32> to vector<8x128xf32>
    %439 = arith.negf %438 : vector<8x128xf32>
    %440 = math.exp %439 : vector<8x128xf32>
    %cst_165 = arith.constant 1.000000e+00 : f32
    %441 = vector.broadcast %cst_165 : f32 to vector<8x128xf32>
    %442 = arith.addf %441, %440 : vector<8x128xf32>
    %443 = arith.divf %441, %442 : vector<8x128xf32>
    %444 = vector.extract_strided_slice %437 {offsets = [0, 128], sizes = [8, 128], strides = [1, 1]} : vector<8x512xf32> to vector<8x128xf32>
    %445 = arith.negf %444 : vector<8x128xf32>
    %446 = math.exp %445 : vector<8x128xf32>
    %cst_166 = arith.constant 1.000000e+00 : f32
    %447 = vector.broadcast %cst_166 : f32 to vector<8x128xf32>
    %448 = arith.addf %447, %446 : vector<8x128xf32>
    %449 = arith.divf %447, %448 : vector<8x128xf32>
    %450 = vector.extract_strided_slice %437 {offsets = [0, 256], sizes = [8, 128], strides = [1, 1]} : vector<8x512xf32> to vector<8x128xf32>
    %451 = math.tanh %450 : vector<8x128xf32>
    %452 = vector.extract_strided_slice %437 {offsets = [0, 384], sizes = [8, 128], strides = [1, 1]} : vector<8x512xf32> to vector<8x128xf32>
    %453 = arith.negf %452 : vector<8x128xf32>
    %454 = math.exp %453 : vector<8x128xf32>
    %cst_167 = arith.constant 1.000000e+00 : f32
    %455 = vector.broadcast %cst_167 : f32 to vector<8x128xf32>
    %456 = arith.addf %455, %454 : vector<8x128xf32>
    %457 = arith.divf %455, %456 : vector<8x128xf32>
    %458 = arith.mulf %449, %430 : vector<8x128xf32>
    %459 = arith.mulf %443, %451 : vector<8x128xf32>
    %460 = arith.addf %458, %459 : vector<8x128xf32>
    %461 = math.tanh %460 : vector<8x128xf32>
    %462 = arith.mulf %457, %461 : vector<8x128xf32>
    %c40_168 = arith.constant 40 : index
    %c0_169 = arith.constant 0 : index
    %463 = vector.load %arg20[%c40_168, %c0_169] : memref<48x128xf32, #tpu.memory_space<vmem>>, vector<8x128xf32>
    tpu.vector_store %arg20[%c40_168, %c0_169], %462 {strides = array<i32>} : memref<48x128xf32, #tpu.memory_space<vmem>>, vector<8x128xf32>,
    %c0_170 = arith.constant 0 : index
    %c0_171 = arith.constant 0 : index
    %464 = vector.load %arg20[%c0_170, %c0_171] : memref<48x128xf32, #tpu.memory_space<vmem>>, vector<48x128xf32>
    %c0_172 = arith.constant 0 : index
    %c0_173 = arith.constant 0 : index
    %465 = vector.load %arg12[%c0_172, %c0_173] : memref<128x128xf32, #tpu.memory_space<vmem>>, vector<128x128xf32>
    %cst_174 = arith.constant dense<0.000000e+00> : vector<48x128xf32>
    %466 = tpu.matmul %464, %465, %cst_174 {dimension_numbers = #tpu.dot_dimension_numbers<[1], [0], [0], [1], [0, 0, 1, 1], [], []>} : vector<48x128xf32>, vector<128x128xf32>, vector<48x128xf32> -> vector<48x128xf32>
    %c0_175 = arith.constant 0 : index
    %c0_176 = arith.constant 0 : index
    %467 = vector.load %arg13[%c0_175, %c0_176] : memref<1x128xf32, #tpu.memory_space<vmem>>, vector<1x128xf32>
    %468 = vector.broadcast %467 : vector<1x128xf32> to vector<48x128xf32>
    %469 = arith.addf %466, %468 : vector<48x128xf32>
    %c0_177 = arith.constant 0 : index
    %c0_178 = arith.constant 0 : index
    %470 = vector.load %arg14[%c0_177, %c0_178] : memref<48x128xf32, #tpu.memory_space<vmem>>, vector<48x128xf32>
    tpu.vector_store %arg14[%c0_177, %c0_178], %469 {strides = array<i32>} : memref<48x128xf32, #tpu.memory_space<vmem>>, vector<48x128xf32>,
    return
  }
}

</mosaic_0001>

<bundles_post_ra>
// kernel: tpu_custom_call.1
= control target key start
LH: loop header
LB: loop body
LE: loop exit
PB: predicated region body
PF: predicated region fallthrough
CT: control target
= control target key end

     0   :  { %s7855_s0 = inlined_call_operand.vmem [shape: s32[64,1], index: 0, kind: input, shape index: {}]   ;;  %s7856_s1 = inlined_call_operand.vmem [shape: s32[48,1], index: 1, kind: input, shape index: {}]   ;;  %s7857_s2 = inlined_call_operand.vmem [shape: f32[8,64], index: 2, kind: input, shape index: {}]   ;;  %s7858_s3 = inlined_call_operand.vmem [shape: f32[8,128], index: 3, kind: input, shape index: {}]   ;;  %s7859_s4 = inlined_call_operand.hbm [shape: f32[128,512], index: 4, kind: input, shape index: {}]   ;;  %s7860_s5 = inlined_call_operand.hbm [shape: f32[128,512], index: 5, kind: input, shape index: {}]   ;;  %s7861_s6 = inlined_call_operand.hbm [shape: f32[128,256], index: 6, kind: input, shape index: {}]   ;;  %s7862_s7 = inlined_call_operand.hbm [shape: f32[1,256], index: 7, kind: input, shape index: {}]   ;;  %s7863_s8 = inlined_call_operand.vmem [shape: f32[128,128], index: 8, kind: input, shape index: {}]   ;;  %s7864_s9 = inlined_call_operand.vmem [shape: f32[1,128], index: 9, kind: input, shape index: {}]   ;;  %s7865_s10 = inlined_call_operand.hbm [shape: f32[128,512], index: 10, kind: input, shape index: {}]   ;;  %s7866_s11 = inlined_call_operand.hbm [shape: f32[128,512], index: 11, kind: input, shape index: {}]   ;;  %s7867_s12 = inlined_call_operand.hbm [shape: f32[128,128], index: 12, kind: input, shape index: {}]   ;;  %s7868_s13 = inlined_call_operand.vmem [shape: f32[1,128], index: 13, kind: input, shape index: {}]   ;;  %s7869_s14 = inlined_call_operand.hbm [shape: f32[48,128], index: 14, kind: output, shape index: {0}]   ;;  %s7870_s15 = inlined_call_operand.hbm [shape: f32[8,128], index: 15, kind: output, shape index: {1}]   ;;  %s7871_s16 = inlined_call_operand.hbm [shape: f32[8,128], index: 16, kind: output, shape index: {2}]  }
   0x1   :  { %7873 = sst [smem:[#allocation28_spill]] %s7855_s0 }
   0x2   :  { %22 = vsyncpa [#allocation7], 0 }
   0x3   :  { %23 = vsyncpa [#allocation10], 0 }
   0x4   :  { %24 = vsyncpa [#allocation13], 0 }
   0x5   :  { %25 = vsyncpa [#allocation16], 0 }
   0x6   :  { %26 = vsyncpa [#allocation8], 0 }
   0x7   :  { %27 = vsyncpa [#allocation20], 0  ;;  %s6570_s21 = smov [#allocation9]   ;;  %s6571_s23 = smov [#allocation12]  }
   0x8   :  { %s53_s22 = sshll.u32 %s6570_s21, 4  ;;  %s78_s24 = sshll.u32 %s6571_s23, 4  ;;  %s54_s22 = int_to_ptr.vmem [resolvable:$true] %s53_s22  ;;  %s79_s24 = int_to_ptr.vmem [resolvable:$true] %s78_s24 }
   0x9   :  { %s6338_s27 = scalar_lea.hbm %s7860_s5, 8192 }
   0xa   :  { %p6339_p0 = scmp.ne.s32.totalorder %s7860_s5, %s6338_s27  ;;  %p6342_p1 = scmp.lt.u32.totalorder %s6338_s27, %s7860_s5 }
   0xc   :  { %p6344_p2 = pnand %p6342_p1, %p6339_p0 }
   0xe   :  { %6347 = shalt.err (!%p6344_p2)
}
   0xf   :  { %s6348_s17 = scalar_lea.vmem %s54_s22, 8192  ;;  %p6353_p4 = scmp.lt.s32.totalorder %s54_s22, %s54_s22 }
  0x10   :  { %p6349_p3 = scmp.ne.s32.totalorder %s54_s22, %s6348_s17  ;;  %p6354_p5 = scmp.lt.s32.totalorder %s6348_s17, %s6348_s17 }
  0x12   :  { %p6355_p6 = por %p6354_p5, %p6353_p4 }
  0x14   :  { %p6356_p7 = pnand %p6355_p6, %p6349_p3 }
  0x16   :  { %6359 = shalt.err (!%p6356_p7)
}
  0x17   :  { %s6572_s18 = smov 512   ;;  %s6573_s19 = smov 32  }
  0x18   :  { %59 = dma.hbm_to_vmem [thread:$0]  %s7860_s5, 8192, %s54_s22, [#allocation10], %s6572_s18, %s6572_s18, %s6573_s19  }
  0x19   :  { %s6360_s26 = scalar_lea.hbm %s7862_s7, 32 }
  0x1a   :  { %p6361_p8 = scmp.ne.s32.totalorder %s7862_s7, %s6360_s26  ;;  %p6364_p9 = scmp.lt.u32.totalorder %s6360_s26, %s7862_s7 }
  0x1c   :  { %p6366_p10 = pnand %p6364_p9, %p6361_p8 }
  0x1e   :  { %6369 = shalt.err (!%p6366_p10)
}
  0x1f   :  { %s6370_s0 = scalar_lea.vmem %s79_s24, 32  ;;  %p6375_p12 = scmp.lt.s32.totalorder %s79_s24, %s79_s24 }
  0x20   :  { %p6371_p11 = scmp.ne.s32.totalorder %s79_s24, %s6370_s0  ;;  %p6376_p13 = scmp.lt.s32.totalorder %s6370_s0, %s6370_s0 }
  0x22   :  { %p6377_p0 = por %p6376_p13, %p6375_p12 }
  0x24   :  { %p6378_p1 = pnand %p6377_p0, %p6371_p11 }
  0x26   :  { %6381 = shalt.err (!%p6378_p1)
}
  0x27   :  { %81 = dma.hbm_to_vmem [thread:$0]  %s7862_s7, 32, %s79_s24, [#allocation13]  }
  0x28   :  { %s6574_s17 = smov [#allocation15]   ;;  %s6575_s21 = smov [#allocation6]  }
  0x29   :  { %s103_s20 = sshll.u32 %s6574_s17, 4  ;;  %s41_s23 = sshll.u32 %s6575_s21, 4  ;;  %s104_s20 = int_to_ptr.vmem [resolvable:$true] %s103_s20  ;;  %s6703_s23 = int_to_ptr.vmem [resolvable:$true] %s41_s23 }
  0x2a   :  { %s6382_s27 = scalar_lea.hbm %s7866_s11, 8192 }
  0x2b   :  { %p6383_p2 = scmp.ne.s32.totalorder %s7866_s11, %s6382_s27  ;;  %p6386_p3 = scmp.lt.u32.totalorder %s6382_s27, %s7866_s11 }
  0x2d   :  { %p6388_p4 = pnand %p6386_p3, %p6383_p2 }
  0x2f   :  { %6391 = shalt.err (!%p6388_p4)
}
  0x30   :  { %s6392_s7 = scalar_lea.vmem %s104_s20, 8192  ;;  %p6397_p6 = scmp.lt.s32.totalorder %s104_s20, %s104_s20 }
  0x31   :  { %p6393_p5 = scmp.ne.s32.totalorder %s104_s20, %s6392_s7  ;;  %p6398_p7 = scmp.lt.s32.totalorder %s6392_s7, %s6392_s7 }
  0x33   :  { %p6399_p8 = por %p6398_p7, %p6397_p6 }
  0x35   :  { %p6400_p9 = pnand %p6399_p8, %p6393_p5 }
  0x37   :  { %6403 = shalt.err (!%p6400_p9)
}
  0x38   :  { %109 = dma.hbm_to_vmem [thread:$0]  %s7866_s11, 8192, %s104_s20, [#allocation16], %s6572_s18, %s6572_s18, %s6573_s19  }
  0x39   :  { %s6404_s21 = scalar_lea.hbm %s7859_s4, 8192 }
  0x3a   :  { %p6405_p10 = scmp.ne.s32.totalorder %s7859_s4, %s6404_s21  ;;  %p6408_p11 = scmp.lt.u32.totalorder %s6404_s21, %s7859_s4 }
  0x3c   :  { %p6410_p12 = pnand %p6408_p11, %p6405_p10 }
  0x3e   :  { %6413 = shalt.err (!%p6410_p12)
}
  0x3f   :  { %s6414_s29 = scalar_lea.vmem %s6703_s23, 8192  ;;  %p6419_p0 = scmp.lt.s32.totalorder %s6703_s23, %s6703_s23 }
  0x40   :  { %p6415_p13 = scmp.ne.s32.totalorder %s6703_s23, %s6414_s29  ;;  %p6420_p1 = scmp.lt.s32.totalorder %s6414_s29, %s6414_s29 }
  0x42   :  { %p6421_p2 = por %p6420_p1, %p6419_p0 }
  0x44   :  { %p6422_p3 = pnand %p6421_p2, %p6415_p13 }
  0x46   :  { %6425 = shalt.err (!%p6422_p3)
}
  0x47   :  { %47 = dma.hbm_to_vmem [thread:$0]  %s7859_s4, 8192, %s6703_s23, [#allocation7], %s6572_s18, %s6572_s18, %s6573_s19  }
  0x48   :  { %s6576_s30 = smov [#allocation11]   ;;  %s6426_s5 = scalar_lea.hbm %s7861_s6, 4096 }
  0x49   :  { %s65_s0 = sshll.u32 %s6576_s30, 4  ;;  %p6427_p4 = scmp.ne.s32.totalorder %s7861_s6, %s6426_s5  ;;  %s66_s0 = int_to_ptr.vmem [resolvable:$true] %s65_s0 }
  0x4a   :  { %p6430_p5 = scmp.lt.u32.totalorder %s6426_s5, %s7861_s6 }
  0x4c   :  { %p6432_p6 = pnand %p6430_p5, %p6427_p4 }
  0x4e   :  { %6435 = shalt.err (!%p6432_p6)
}
  0x4f   :  { %s6436_s26 = scalar_lea.vmem %s66_s0, 4096  ;;  %p6441_p8 = scmp.lt.s32.totalorder %s66_s0, %s66_s0 }
  0x50   :  { %p6437_p7 = scmp.ne.s32.totalorder %s66_s0, %s6436_s26  ;;  %p6442_p9 = scmp.lt.s32.totalorder %s6436_s26, %s6436_s26 }
  0x52   :  { %p6443_p10 = por %p6442_p9, %p6441_p8 }
  0x54   :  { %p6444_p11 = pnand %p6443_p10, %p6437_p7 }
  0x56   :  { %6447 = shalt.err (!%p6444_p11)
}
  0x57   :  { %s6577_s4 = smov 256   ;;  %s6578_s23 = smov 16  }
  0x58   :  { %71 = dma.hbm_to_vmem [thread:$0]  %s7861_s6, 4096, %s66_s0, [#allocation10], %s6577_s4, %s6577_s4, %s6578_s23  }
  0x59   :  { %s6579_s29 = smov [#allocation14]   ;;  %s6580_s20 = smov [#allocation17]  }
  0x5a   :  { %s91_s11 = sshll.u32 %s6579_s29, 4  ;;  %s115_s30 = sshll.u32 %s6580_s20, 4  ;;  %s92_s11 = int_to_ptr.vmem [resolvable:$true] %s91_s11  ;;  %s116_s30 = int_to_ptr.vmem [resolvable:$true] %s115_s30 }
  0x5b   :  { %s6448_s5 = scalar_lea.hbm %s7865_s10, 8192 }
  0x5c   :  { %p6449_p12 = scmp.ne.s32.totalorder %s7865_s10, %s6448_s5  ;;  %p6452_p13 = scmp.lt.u32.totalorder %s6448_s5, %s7865_s10 }
  0x5e   :  { %p6454_p0 = pnand %p6452_p13, %p6449_p12 }
  0x60   :  { %6457 = shalt.err (!%p6454_p0)
}
  0x61   :  { %s6458_s6 = scalar_lea.vmem %s92_s11, 8192  ;;  %p6463_p2 = scmp.lt.s32.totalorder %s92_s11, %s92_s11 }
  0x62   :  { %p6459_p1 = scmp.ne.s32.totalorder %s92_s11, %s6458_s6  ;;  %p6464_p3 = scmp.lt.s32.totalorder %s6458_s6, %s6458_s6 }
  0x64   :  { %p6465_p4 = por %p6464_p3, %p6463_p2 }
  0x66   :  { %p6466_p5 = pnand %p6465_p4, %p6459_p1 }
  0x68   :  { %6469 = shalt.err (!%p6466_p5)
}
  0x69   :  { %97 = dma.hbm_to_vmem [thread:$0]  %s7865_s10, 8192, %s92_s11, [#allocation13], %s6572_s18, %s6572_s18, %s6573_s19  }
  0x6a   :  { %s6470_s27 = scalar_lea.hbm %s7867_s12, 2048 }
  0x6b   :  { %p6471_p6 = scmp.ne.s32.totalorder %s7867_s12, %s6470_s27  ;;  %p6474_p7 = scmp.lt.u32.totalorder %s6470_s27, %s7867_s12 }
  0x6d   :  { %p6476_p8 = pnand %p6474_p7, %p6471_p6 }
  0x6f   :  { %6479 = shalt.err (!%p6476_p8)
}
  0x70   :  { %s6480_s24 = scalar_lea.vmem %s116_s30, 2048  ;;  %p6485_p10 = scmp.lt.s32.totalorder %s116_s30, %s116_s30 }
  0x71   :  { %p6481_p9 = scmp.ne.s32.totalorder %s116_s30, %s6480_s24  ;;  %p6486_p11 = scmp.lt.s32.totalorder %s6480_s24, %s6480_s24 }
  0x73   :  { %p6487_p12 = por %p6486_p11, %p6485_p10 }
  0x75   :  { %p6488_p13 = pnand %p6487_p12, %p6481_p9 }
  0x77   :  { %6491 = shalt.err (!%p6488_p13)
}
  0x78   :  { %s6581_s10 = smov 128   ;;  %s6582_s18 = smov 8  }
  0x79   :  { %121 = dma.hbm_to_vmem [thread:$0]  %s7867_s12, 2048, %s116_s30, [#allocation16], %s6581_s10, %s6581_s10, %s6582_s18  }
  0x7a   :  { %6558 = dma.done.wait [#allocation7], 8192  }
  0x7b   :  { %6559 = vsyncadd [#allocation7], 4294959104 }
  0x7c   :  { %6560 = dma.done.wait [#allocation10], 12288  }
  0x7d   :  { %6561 = vsyncadd [#allocation10], 4294955008 }
  0x7e   :  { %6562 = dma.done.wait [#allocation13], 8224  }
  0x7f   :  { %6563 = vsyncadd [#allocation13], 4294959072 }
  0x80   :  { %6564 = dma.done.wait [#allocation16], 10240  }
  0x81   :  { %6565 = vsyncadd [#allocation16], 4294957056  ;;  %v6583_v0 = vmov 0   ;;  %s7874_s17 = sld [smem:[#allocation28_spill]]  ;;  %v6584_v5 = vmov 0.0   ;;  %v204_v8 = vld [vmem:[#allocation6 + $0x8] sm:$0xff] }
  0x82   :  { %6111 = vset.pattern.permute.xlu1 %v6583_v0  ;;  %6110 = vset.pattern.permute.xlu0 %v6583_v0  ;;  %v208_v9 = vld [vmem:[#allocation6 + $0x28] sm:$0xff]  ;;  %v206_v10 = vld [vmem:[#allocation6 + $0x18] sm:$0xff]  ;;  %v203_v14 = vld [vmem:[#allocation6] sm:$0xff]  ;;  %vm6587_vm14 = vmmov 0   ;;  %vm2778_vm15 = vcmask 523264  }
  0x83   :  { %331 = vmatprep.mubr.f32.mxu0 %v6584_v5  ;;  %444 = vmatprep.mubr.f32.mxu1 %v6584_v5  ;;  %v210_v11 = vld [vmem:[#allocation6 + $0x38] sm:$0xff]  ;;  %v4909_v12 = vpack.c.bf16 %v208_v9, %v204_v8  ;;  %v207_v15 = vld [vmem:[#allocation6 + $0x20] sm:$0xff]  ;;  %v205_v16 = vld [vmem:[#allocation6 + $0x10] sm:$0xff] }
  0x84   :  { %v4941_v13 = vpack.c.bf16 %v210_v11, %v206_v10  ;;  %v4911_v17 = vpack.c.bf16 %v207_v15, %v203_v14  ;;  %v209_v18 = vld [vmem:[#allocation6 + $0x30] sm:$0xff]  ;;  %v212_v19 = vld [vmem:[#allocation6 + $0x48] sm:$0xff]  ;;  %v214_v25 = vld [vmem:[#allocation6 + $0x58] sm:$0xff] }
  0x85   :  { %v216_v20 = vld [vmem:[#allocation6 + $0x68] sm:$0xff]  ;;  %4910 = vmatprep.subr.bf16.mxu0 %v4909_v12  ;;  %v4943_v23 = vpack.c.bf16 %v209_v18, %v205_v16  ;;  %v218_v26 = vld [vmem:[#allocation6 + $0x78] sm:$0xff]  ;;  %v211_v27 = vld [vmem:[#allocation6 + $0x40] sm:$0xff] }
  0x86   :  { %4942 = vmatprep.subr.bf16.mxu1 %v4941_v13  ;;  %v4913_v24 = vpack.c.bf16 %v216_v20, %v212_v19  ;;  %v4945_v28 = vpack.c.bf16 %v218_v26, %v214_v25  ;;  %v215_v29 = vld [vmem:[#allocation6 + $0x60] sm:$0xff]  ;;  %v213_v30 = vld [vmem:[#allocation6 + $0x50] sm:$0xff]  ;;  %4912 = vmatpush1.bf16.msra.mxu0 %v4911_v17  ;;  %v220_v34 = vld [vmem:[#allocation6 + $0x88] sm:$0xff] }
  0x87   :  { %v149_v1 = vld [vmem:[%s7874_s17 + $0x10] sm:$0xff]  ;;  %v147_v2 = vld [vmem:[%s7874_s17] sm:$0xff]  ;;  %v150_v3 = vld [vmem:[%s7874_s17 + $0x18] sm:$0xff]  ;;  %4944 = vmatpush1.bf16.msra.mxu1 %v4943_v23  ;;  %v4915_v32 = vpack.c.bf16 %v215_v29, %v211_v27 }
  0x88   :  { %162 = vperm.xlu1 %6111, %v149_v1   ;;  %156 = vperm.xlu0 %6110, %v147_v2   ;;  %v148_v4 = vld [vmem:[%s7874_s17 + $0x8] sm:$0xff]  ;;  %v151_v7 = vld [vmem:[%s7874_s17 + $0x20] sm:$0xff]  ;;  %v154_v21 = vld [vmem:[%s7874_s17 + $0x38] sm:$0xff] }
  0x89   :  { %v152_v6 = vld [vmem:[%s7874_s17 + $0x28] sm:$0xff]  ;;  %v153_v22 = vld [vmem:[%s7874_s17 + $0x30] sm:$0xff]  ;;  %v222_v36 = vld [vmem:[#allocation6 + $0x98] sm:$0xff]  ;;  %4914 = vmatprep.subr.bf16.mxu0 %v4913_v24  ;;  %4946 = vmatprep.subr.bf16.mxu1 %v4945_v28 }
  0x8a   :  { %v217_v31 = vld [vmem:[#allocation6 + $0x70] sm:$0xff]  ;;  %v224_v35 = vld [vmem:[#allocation6 + $0xa8] sm:$0xff]  ;;  %v226_v38 = vld [vmem:[#allocation6 + $0xb8] sm:$0xff]  ;;  %4916 = vmatpush1.bf16.msra.mxu0 %v4915_v32 }
  0x8b   :  { %v4947_v33 = vpack.c.bf16 %v217_v31, %v213_v30  ;;  %v4917_v37 = vpack.c.bf16 %v224_v35, %v220_v34  ;;  %v219_v39 = vld [vmem:[#allocation6 + $0x80] sm:$0xff]  ;;  %v526_v41 = vld [vmem:[%s7856_s1 + $0x8] sm:$0xff]  ;;  %v4949_v42 = vpack.c.bf16 %v226_v38, %v222_v36  ;;  %v221_v43 = vld [vmem:[#allocation6 + $0x90] sm:$0xff] }
  0x8c   :  { %165 = vperm.xlu1 %6111, %v150_v3   ;;  %159 = vperm.xlu0 %6110, %v148_v4   ;;  %v223_v40 = vld [vmem:[#allocation6 + $0xa0] sm:$0xff]  ;;  %v225_v44 = vld [vmem:[#allocation6 + $0xb0] sm:$0xff]  ;;  %v228_v45 = vld [vmem:[#allocation6 + $0xc8] sm:$0xff] }
  0x8d   :  { %v232_v46 = vld [vmem:[#allocation6 + $0xe8] sm:$0xff]  ;;  %v230_v47 = vld [vmem:[#allocation6 + $0xd8] sm:$0xff]  ;;  %v525_v49 = vld [vmem:[%s7856_s1] sm:$0xff]  ;;  %4948 = vmatpush1.bf16.msra.mxu1 %v4947_v33  ;;  %v4919_v50 = vpack.c.bf16 %v223_v40, %v219_v39  ;;  %v4951_v51 = vpack.c.bf16 %v225_v44, %v221_v43  ;;  %4918 = vmatprep.subr.bf16.mxu0 %v4917_v37 }
  0x8e   :  { %v234_v48 = vld [vmem:[#allocation6 + $0xf8] sm:$0xff]  ;;  %v227_v52 = vld [vmem:[#allocation6 + $0xc0] sm:$0xff]  ;;  %4950 = vmatprep.subr.bf16.mxu1 %v4949_v42  ;;  %v4921_v54 = vpack.c.bf16 %v232_v46, %v228_v45  ;;  %v229_v56 = vld [vmem:[#allocation6 + $0xd0] sm:$0xff] }
  0x8f   :  { %v231_v53 = vld [vmem:[#allocation6 + $0xe0] sm:$0xff]  ;;  %v4953_v55 = vpack.c.bf16 %v234_v48, %v230_v47  ;;  %v233_v57 = vld [vmem:[#allocation6 + $0xf0] sm:$0xff]  ;;  %v236_v58 = vld [vmem:[#allocation6 + $0x108] sm:$0xff]  ;;  %4920 = vmatpush1.bf16.msra.mxu0 %v4919_v50 }
  0x90   :  { %171 = vperm.xlu1 %6111, %v152_v6   ;;  %168 = vperm.xlu0 %6110, %v151_v7   ;;  %v240_v59 = vld [vmem:[#allocation6 + $0x128] sm:$0xff]  ;;  %v238_v60 = vld [vmem:[#allocation6 + $0x118] sm:$0xff]  ;;  %v527_v63 = vld [vmem:[%s7856_s1 + $0x10] sm:$0xff]  ;;  %v4923_v0 = vpack.c.bf16 %v231_v53, %v227_v52  ;;  %v4955_v1 = vpack.c.bf16 %v233_v57, %v229_v56 }
  0x91   :  { %v242_v61 = vld [vmem:[#allocation6 + $0x138] sm:$0xff]  ;;  %4952 = vmatpush1.bf16.msra.mxu1 %v4951_v51  ;;  %v235_v2 = vld [vmem:[#allocation6 + $0x100] sm:$0xff]  ;;  %4922 = vmatprep.subr.bf16.mxu0 %v4921_v54  ;;  %v4925_v4 = vpack.c.bf16 %v240_v59, %v236_v58  ;;  %v237_v7 = vld [vmem:[#allocation6 + $0x110] sm:$0xff] }
  0x92   :  { %v528_v62 = vld [vmem:[%s7856_s1 + $0x18] sm:$0xff]  ;;  %v239_v3 = vld [vmem:[#allocation6 + $0x120] sm:$0xff]  ;;  %4954 = vmatprep.subr.bf16.mxu1 %v4953_v55  ;;  %v4957_v6 = vpack.c.bf16 %v242_v61, %v238_v60  ;;  %v241_v8 = vld [vmem:[#allocation6 + $0x130] sm:$0xff]  ;;  %v145_v55 = vlaneseq }
  0x93   :  { %v244_v9 = vld [vmem:[#allocation6 + $0x148] sm:$0xff]  ;;  %v246_v11 = vld [vmem:[#allocation6 + $0x158] sm:$0xff]  ;;  %v529_v14 = vld [vmem:[%s7856_s1 + $0x20] sm:$0xff]  ;;  %4924 = vmatpush1.bf16.msra.mxu0 %v4923_v0  ;;  %v4927_v15 = vpack.c.bf16 %v239_v3, %v235_v2  ;;  %v4959_v16 = vpack.c.bf16 %v241_v8, %v237_v7 }
  0x94   :  { %177 = vperm.xlu1 %6111, %v154_v21   ;;  %174 = vperm.xlu0 %6110, %v153_v22   ;;  %v248_v10 = vld [vmem:[#allocation6 + $0x168] sm:$0xff]  ;;  %v250_v12 = vld [vmem:[#allocation6 + $0x178] sm:$0xff]  ;;  %v243_v17 = vld [vmem:[#allocation6 + $0x140] sm:$0xff]  ;;  %v6827_v60 = vand.u32 127, %v145_v55 }
  0x95   :  { %v530_v13 = vld [vmem:[%s7856_s1 + $0x28] sm:$0xff]  ;;  %4956 = vmatpush1.bf16.msra.mxu1 %v4955_v1  ;;  %v247_v18 = vld [vmem:[#allocation6 + $0x160] sm:$0xff]  ;;  %4926 = vmatprep.subr.bf16.mxu0 %v4925_v4  ;;  %v4929_v19 = vpack.c.bf16 %v248_v10, %v244_v9  ;;  %v4961_v20 = vpack.c.bf16 %v250_v12, %v246_v11  ;;  %v245_v21 = vld [vmem:[#allocation6 + $0x150] sm:$0xff]  ;;  %v6585_v12 = vmov 1.0  }
  0x96   :  { %4958 = vmatprep.subr.bf16.mxu1 %v4957_v6  ;;  %v249_v22 = vld [vmem:[#allocation6 + $0x170] sm:$0xff]  ;;  %v252_v23 = vld [vmem:[#allocation6 + $0x188] sm:$0xff]  ;;  %v254_v25 = vld [vmem:[#allocation6 + $0x198] sm:$0xff]  ;;  %v4931_v27 = vpack.c.bf16 %v247_v18, %v243_v17 }
  0x97   :  { %v256_v24 = vld [vmem:[#allocation6 + $0x1a8] sm:$0xff]  ;;  %v258_v26 = vld [vmem:[#allocation6 + $0x1b8] sm:$0xff]  ;;  %4928 = vmatpush1.bf16.msra.mxu0 %v4927_v15  ;;  %v4963_v28 = vpack.c.bf16 %v249_v22, %v245_v21  ;;  %v251_v29 = vld [vmem:[#allocation6 + $0x180] sm:$0xff] }
  0x98   :  { %535 = vperm.xlu1 %6111, %v526_v41   ;;  %532 = vperm.xlu0 %6110, %v525_v49   ;;  %v255_v30 = vld [vmem:[#allocation6 + $0x1a0] sm:$0xff]  ;;  %v4933_v31 = vpack.c.bf16 %v256_v24, %v252_v23  ;;  %v4965_v32 = vpack.c.bf16 %v258_v26, %v254_v25  ;;  %v253_v33 = vld [vmem:[#allocation6 + $0x190] sm:$0xff]  ;;  %v260_v35 = vld [vmem:[#allocation6 + $0x1c8] sm:$0xff] }
  0x99   :  { %4960 = vmatpush1.bf16.msra.mxu1 %v4959_v16  ;;  %4930 = vmatprep.subr.bf16.mxu0 %v4929_v19  ;;  %v257_v34 = vld [vmem:[#allocation6 + $0x1b0] sm:$0xff]  ;;  %v264_v36 = vld [vmem:[#allocation6 + $0x1e8] sm:$0xff]  ;;  %v262_v37 = vld [vmem:[#allocation6 + $0x1d8] sm:$0xff]  ;;  %v4935_v39 = vpack.c.bf16 %v255_v30, %v251_v29 }
  0x9a   :  { %4962 = vmatprep.subr.bf16.mxu1 %v4961_v20  ;;  %v266_v38 = vld [vmem:[#allocation6 + $0x1f8] sm:$0xff]  ;;  %v4967_v40 = vpack.c.bf16 %v257_v34, %v253_v33  ;;  %v259_v41 = vld [vmem:[#allocation6 + $0x1c0] sm:$0xff]  ;;  %v4937_v43 = vpack.c.bf16 %v264_v36, %v260_v35  ;;  %v261_v45 = vld [vmem:[#allocation6 + $0x1d0] sm:$0xff] }
  0x9b   :  { %4932 = vmatpush1.bf16.msra.mxu0 %v4931_v27  ;;  %v263_v42 = vld [vmem:[#allocation6 + $0x1e0] sm:$0xff]  ;;  %v4969_v44 = vpack.c.bf16 %v266_v38, %v262_v37  ;;  %v265_v46 = vld [vmem:[#allocation6 + $0x1f0] sm:$0xff] }
  0x9c   :  { %541 = vperm.xlu1 %6111, %v528_v62   ;;  %538 = vperm.xlu0 %6110, %v527_v63   ;;  %v568_v47 = vld [vmem:[#allocation14 + $0x8] sm:$0xff]  ;;  %v570_v49 = vld [vmem:[#allocation14 + $0x18] sm:$0xff]  ;;  %v4939_v51 = vpack.c.bf16 %v263_v42, %v259_v41  ;;  %v4971_v52 = vpack.c.bf16 %v265_v46, %v261_v45  ;;  %v567_v56 = vld [vmem:[#allocation14] sm:$0xff] }
  0x9d   :  { %4964 = vmatpush1.bf16.msra.mxu1 %v4963_v28  ;;  %4934 = vmatprep.subr.bf16.mxu0 %v4933_v31  ;;  %v572_v48 = vld [vmem:[#allocation14 + $0x28] sm:$0xff]  ;;  %v574_v50 = vld [vmem:[#allocation14 + $0x38] sm:$0xff]  ;;  %v571_v57 = vld [vmem:[#allocation14 + $0x20] sm:$0xff] }
  0x9e   :  { %4966 = vmatprep.subr.bf16.mxu1 %v4965_v32  ;;  %v4973_v53 = vpack.c.bf16 %v572_v48, %v568_v47  ;;  %v5005_v54 = vpack.c.bf16 %v574_v50, %v570_v49  ;;  %v569_v58 = vld [vmem:[#allocation14 + $0x10] sm:$0xff]  ;;  %v576_v61 = vld [vmem:[#allocation14 + $0x48] sm:$0xff]  ;;  %v578_v63 = vld [vmem:[#allocation14 + $0x58] sm:$0xff]  ;;  %v4975_v1 = vpack.c.bf16 %v571_v57, %v567_v56 }
  0x9f   :  { %4936 = vmatpush1.bf16.msra.mxu0 %v4935_v39  ;;  %v573_v59 = vld [vmem:[#allocation14 + $0x30] sm:$0xff]  ;;  %v580_v62 = vld [vmem:[#allocation14 + $0x68] sm:$0xff]  ;;  %v582_v0 = vld [vmem:[#allocation14 + $0x78] sm:$0xff] }
  0xa0   :  { %547 = vperm.xlu1 %6111, %v530_v13   ;;  %544 = vperm.xlu0 %6110, %v529_v14   ;;  %v5007_v2 = vpack.c.bf16 %v573_v59, %v569_v58  ;;  %v575_v3 = vld [vmem:[#allocation14 + $0x40] sm:$0xff]  ;;  %v577_v7 = vld [vmem:[#allocation14 + $0x50] sm:$0xff]  ;;  %v4977_v9 = vpack.c.bf16 %v580_v62, %v576_v61  ;;  %v5009_v10 = vpack.c.bf16 %v582_v0, %v578_v63  ;;  %v584_v11 = vld [vmem:[#allocation14 + $0x88] sm:$0xff] }
  0xa1   :  { %4968 = vmatpush1.bf16.msra.mxu1 %v4967_v40  ;;  %4938 = vmatprep.subr.bf16.mxu0 %v4937_v43  ;;  %v579_v6 = vld [vmem:[#allocation14 + $0x60] sm:$0xff]  ;;  %v581_v8 = vld [vmem:[#allocation14 + $0x70] sm:$0xff]  ;;  %v588_v13 = vld [vmem:[#allocation14 + $0xa8] sm:$0xff] }
  0xa2   :  { %4970 = vmatprep.subr.bf16.mxu1 %v4969_v44  ;;  %v586_v14 = vld [vmem:[#allocation14 + $0x98] sm:$0xff]  ;;  %v4979_v16 = vpack.c.bf16 %v579_v6, %v575_v3  ;;  %v5011_v17 = vpack.c.bf16 %v581_v8, %v577_v7  ;;  %v583_v18 = vld [vmem:[#allocation14 + $0x80] sm:$0xff]  ;;  %v585_v21 = vld [vmem:[#allocation14 + $0x90] sm:$0xff]  ;;  %v4981_v23 = vpack.c.bf16 %v588_v13, %v584_v11 }
  0xa3   :  { %4940 = vmatpush1.bf16.msra.mxu0 %v4939_v51  ;;  %v590_v15 = vld [vmem:[#allocation14 + $0xb8] sm:$0xff]  ;;  %v587_v20 = vld [vmem:[#allocation14 + $0xa0] sm:$0xff]  ;;  %v589_v22 = vld [vmem:[#allocation14 + $0xb0] sm:$0xff] }
  0xa4   :  { %4974 = vmatprep.subr.bf16.mxu0 %v4973_v53  ;;  %v5013_v24 = vpack.c.bf16 %v590_v15, %v586_v14  ;;  %v592_v25 = vld [vmem:[#allocation14 + $0xc8] sm:$0xff]  ;;  %v594_v28 = vld [vmem:[#allocation14 + $0xd8] sm:$0xff]  ;;  %v4983_v30 = vpack.c.bf16 %v587_v20, %v583_v18  ;;  %v5015_v31 = vpack.c.bf16 %v589_v22, %v585_v21  ;;  %v591_v32 = vld [vmem:[#allocation14 + $0xc0] sm:$0xff] }
  0xa5   :  { %4972 = vmatpush1.bf16.msra.mxu1 %v4971_v52  ;;  %v596_v27 = vld [vmem:[#allocation14 + $0xe8] sm:$0xff]  ;;  %v598_v29 = vld [vmem:[#allocation14 + $0xf8] sm:$0xff]  ;;  %v595_v33 = vld [vmem:[#allocation14 + $0xe0] sm:$0xff] }
  0xa6   :  { %5006 = vmatprep.subr.bf16.mxu1 %v5005_v54  ;;  %v593_v34 = vld [vmem:[#allocation14 + $0xd0] sm:$0xff]  ;;  %v4985_v36 = vpack.c.bf16 %v596_v27, %v592_v25  ;;  %v5017_v37 = vpack.c.bf16 %v598_v29, %v594_v28  ;;  %v600_v38 = vld [vmem:[#allocation14 + $0x108] sm:$0xff]  ;;  %v602_v40 = vld [vmem:[#allocation14 + $0x118] sm:$0xff]  ;;  %v4987_v42 = vpack.c.bf16 %v595_v33, %v591_v32 }
  0xa7   :  { %v597_v35 = vld [vmem:[#allocation14 + $0xf0] sm:$0xff]  ;;  %v604_v39 = vld [vmem:[#allocation14 + $0x128] sm:$0xff]  ;;  %v606_v41 = vld [vmem:[#allocation14 + $0x138] sm:$0xff] }
  0xa8   :  { %v5019_v43 = vpack.c.bf16 %v597_v35, %v593_v34  ;;  %v599_v44 = vld [vmem:[#allocation14 + $0x100] sm:$0xff]  ;;  %v601_v47 = vld [vmem:[#allocation14 + $0x110] sm:$0xff]  ;;  %v4989_v49 = vpack.c.bf16 %v604_v39, %v600_v38  ;;  %v5021_v50 = vpack.c.bf16 %v606_v41, %v602_v40  ;;  %v608_v51 = vld [vmem:[#allocation14 + $0x148] sm:$0xff] }
  0xa9   :  { %v603_v46 = vld [vmem:[#allocation14 + $0x120] sm:$0xff]  ;;  %v605_v48 = vld [vmem:[#allocation14 + $0x130] sm:$0xff]  ;;  %v612_v53 = vld [vmem:[#allocation14 + $0x168] sm:$0xff] }
  0xaa   :  { %v610_v54 = vld [vmem:[#allocation14 + $0x158] sm:$0xff]  ;;  %v4991_v57 = vpack.c.bf16 %v603_v46, %v599_v44  ;;  %v5023_v58 = vpack.c.bf16 %v605_v48, %v601_v47  ;;  %v607_v59 = vld [vmem:[#allocation14 + $0x140] sm:$0xff]  ;;  %v609_v62 = vld [vmem:[#allocation14 + $0x150] sm:$0xff]  ;;  %v4993_v0 = vpack.c.bf16 %v612_v53, %v608_v51 }
  0xab   :  { %v614_v56 = vld [vmem:[#allocation14 + $0x178] sm:$0xff]  ;;  %v611_v61 = vld [vmem:[#allocation14 + $0x160] sm:$0xff]  ;;  %v613_v63 = vld [vmem:[#allocation14 + $0x170] sm:$0xff] }
  0xac   :  { %v618_v6 = vld [vmem:[#allocation14 + $0x198] sm:$0xff]  ;;  %v4995_v8 = vpack.c.bf16 %v611_v61, %v607_v59  ;;  %v619_v11 = vld [vmem:[#allocation14 + $0x1a0] sm:$0xff]  ;;  %v617_v13 = vld [vmem:[#allocation14 + $0x190] sm:$0xff] }
  0xad   :  { %v622_v7 = vld [vmem:[#allocation14 + $0x1b8] sm:$0xff]  ;;  %v621_v14 = vld [vmem:[#allocation14 + $0x1b0] sm:$0xff]  ;;  %v627_v25 = vld [vmem:[#allocation14 + $0x1e0] sm:$0xff] }
  0xae   :  { %v626_v20 = vld [vmem:[#allocation14 + $0x1d8] sm:$0xff]  ;;  %v629_v27 = vld [vmem:[#allocation14 + $0x1f0] sm:$0xff]  ;;  %v866_v32 = vld [vmem:[#allocation9 + $0x28] sm:$0xff] }
  0xaf   :  { %v630_v21 = vld [vmem:[#allocation14 + $0x1f8] sm:$0xff]  ;;  %v863_v39 = vld [vmem:[#allocation9 + $0x10] sm:$0xff]  ;;  %v882_v59 = vld [vmem:[#allocation9 + $0xa8] sm:$0xff] }
  0xb0   :  { %v5033_v29 = vpack.c.bf16 %v630_v21, %v626_v20  ;;  %v864_v33 = vld [vmem:[#allocation9 + $0x18] sm:$0xff]  ;;  %v865_v38 = vld [vmem:[#allocation9 + $0x20] sm:$0xff]  ;;  %v867_v40 = vld [vmem:[#allocation9 + $0x30] sm:$0xff] }
  0xb1   :  { %v868_v34 = vld [vmem:[#allocation9 + $0x38] sm:$0xff]  ;;  %v873_v51 = vld [vmem:[#allocation9 + $0x60] sm:$0xff]  ;;  %v875_v53 = vld [vmem:[#allocation9 + $0x70] sm:$0xff] }
  0xb2   :  { %v872_v46 = vld [vmem:[#allocation9 + $0x58] sm:$0xff] }
  0xb3   :  { %v876_v47 = vld [vmem:[#allocation9 + $0x78] sm:$0xff] }
  0xb4   :  { %v880_v61 = vld [vmem:[#allocation9 + $0x98] sm:$0xff] }
 0x107   :  { %v157_v4 = vpop.permute.xlu0 %156  ;;  %v163_v26 = vpop.permute.xlu1 %162 }
 0x108   :  { %vm179_vm0 = vcmp.eq.s32.totalorder %v157_v4, %v6827_v60  ;;  %vm181_vm2 = vcmp.eq.s32.totalorder %v163_v26, %v6827_v60  ;;  %v620_v4 = vld [vmem:[#allocation14 + $0x1a8] sm:$0xff]  ;;  %v625_v26 = vld [vmem:[#allocation14 + $0x1d0] sm:$0xff] }
 0x109   :  { %4687 = vmatmul.mubr.msk.f32.vlgmr.msra.gmra.mrb[0].mxu0 %vm179_vm0, %v6585_v12  ;;  %4695 = vmatmul.mubr.msk.f32.vlgmr.msra.gmra.mrb[0].mxu1 %vm179_vm0, %v6585_v12 }
 0x10a   :  { %4976 = vmatpush1.bf16.msra.mxu0 %v4975_v1  ;;  %5008 = vmatpush1.bf16.msra.mxu1 %v5007_v2  ;;  %v5025_v1 = vpack.c.bf16 %v614_v56, %v610_v54  ;;  %v616_v2 = vld [vmem:[#allocation14 + $0x188] sm:$0xff]  ;;  %v6886_v56 = vpack.c.bf16 %v876_v47, %v872_v46 }
 0x10b   :  { %v160_v19 = vpop.permute.xlu0 %159  ;;  %337 = vmatprep.mubr.f32.mxu0 %v6584_v5  ;;  %450 = vmatprep.mubr.f32.mxu1 %v6584_v5  ;;  %v166_v45 = vpop.permute.xlu1 %165  ;;  %v4997_v15 = vpack.c.bf16 %v620_v4, %v616_v2  ;;  %v881_v2 = vld [vmem:[#allocation9 + $0xa0] sm:$0xff]  ;;  %v883_v4 = vld [vmem:[#allocation9 + $0xb0] sm:$0xff] }
 0x10c   :  { %vm180_vm1 = vcmp.eq.s32.totalorder %v160_v19, %v6827_v60  ;;  %4978 = vmatprep.subr.bf16.mxu0 %v4977_v9  ;;  %5010 = vmatprep.subr.bf16.mxu1 %v5009_v10  ;;  %vm182_vm3 = vcmp.eq.s32.totalorder %v166_v45, %v6827_v60  ;;  %v5027_v9 = vpack.c.bf16 %v613_v63, %v609_v62  ;;  %v615_v10 = vld [vmem:[#allocation14 + $0x180] sm:$0xff]  ;;  %v628_v19 = vld [vmem:[#allocation14 + $0x1e8] sm:$0xff]  ;;  %v884_v62 = vld [vmem:[#allocation9 + $0xb8] sm:$0xff] }
 0x10d   :  { %4688 = vmatmul.mubr.msk.f32.gmra.mrb[2].mxu0 %vm180_vm1, %v6585_v12  ;;  %4696 = vmatmul.mubr.msk.f32.gmra.mrb[2].mxu1 %vm180_vm1, %v6585_v12  ;;  %v4999_v22 = vpack.c.bf16 %v619_v11, %v615_v10  ;;  %v874_v45 = vld [vmem:[#allocation9 + $0x68] sm:$0xff]  ;;  %v888_v11 = vld [vmem:[#allocation9 + $0xd8] sm:$0xff]  ;;  %v903_v46 = vld [vmem:[#allocation9 + $0x150] sm:$0xff] }
 0x10e   :  { %4980 = vmatpush1.bf16.msra.mxu0 %v4979_v16  ;;  %5012 = vmatpush1.bf16.msra.mxu1 %v5011_v17  ;;  %v5029_v16 = vpack.c.bf16 %v622_v7, %v618_v6  ;;  %v624_v17 = vld [vmem:[#allocation14 + $0x1c8] sm:$0xff]  ;;  %v6903_v7 = vpack.c.bf16 %v884_v62, %v880_v61 }
 0x10f   :  { %343 = vmatprep.mubr.f32.mxu0 %v6584_v5  ;;  %456 = vmatprep.mubr.f32.mxu1 %v6584_v5  ;;  %v169_v52 = vpop.permute.xlu0 %168  ;;  %v172_v3 = vpop.permute.xlu1 %171  ;;  %v5001_v28 = vpack.c.bf16 %v628_v19, %v624_v17  ;;  %v890_v10 = vld [vmem:[#allocation9 + $0xe8] sm:$0xff]  ;;  %v889_v17 = vld [vmem:[#allocation9 + $0xe0] sm:$0xff]  ;;  %v891_v19 = vld [vmem:[#allocation9 + $0xf0] sm:$0xff] }
 0x110   :  { %4982 = vmatprep.subr.bf16.mxu0 %v4981_v23  ;;  %5014 = vmatprep.subr.bf16.mxu1 %v5013_v24  ;;  %vm183_vm4 = vcmp.eq.s32.totalorder %v169_v52, %v6827_v60  ;;  %vm184_vm5 = vcmp.eq.s32.totalorder %v172_v3, %v6827_v60  ;;  %v5031_v23 = vpack.c.bf16 %v621_v14, %v617_v13  ;;  %v623_v24 = vld [vmem:[#allocation14 + $0x1c0] sm:$0xff]  ;;  %v871_v52 = vld [vmem:[#allocation9 + $0x50] sm:$0xff]  ;;  %v892_v13 = vld [vmem:[#allocation9 + $0xf8] sm:$0xff] }
 0x111   :  { %4689 = vmatmul.mubr.msk.f32.gmra.mrb[4].mxu0 %vm181_vm2, %v6585_v12  ;;  %4697 = vmatmul.mubr.msk.f32.gmra.mrb[4].mxu1 %vm181_vm2, %v6585_v12  ;;  %v5003_v35 = vpack.c.bf16 %v627_v25, %v623_v24  ;;  %v879_v3 = vld [vmem:[#allocation9 + $0x90] sm:$0xff]  ;;  %v6920_v21 = vpack.c.bf16 %v892_v13, %v888_v11  ;;  %v898_v24 = vld [vmem:[#allocation9 + $0x128] sm:$0xff]  ;;  %v896_v25 = vld [vmem:[#allocation9 + $0x118] sm:$0xff] }
 0x112   :  { %4984 = vmatpush1.bf16.msra.mxu0 %v4983_v30  ;;  %5016 = vmatpush1.bf16.msra.mxu1 %v5015_v31  ;;  %v862_v30 = vld [vmem:[#allocation9 + $0x8] sm:$0xff]  ;;  %v907_v47 = vld [vmem:[#allocation9 + $0x170] sm:$0xff]  ;;  %v920_v13 = vld [vmem:[#allocation9 + $0x1d8] sm:$0xff] }
 0x113   :  { %349 = vmatprep.mubr.f32.mxu0 %v6584_v5  ;;  %462 = vmatprep.mubr.f32.mxu1 %v6584_v5  ;;  %v175_v18 = vpop.permute.xlu0 %174  ;;  %v178_v31 = vpop.permute.xlu1 %177  ;;  %v6869_v41 = vpack.c.bf16 %v866_v32, %v862_v30  ;;  %v897_v30 = vld [vmem:[#allocation9 + $0x120] sm:$0xff]  ;;  %v899_v32 = vld [vmem:[#allocation9 + $0x130] sm:$0xff]  ;;  %v6962_v62 = vpack.c.bf16 %v907_v47, %v903_v46  ;;  %v922_v11 = vld [vmem:[#allocation9 + $0x1e8] sm:$0xff] }
 0x114   :  { %4986 = vmatprep.subr.bf16.mxu0 %v4985_v36  ;;  %5018 = vmatprep.subr.bf16.mxu1 %v5017_v37  ;;  %vm185_vm6 = vcmp.eq.s32.totalorder %v175_v18, %v6827_v60  ;;  %v5035_v36 = vpack.c.bf16 %v629_v27, %v625_v26  ;;  %v861_v37 = vld [vmem:[#allocation9] sm:$0xff]  ;;  %vm186_vm7 = vcmp.eq.s32.totalorder %v178_v31, %v6827_v60  ;;  %v887_v18 = vld [vmem:[#allocation9 + $0xd0] sm:$0xff]  ;;  %v900_v26 = vld [vmem:[#allocation9 + $0x138] sm:$0xff] }
 0x115   :  { %4690 = vmatmul.mubr.msk.f32.gmra.mrb[6].mxu0 %vm182_vm3, %v6585_v12  ;;  %4698 = vmatmul.mubr.msk.f32.gmra.mrb[6].mxu1 %vm182_vm3, %v6585_v12  ;;  %v6875_v48 = vpack.c.bf16 %v865_v38, %v861_v37  ;;  %v895_v31 = vld [vmem:[#allocation9 + $0x110] sm:$0xff]  ;;  %v906_v37 = vld [vmem:[#allocation9 + $0x168] sm:$0xff]  ;;  %v904_v38 = vld [vmem:[#allocation9 + $0x158] sm:$0xff] }
 0x116   :  { %4988 = vmatpush1.bf16.msra.mxu0 %v4987_v42  ;;  %5020 = vmatpush1.bf16.msra.mxu1 %v5019_v43  ;;  %v6871_v42 = vpack.c.bf16 %v868_v34, %v864_v33  ;;  %v870_v43 = vld [vmem:[#allocation9 + $0x48] sm:$0xff]  ;;  %v6937_v34 = vpack.c.bf16 %v900_v26, %v896_v25 }
 0x117   :  { %355 = vmatprep.mubr.f32.mxu0 %v6584_v5  ;;  %468 = vmatprep.mubr.f32.mxu1 %v6584_v5  ;;  %v533_v44 = vpop.permute.xlu0 %532  ;;  %v6884_v54 = vpack.c.bf16 %v874_v45, %v870_v43  ;;  %v6945_v43 = vpack.c.bf16 %v899_v32, %v895_v31  ;;  %v905_v45 = vld [vmem:[#allocation9 + $0x160] sm:$0xff] }
 0x118   :  { %4990 = vmatprep.subr.bf16.mxu0 %v4989_v49  ;;  %5022 = vmatprep.subr.bf16.mxu1 %v5021_v50  ;;  %v6877_v49 = vpack.c.bf16 %v867_v40, %v863_v39  ;;  %v869_v50 = vld [vmem:[#allocation9 + $0x40] sm:$0xff]  ;;  %vm549_vm8 = vcmp.eq.s32.totalorder %v533_v44, %v6827_v60  ;;  %v908_v39 = vld [vmem:[#allocation9 + $0x178] sm:$0xff] }
 0x119   :  { %4691 = vmatmul.mubr.msk.f32.gmra.mrb[8].mxu0 %vm183_vm4, %v6585_v12  ;;  %4699 = vmatmul.mubr.msk.f32.gmra.mrb[8].mxu1 %vm183_vm4, %v6585_v12  ;;  %v6892_v63 = vpack.c.bf16 %v873_v51, %v869_v50  ;;  %v901_v44 = vld [vmem:[#allocation9 + $0x140] sm:$0xff]  ;;  %v910_v50 = vld [vmem:[#allocation9 + $0x188] sm:$0xff] }
 0x11a   :  { %4992 = vmatpush1.bf16.msra.mxu0 %v4991_v57  ;;  %5024 = vmatpush1.bf16.msra.mxu1 %v5023_v58  ;;  %v878_v57 = vld [vmem:[#allocation9 + $0x88] sm:$0xff]  ;;  %v536_v58 = vpop.permute.xlu1 %535  ;;  %v6960_v61 = vpack.c.bf16 %v905_v45, %v901_v44 }
 0x11b   :  { %361 = vmatprep.mubr.f32.mxu0 %v6584_v5  ;;  %474 = vmatprep.mubr.f32.mxu1 %v6584_v5  ;;  %vm550_vm9 = vcmp.eq.s32.totalorder %v536_v58, %v6827_v60  ;;  %v6901_v6 = vpack.c.bf16 %v882_v59, %v878_v57  ;;  %v912_v57 = vld [vmem:[#allocation9 + $0x198] sm:$0xff] }
 0x11c   :  { %4994 = vmatprep.subr.bf16.mxu0 %v4993_v0  ;;  %5026 = vmatprep.subr.bf16.mxu1 %v5025_v1  ;;  %v6894_v0 = vpack.c.bf16 %v875_v53, %v871_v52  ;;  %v877_v1 = vld [vmem:[#allocation9 + $0x80] sm:$0xff]  ;;  %v6954_v52 = vpack.c.bf16 %v908_v39, %v904_v38  ;;  %v914_v53 = vld [vmem:[#allocation9 + $0x1a8] sm:$0xff]  ;;  %v916_v58 = vld [vmem:[#allocation9 + $0x1b8] sm:$0xff] }
 0x11d   :  { %4692 = vmatmul.mubr.msk.f32.gmra.mrb[10].mxu0 %vm184_vm5, %v6585_v12  ;;  %4700 = vmatmul.mubr.msk.f32.gmra.mrb[10].mxu1 %vm184_vm5, %v6585_v12  ;;  %v6909_v14 = vpack.c.bf16 %v881_v2, %v877_v1  ;;  %v909_v1 = vld [vmem:[#allocation9 + $0x180] sm:$0xff] }
 0x11e   :  { %4996 = vmatpush1.bf16.msra.mxu0 %v4995_v8  ;;  %5028 = vmatpush1.bf16.msra.mxu1 %v5027_v9  ;;  %v886_v8 = vld [vmem:[#allocation9 + $0xc8] sm:$0xff]  ;;  %v539_v9 = vpop.permute.xlu0 %538  ;;  %v913_v2 = vld [vmem:[#allocation9 + $0x1a0] sm:$0xff] }
 0x11f   :  { %367 = vmatprep.mubr.f32.mxu0 %v6584_v5  ;;  %480 = vmatprep.mubr.f32.mxu1 %v6584_v5  ;;  %vm551_vm10 = vcmp.eq.s32.totalorder %v539_v9, %v6827_v60  ;;  %v6918_v20 = vpack.c.bf16 %v890_v10, %v886_v8  ;;  %v911_v8 = vld [vmem:[#allocation9 + $0x190] sm:$0xff]  ;;  %v918_v10 = vld [vmem:[#allocation9 + $0x1c8] sm:$0xff] }
 0x120   :  { %4998 = vmatprep.subr.bf16.mxu0 %v4997_v15  ;;  %5030 = vmatprep.subr.bf16.mxu1 %v5029_v16  ;;  %v6911_v15 = vpack.c.bf16 %v883_v4, %v879_v3  ;;  %v885_v16 = vld [vmem:[#allocation9 + $0xc0] sm:$0xff]  ;;  %v6966_v3 = vpack.c.bf16 %v914_v53, %v910_v50  ;;  %v6968_v4 = vpack.c.bf16 %v916_v58, %v912_v57  ;;  %v915_v9 = vld [vmem:[#allocation9 + $0x1b0] sm:$0xff] }
 0x121   :  { %4693 = vmatmul.mubr.msk.f32.gmra.mrb[12].mxu0 %vm185_vm6, %v6585_v12  ;;  %4701 = vmatmul.mubr.msk.f32.gmra.mrb[12].mxu1 %vm185_vm6, %v6585_v12  ;;  %v6926_v27 = vpack.c.bf16 %v889_v17, %v885_v16  ;;  %v924_v16 = vld [vmem:[#allocation9 + $0x1f8] sm:$0xff]  ;;  %v6977_v17 = vpack.c.bf16 %v913_v2, %v909_v1 }
 0x122   :  { %5000 = vmatpush1.bf16.msra.mxu0 %v4999_v22  ;;  %5032 = vmatpush1.bf16.msra.mxu1 %v5031_v23  ;;  %v894_v22 = vld [vmem:[#allocation9 + $0x108] sm:$0xff]  ;;  %v542_v23 = vpop.permute.xlu1 %541 }
 0x123   :  { %373 = vmatprep.mubr.f32.mxu0 %v6584_v5  ;;  %486 = vmatprep.mubr.f32.mxu1 %v6584_v5  ;;  %vm552_vm11 = vcmp.eq.s32.totalorder %v542_v23, %v6827_v60  ;;  %v6935_v33 = vpack.c.bf16 %v898_v24, %v894_v22  ;;  %v6985_v22 = vpack.c.bf16 %v924_v16, %v920_v13  ;;  %v921_v23 = vld [vmem:[#allocation9 + $0x1e0] sm:$0xff]  ;;  %v919_v24 = vld [vmem:[#allocation9 + $0x1d0] sm:$0xff] }
 0x124   :  { %5002 = vmatprep.subr.bf16.mxu0 %v5001_v28  ;;  %5034 = vmatprep.subr.bf16.mxu1 %v5033_v29  ;;  %v6928_v28 = vpack.c.bf16 %v891_v19, %v887_v18  ;;  %v893_v29 = vld [vmem:[#allocation9 + $0x100] sm:$0xff]  ;;  %v6979_v18 = vpack.c.bf16 %v915_v9, %v911_v8  ;;  %v6983_v19 = vpack.c.bf16 %v922_v11, %v918_v10 }
 0x125   :  { %4694 = vmatmul.mubr.msk.f32.gmra.mrb[14].mxu0 %vm186_vm7, %v6585_v12  ;;  %4702 = vmatmul.mubr.msk.f32.gmra.mrb[14].mxu1 %vm186_vm7, %v6585_v12  ;;  %v6943_v40 = vpack.c.bf16 %v897_v30, %v893_v29 }
 0x126   :  { %5004 = vmatpush1.bf16.msra.mxu0 %v5003_v35  ;;  %5036 = vmatpush1.bf16.msra.mxu1 %v5035_v36  ;;  %v902_v35 = vld [vmem:[#allocation9 + $0x148] sm:$0xff]  ;;  %v545_v36 = vpop.permute.xlu0 %544  ;;  %v548_v59 = vpop.permute.xlu1 %547 }
 0x127   :  { %695 = vmatprep.mubr.f32.mxu0 %v6584_v5  ;;  %796 = vmatprep.mubr.f32.mxu1 %v6584_v5  ;;  %vm553_vm12 = vcmp.eq.s32.totalorder %v545_v36, %v6827_v60  ;;  %v6952_v51 = vpack.c.bf16 %v906_v37, %v902_v35  ;;  %vm554_vm13 = vcmp.eq.s32.totalorder %v548_v59, %v6827_v60  ;;  %v917_v60 = vld [vmem:[#allocation9 + $0x1c0] sm:$0xff] }
 0x128   :  { %5038 = vmatprep.subr.bf16.mxu0 %v6869_v41  ;;  %5070 = vmatprep.subr.bf16.mxu1 %v6871_v42  ;;  %v6991_v25 = vpack.c.bf16 %v921_v23, %v917_v60 }
 0x129   :  { %4709 = vmatmul.mubr.msk.f32.vlgmr.msra.gmra.mrb[16].mxu0 %vm549_vm8, %v6585_v12  ;;  %4715 = vmatmul.mubr.msk.f32.vlgmr.msra.gmra.mrb[16].mxu1 %vm549_vm8, %v6585_v12 }
 0x12a   :  { %5040 = vmatpush1.bf16.msra.mxu0 %v6875_v48  ;;  %5072 = vmatpush1.bf16.msra.mxu1 %v6877_v49 }
 0x12b   :  { %701 = vmatprep.mubr.f32.mxu0 %v6584_v5  ;;  %802 = vmatprep.mubr.f32.mxu1 %v6584_v5 }
 0x12c   :  { %5042 = vmatprep.subr.bf16.mxu0 %v6884_v54  ;;  %5074 = vmatprep.subr.bf16.mxu1 %v6886_v56 }
 0x12d   :  { %4710 = vmatmul.mubr.msk.f32.gmra.mrb[18].mxu0 %vm550_vm9, %v6585_v12  ;;  %4716 = vmatmul.mubr.msk.f32.gmra.mrb[18].mxu1 %vm550_vm9, %v6585_v12 }
 0x12e   :  { %5044 = vmatpush1.bf16.msra.mxu0 %v6892_v63  ;;  %5076 = vmatpush1.bf16.msra.mxu1 %v6894_v0 }
 0x12f   :  { %707 = vmatprep.mubr.f32.mxu0 %v6584_v5  ;;  %808 = vmatprep.mubr.f32.mxu1 %v6584_v5 }
 0x130   :  { %5046 = vmatprep.subr.bf16.mxu0 %v6901_v6  ;;  %5078 = vmatprep.subr.bf16.mxu1 %v6903_v7 }
 0x131   :  { %4711 = vmatmul.mubr.msk.f32.gmra.mrb[20].mxu0 %vm551_vm10, %v6585_v12  ;;  %4717 = vmatmul.mubr.msk.f32.gmra.mrb[20].mxu1 %vm551_vm10, %v6585_v12 }
 0x132   :  { %5048 = vmatpush1.bf16.msra.mxu0 %v6909_v14  ;;  %5080 = vmatpush1.bf16.msra.mxu1 %v6911_v15 }
 0x133   :  { %713 = vmatprep.mubr.f32.mxu0 %v6584_v5  ;;  %814 = vmatprep.mubr.f32.mxu1 %v6584_v5 }
 0x134   :  { %5050 = vmatprep.subr.bf16.mxu0 %v6918_v20  ;;  %5082 = vmatprep.subr.bf16.mxu1 %v6920_v21 }
 0x135   :  { %4712 = vmatmul.mubr.msk.f32.gmra.mrb[22].mxu0 %vm552_vm11, %v6585_v12  ;;  %4718 = vmatmul.mubr.msk.f32.gmra.mrb[22].mxu1 %vm552_vm11, %v6585_v12 }
 0x136   :  { %5052 = vmatpush1.bf16.msra.mxu0 %v6926_v27  ;;  %5084 = vmatpush1.bf16.msra.mxu1 %v6928_v28 }
 0x137   :  { %719 = vmatprep.mubr.f32.mxu0 %v6584_v5  ;;  %820 = vmatprep.mubr.f32.mxu1 %v6584_v5 }
 0x138   :  { %5054 = vmatprep.subr.bf16.mxu0 %v6935_v33  ;;  %5086 = vmatprep.subr.bf16.mxu1 %v6937_v34 }
 0x139   :  { %4713 = vmatmul.mubr.msk.f32.gmra.mrb[24].mxu0 %vm553_vm12, %v6585_v12  ;;  %4719 = vmatmul.mubr.msk.f32.gmra.mrb[24].mxu1 %vm553_vm12, %v6585_v12 }
 0x13a   :  { %5056 = vmatpush1.bf16.msra.mxu0 %v6943_v40  ;;  %5088 = vmatpush1.bf16.msra.mxu1 %v6945_v43 }
 0x13b   :  { %725 = vmatprep.mubr.f32.mxu0 %v6584_v5  ;;  %826 = vmatprep.mubr.f32.mxu1 %v6584_v5 }
 0x13c   :  { %5058 = vmatprep.subr.bf16.mxu0 %v6952_v51  ;;  %5090 = vmatprep.subr.bf16.mxu1 %v6954_v52 }
 0x13d   :  { %4714 = vmatmul.mubr.msk.f32.gmra.mrb[26].mxu0 %vm554_vm13, %v6585_v12  ;;  %4720 = vmatmul.mubr.msk.f32.gmra.mrb[26].mxu1 %vm554_vm13, %v6585_v12  ;;  %v923_v12 = vld [vmem:[#allocation9 + $0x1f0] sm:$0xff] }
 0x13e   :  { %5060 = vmatpush1.bf16.msra.mxu0 %v6960_v61  ;;  %5092 = vmatpush1.bf16.msra.mxu1 %v6962_v62  ;;  %v6993_v26 = vpack.c.bf16 %v923_v12, %v919_v24 }
 0x13f   :  { %5062 = vmatprep.subr.bf16.mxu0 %v6966_v3  ;;  %5094 = vmatprep.subr.bf16.mxu1 %v6968_v4 }
 0x140   :  { %989 = vmatprep.mubr.f32.mxu0 %v6584_v5  ;;  %1060 = vmatprep.mubr.f32.mxu1 %v6584_v5 }
 0x142   :  { %5064 = vmatpush1.bf16.msra.mxu0 %v6977_v17  ;;  %5096 = vmatpush1.bf16.msra.mxu1 %v6979_v18 }
 0x143   :  { %5066 = vmatprep.subr.bf16.mxu0 %v6983_v19  ;;  %5098 = vmatprep.subr.bf16.mxu1 %v6985_v22 }
 0x146   :  { %5068 = vmatpush1.bf16.msra.mxu0 %v6991_v25  ;;  %5100 = vmatpush1.bf16.msra.mxu1 %v6993_v26 }
 0x147   :  { %5102 = vmatprep.subr.bf16.mxu0 %v6869_v41  ;;  %5134 = vmatprep.subr.bf16.mxu1 %v6871_v42 }
 0x149   :  { %990 = vmatmul.mubr.f32.vlgmr.msra.gmra.mrb[0].mxu0 %v6584_v5  ;;  %1061 = vmatmul.mubr.f32.vlgmr.msra.gmra.mrb[0].mxu1 %v6584_v5 }
 0x14a   :  { %5104 = vmatpush1.bf16.msra.mxu0 %v6875_v48  ;;  %5136 = vmatpush1.bf16.msra.mxu1 %v6877_v49 }
 0x14b   :  { %5106 = vmatprep.subr.bf16.mxu0 %v6884_v54  ;;  %5138 = vmatprep.subr.bf16.mxu1 %v6886_v56 }
 0x14c   :  { %1228 = vmatprep.mubr.f32.mxu0 %v6584_v5  ;;  %1299 = vmatprep.mubr.f32.mxu1 %v6584_v5 }
 0x14e   :  { %5108 = vmatpush1.bf16.msra.mxu0 %v6892_v63  ;;  %5140 = vmatpush1.bf16.msra.mxu1 %v6894_v0 }
 0x14f   :  { %5110 = vmatprep.subr.bf16.mxu0 %v6901_v6  ;;  %5142 = vmatprep.subr.bf16.mxu1 %v6903_v7 }
 0x152   :  { %5112 = vmatpush1.bf16.msra.mxu0 %v6909_v14  ;;  %5144 = vmatpush1.bf16.msra.mxu1 %v6911_v15 }
 0x153   :  { %5114 = vmatprep.subr.bf16.mxu0 %v6918_v20  ;;  %5146 = vmatprep.subr.bf16.mxu1 %v6920_v21 }
 0x156   :  { %5116 = vmatpush1.bf16.msra.mxu0 %v6926_v27  ;;  %5148 = vmatpush1.bf16.msra.mxu1 %v6928_v28 }
 0x157   :  { %5118 = vmatprep.subr.bf16.mxu0 %v6935_v33  ;;  %5150 = vmatprep.subr.bf16.mxu1 %v6937_v34 }
 0x15a   :  { %5120 = vmatpush1.bf16.msra.mxu0 %v6943_v40  ;;  %5152 = vmatpush1.bf16.msra.mxu1 %v6945_v43 }
 0x15b   :  { %5122 = vmatprep.subr.bf16.mxu0 %v6952_v51  ;;  %5154 = vmatprep.subr.bf16.mxu1 %v6954_v52 }
 0x15e   :  { %5124 = vmatpush1.bf16.msra.mxu0 %v6960_v61  ;;  %5156 = vmatpush1.bf16.msra.mxu1 %v6962_v62 }
 0x15f   :  { %5126 = vmatprep.subr.bf16.mxu0 %v6966_v3  ;;  %5158 = vmatprep.subr.bf16.mxu1 %v6968_v4 }
 0x162   :  { %5128 = vmatpush1.bf16.msra.mxu0 %v6977_v17  ;;  %5160 = vmatpush1.bf16.msra.mxu1 %v6979_v18 }
 0x163   :  { %5130 = vmatprep.subr.bf16.mxu0 %v6983_v19  ;;  %5162 = vmatprep.subr.bf16.mxu1 %v6985_v22 }
 0x166   :  { %5132 = vmatpush1.bf16.msra.mxu0 %v6991_v25  ;;  %5164 = vmatpush1.bf16.msra.mxu1 %v6993_v26 }
 0x167   :  { %5166 = vmatprep.subr.bf16.mxu0 %v6869_v41  ;;  %5198 = vmatprep.subr.bf16.mxu1 %v6871_v42 }
 0x21c   :  { %v991_v29 = vpop.f32.mrb[0].mxu0  ;;  %v1062_v30 = vpop.f32.mrb[0].mxu1 }
 0x21d   :  { %v4721_v31 = vmul.f32 -1.442695, %v991_v29  ;;  %v993_v32 = vpop.f32.mrb[1].mxu0  ;;  %v1064_v35 = vpop.f32.mrb[1].mxu1 }
 0x21e   :  { %v4722_v36 = vmul.f32 -1.442695, %v993_v32  ;;  %v4723_v37 = vmul.f32 -1.442695, %v1064_v35 }
 0x21f   :  { %6112 = vpow2.f32 %v4721_v31 }
 0x220   :  { %6114 = vpow2.f32 %v4722_v36 }
 0x221   :  { %6116 = vpow2.f32 %v4723_v37 }
 0x222   :  { %6118 = vtanh.f32 %v1062_v30 }
 0x229   :  { %v6113_v38 = vpop.eup %6112 }
 0x22a   :  { %v6115_v39 = vpop.eup %6114  ;;  %v1074_v44 = vadd.f32 1.0, %v6113_v38 }
 0x22b   :  { %v1080_v45 = vadd.f32 1.0, %v6115_v39  ;;  %v6117_v46 = vpop.eup %6116 }
 0x22c   :  { %6120 = vrcp.f32 %v1074_v44  ;;  %v6119_v47 = vpop.eup %6118  ;;  %v1087_v58 = vadd.f32 1.0, %v6117_v46 }
 0x22d   :  { %6122 = vrcp.f32 %v1080_v45 }
 0x22e   :  { %6124 = vrcp.f32 %v1087_v58  ;;  %v1826_v58 = vld [vmem:[#allocation9 + $0x48] sm:$0xff] }
 0x236   :  { %v6121_v50 = vpop.eup %6120 }
 0x237   :  { %v6123_v53 = vpop.eup %6122  ;;  %v1091_v57 = vmul.f32 %v6121_v50, %v6119_v47  ;;  %v1819_v50 = vld [vmem:[#allocation9 + $0x10] sm:$0xff] }
 0x238   :  { %v1090_v59 = vmul.f32 0.0, %v6123_v53  ;;  %v6125_v2 = vpop.eup %6124  ;;  %v1823_v53 = vld [vmem:[#allocation9 + $0x30] sm:$0xff] }
 0x23a   :  { %v7037_v1 = vadd.f32 %v1091_v57, %v1090_v59  ;;  %v7135_v57 = vpack.c.bf16 %v1823_v53, %v1819_v50  ;;  %v1830_v59 = vld [vmem:[#allocation9 + $0x68] sm:$0xff]  ;;  %v1864_v50 = vld [vmem:[#allocation9 + $0x178] sm:$0xff]  ;;  %v1857_v53 = vld [vmem:[#allocation9 + $0x140] sm:$0xff] }
 0x23c   :  { %6126 = vtanh.f32 %v7037_v1 }
 0x246   :  { %v6127_v8 = vpop.eup %6126 }
 0x247   :  { %v7040_v9 = vmul.f32 %v6127_v8, %v6125_v2  ;;  %v7140_v2 = vpack.c.bf16 %v1830_v59, %v1826_v58  ;;  %v1832_v8 = vld [vmem:[#allocation9 + $0x78] sm:$0xff]  ;;  %v1861_v58 = vld [vmem:[#allocation9 + $0x160] sm:$0xff] }
 0x249   :  { %1229 = vmatmul.mubr.f32.vlgmr.msra.gmra.mrb[2].mxu0 %v7040_v9  ;;  %1300 = vmatmul.mubr.f32.vlgmr.msra.gmra.mrb[2].mxu1 %v7040_v9 }
 0x24a   :  { %5168 = vmatpush1.bf16.msra.mxu0 %v6875_v48  ;;  %5200 = vmatpush1.bf16.msra.mxu1 %v6877_v49 }
 0x24b   :  { %5170 = vmatprep.subr.bf16.mxu0 %v6884_v54  ;;  %5202 = vmatprep.subr.bf16.mxu1 %v6886_v56 }
 0x24c   :  { %1467 = vmatprep.mubr.f32.mxu0 %v6584_v5  ;;  %1538 = vmatprep.mubr.f32.mxu1 %v6584_v5 }
 0x24e   :  { %5172 = vmatpush1.bf16.msra.mxu0 %v6892_v63  ;;  %5204 = vmatpush1.bf16.msra.mxu1 %v6894_v0 }
 0x24f   :  { %5174 = vmatprep.subr.bf16.mxu0 %v6901_v6  ;;  %5206 = vmatprep.subr.bf16.mxu1 %v6903_v7 }
 0x252   :  { %5176 = vmatpush1.bf16.msra.mxu0 %v6909_v14  ;;  %5208 = vmatpush1.bf16.msra.mxu1 %v6911_v15 }
 0x253   :  { %5178 = vmatprep.subr.bf16.mxu0 %v6918_v20  ;;  %5210 = vmatprep.subr.bf16.mxu1 %v6920_v21 }
 0x256   :  { %5180 = vmatpush1.bf16.msra.mxu0 %v6926_v27  ;;  %5212 = vmatpush1.bf16.msra.mxu1 %v6928_v28 }
 0x257   :  { %5182 = vmatprep.subr.bf16.mxu0 %v6935_v33  ;;  %5214 = vmatprep.subr.bf16.mxu1 %v6937_v34 }
 0x25a   :  { %5184 = vmatpush1.bf16.msra.mxu0 %v6943_v40  ;;  %5216 = vmatpush1.bf16.msra.mxu1 %v6945_v43 }
 0x25b   :  { %5186 = vmatprep.subr.bf16.mxu0 %v6952_v51  ;;  %5218 = vmatprep.subr.bf16.mxu1 %v6954_v52 }
 0x25e   :  { %5188 = vmatpush1.bf16.msra.mxu0 %v6960_v61  ;;  %5220 = vmatpush1.bf16.msra.mxu1 %v6962_v62 }
 0x25f   :  { %5190 = vmatprep.subr.bf16.mxu0 %v6966_v3  ;;  %5222 = vmatprep.subr.bf16.mxu1 %v6968_v4 }
 0x262   :  { %5192 = vmatpush1.bf16.msra.mxu0 %v6977_v17  ;;  %5224 = vmatpush1.bf16.msra.mxu1 %v6979_v18 }
 0x263   :  { %5194 = vmatprep.subr.bf16.mxu0 %v6983_v19  ;;  %5226 = vmatprep.subr.bf16.mxu1 %v6985_v22 }
 0x266   :  { %5196 = vmatpush1.bf16.msra.mxu0 %v6991_v25  ;;  %5228 = vmatpush1.bf16.msra.mxu1 %v6993_v26 }
 0x267   :  { %5230 = vmatprep.subr.bf16.mxu0 %v6869_v41  ;;  %5262 = vmatprep.subr.bf16.mxu1 %v6871_v42 }
 0x31c   :  { %v1230_v10 = vpop.f32.mrb[2].mxu0  ;;  %v1301_v11 = vpop.f32.mrb[2].mxu1 }
 0x31d   :  { %v4724_v13 = vmul.f32 -1.442695, %v1230_v10  ;;  %v1232_v16 = vpop.f32.mrb[3].mxu0  ;;  %v1303_v60 = vpop.f32.mrb[3].mxu1  ;;  %v1825_v10 = vld [vmem:[#allocation9 + $0x40] sm:$0xff] }
 0x31e   :  { %v4725_v23 = vmul.f32 -1.442695, %v1232_v16  ;;  %v4726_v24 = vmul.f32 -1.442695, %v1303_v60  ;;  %v1827_v60 = vld [vmem:[#allocation9 + $0x50] sm:$0xff] }
 0x31f   :  { %6128 = vpow2.f32 %v4724_v13 }
 0x320   :  { %6130 = vpow2.f32 %v4725_v23  ;;  %v1831_v23 = vld [vmem:[#allocation9 + $0x70] sm:$0xff] }
 0x321   :  { %6132 = vpow2.f32 %v4726_v24  ;;  %v7147_v24 = vpack.c.bf16 %v1831_v23, %v1827_v60  ;;  %v1870_v23 = vld [vmem:[#allocation9 + $0x1a8] sm:$0xff] }
 0x322   :  { %6134 = vtanh.f32 %v1301_v11  ;;  %v1829_v11 = vld [vmem:[#allocation9 + $0x60] sm:$0xff] }
 0x323   :  { %v7144_v16 = vpack.c.bf16 %v1829_v11, %v1825_v10  ;;  %v1863_v10 = vld [vmem:[#allocation9 + $0x170] sm:$0xff]  ;;  %v1866_v11 = vld [vmem:[#allocation9 + $0x188] sm:$0xff] }
 0x329   :  { %v6129_v12 = vpop.eup %6128 }
 0x32a   :  { %v6131_v29 = vpop.eup %6130  ;;  %v1313_v30 = vadd.f32 1.0, %v6129_v12  ;;  %v1834_v12 = vld [vmem:[#allocation9 + $0x88] sm:$0xff] }
 0x32b   :  { %v1319_v31 = vadd.f32 1.0, %v6131_v29  ;;  %v6133_v41 = vpop.eup %6132  ;;  %v1838_v29 = vld [vmem:[#allocation9 + $0xa8] sm:$0xff] }
 0x32c   :  { %6136 = vrcp.f32 %v1313_v30  ;;  %v6135_v32 = vpop.eup %6134  ;;  %v1326_v37 = vadd.f32 1.0, %v6133_v41  ;;  %v1836_v30 = vld [vmem:[#allocation9 + $0x98] sm:$0xff] }
 0x32d   :  { %6138 = vrcp.f32 %v1319_v31  ;;  %v7152_v31 = vpack.c.bf16 %v1838_v29, %v1834_v12  ;;  %v1840_v41 = vld [vmem:[#allocation9 + $0xb8] sm:$0xff] }
 0x32e   :  { %6140 = vrcp.f32 %v1326_v37  ;;  %v1835_v37 = vld [vmem:[#allocation9 + $0x90] sm:$0xff]  ;;  %v1868_v12 = vld [vmem:[#allocation9 + $0x198] sm:$0xff] }
 0x32f   :  { %v1872_v29 = vld [vmem:[#allocation9 + $0x1b8] sm:$0xff] }
 0x336   :  { %v6137_v42 = vpop.eup %6136 }
 0x337   :  { %v6139_v35 = vpop.eup %6138  ;;  %v1330_v36 = vmul.f32 %v6137_v42, %v6135_v32  ;;  %v1833_v32 = vld [vmem:[#allocation9 + $0x80] sm:$0xff] }
 0x338   :  { %v1329_v38 = vmul.f32 %v6139_v35, %v7037_v1  ;;  %v6141_v44 = vpop.eup %6140  ;;  %v1828_v1 = vld [vmem:[#allocation9 + $0x58] sm:$0xff]  ;;  %v1837_v42 = vld [vmem:[#allocation9 + $0xa0] sm:$0xff]  ;;  %v7154_v35 = vpack.c.bf16 %v1840_v41, %v1836_v30  ;;  %v7198_v30 = vpack.c.bf16 %v1870_v23, %v1866_v11  ;;  %v7200_v41 = vpack.c.bf16 %v1872_v29, %v1868_v12 }
 0x339   :  { %v7142_v13 = vpack.c.bf16 %v1832_v8, %v1828_v1  ;;  %v7192_v1 = vpack.c.bf16 %v1861_v58, %v1857_v53  ;;  %v1859_v8 = vld [vmem:[#allocation9 + $0x150] sm:$0xff] }
 0x33a   :  { %v7079_v39 = vadd.f32 %v1330_v36, %v1329_v38  ;;  %v7156_v36 = vpack.c.bf16 %v1837_v42, %v1833_v32  ;;  %v1839_v38 = vld [vmem:[#allocation9 + $0xb0] sm:$0xff]  ;;  %v7195_v60 = vpack.c.bf16 %v1863_v10, %v1859_v8  ;;  %v1865_v32 = vld [vmem:[#allocation9 + $0x180] sm:$0xff] }
 0x33b   :  { %v1869_v42 = vld [vmem:[#allocation9 + $0x1a0] sm:$0xff] }
 0x33c   :  { %6142 = vtanh.f32 %v7079_v39 }
 0x346   :  { %v6143_v45 = vpop.eup %6142 }
 0x347   :  { %v7082_v46 = vmul.f32 %v6143_v45, %v6141_v44  ;;  %v1842_v44 = vld [vmem:[#allocation9 + $0xc8] sm:$0xff] }
 0x348   :  { %v1846_v45 = vld [vmem:[#allocation9 + $0xe8] sm:$0xff] }
 0x349   :  { %1468 = vmatmul.mubr.f32.vlgmr.msra.gmra.mrb[4].mxu0 %v7082_v46  ;;  %1539 = vmatmul.mubr.f32.vlgmr.msra.gmra.mrb[4].mxu1 %v7082_v46 }
 0x34a   :  { %5232 = vmatpush1.bf16.msra.mxu0 %v6875_v48  ;;  %5264 = vmatpush1.bf16.msra.mxu1 %v6877_v49 }
 0x34b   :  { %5234 = vmatprep.subr.bf16.mxu0 %v6884_v54  ;;  %5266 = vmatprep.subr.bf16.mxu1 %v6886_v56 }
 0x34c   :  { %1706 = vmatprep.mubr.f32.mxu0 %v6584_v5  ;;  %1777 = vmatprep.mubr.f32.mxu1 %v6584_v5 }
 0x34e   :  { %5236 = vmatpush1.bf16.msra.mxu0 %v6892_v63  ;;  %5268 = vmatpush1.bf16.msra.mxu1 %v6894_v0 }
 0x34f   :  { %5238 = vmatprep.subr.bf16.mxu0 %v6901_v6  ;;  %5270 = vmatprep.subr.bf16.mxu1 %v6903_v7 }
 0x352   :  { %5240 = vmatpush1.bf16.msra.mxu0 %v6909_v14  ;;  %5272 = vmatpush1.bf16.msra.mxu1 %v6911_v15 }
 0x353   :  { %5242 = vmatprep.subr.bf16.mxu0 %v6918_v20  ;;  %5274 = vmatprep.subr.bf16.mxu1 %v6920_v21 }
 0x356   :  { %5244 = vmatpush1.bf16.msra.mxu0 %v6926_v27  ;;  %5276 = vmatpush1.bf16.msra.mxu1 %v6928_v28 }
 0x357   :  { %5246 = vmatprep.subr.bf16.mxu0 %v6935_v33  ;;  %5278 = vmatprep.subr.bf16.mxu1 %v6937_v34 }
 0x35a   :  { %5248 = vmatpush1.bf16.msra.mxu0 %v6943_v40  ;;  %5280 = vmatpush1.bf16.msra.mxu1 %v6945_v43 }
 0x35b   :  { %5250 = vmatprep.subr.bf16.mxu0 %v6952_v51  ;;  %5282 = vmatprep.subr.bf16.mxu1 %v6954_v52 }
 0x35e   :  { %5252 = vmatpush1.bf16.msra.mxu0 %v6960_v61  ;;  %5284 = vmatpush1.bf16.msra.mxu1 %v6962_v62 }
 0x35f   :  { %5254 = vmatprep.subr.bf16.mxu0 %v6966_v3  ;;  %5286 = vmatprep.subr.bf16.mxu1 %v6968_v4  ;;  %v1818_v3 = vld [vmem:[#allocation9 + $0x8] sm:$0xff] }
 0x360   :  { %v1822_v4 = vld [vmem:[#allocation9 + $0x28] sm:$0xff] }
 0x362   :  { %5256 = vmatpush1.bf16.msra.mxu0 %v6977_v17  ;;  %5288 = vmatpush1.bf16.msra.mxu1 %v6979_v18  ;;  %v1820_v17 = vld [vmem:[#allocation9 + $0x18] sm:$0xff]  ;;  %v7128_v18 = vpack.c.bf16 %v1822_v4, %v1818_v3  ;;  %v1855_v3 = vld [vmem:[#allocation9 + $0x130] sm:$0xff] }
 0x363   :  { %5258 = vmatprep.subr.bf16.mxu0 %v6983_v19  ;;  %5290 = vmatprep.subr.bf16.mxu1 %v6985_v22  ;;  %v1824_v19 = vld [vmem:[#allocation9 + $0x38] sm:$0xff]  ;;  %v1817_v22 = vld [vmem:[#allocation9] sm:$0xff] }
 0x366   :  { %5260 = vmatpush1.bf16.msra.mxu0 %v6991_v25  ;;  %5292 = vmatpush1.bf16.msra.mxu1 %v6993_v26  ;;  %v1821_v25 = vld [vmem:[#allocation9 + $0x20] sm:$0xff]  ;;  %v7130_v26 = vpack.c.bf16 %v1824_v19, %v1820_v17  ;;  %v1858_v17 = vld [vmem:[#allocation9 + $0x148] sm:$0xff] }
 0x367   :  { %v7132_v47 = vpack.c.bf16 %v1821_v25, %v1817_v22  ;;  %5294 = vmatprep.subr.bf16.mxu0 %v7128_v18  ;;  %v1862_v19 = vld [vmem:[#allocation9 + $0x168] sm:$0xff]  ;;  %v1860_v22 = vld [vmem:[#allocation9 + $0x158] sm:$0xff] }
 0x368   :  { %5326 = vmatprep.subr.bf16.mxu1 %v7130_v26  ;;  %v7187_v25 = vpack.c.bf16 %v1862_v19, %v1858_v17  ;;  %v7190_v59 = vpack.c.bf16 %v1864_v50, %v1860_v22 }
 0x41c   :  { %v1469_v48 = vpop.f32.mrb[4].mxu0  ;;  %v1540_v49 = vpop.f32.mrb[4].mxu1 }
 0x41d   :  { %v4727_v54 = vmul.f32 -1.442695, %v1469_v48  ;;  %v1471_v56 = vpop.f32.mrb[5].mxu0  ;;  %v1542_v63 = vpop.f32.mrb[5].mxu1  ;;  %v1844_v48 = vld [vmem:[#allocation9 + $0xd8] sm:$0xff] }
 0x41e   :  { %v4728_v0 = vmul.f32 -1.442695, %v1471_v56  ;;  %v4729_v6 = vmul.f32 -1.442695, %v1542_v63  ;;  %v1841_v56 = vld [vmem:[#allocation9 + $0xc0] sm:$0xff] }
 0x41f   :  { %6144 = vpow2.f32 %v4727_v54  ;;  %v1848_v54 = vld [vmem:[#allocation9 + $0xf8] sm:$0xff]  ;;  %v1845_v63 = vld [vmem:[#allocation9 + $0xe0] sm:$0xff] }
 0x420   :  { %6146 = vpow2.f32 %v4728_v0  ;;  %v7166_v0 = vpack.c.bf16 %v1848_v54, %v1844_v48  ;;  %v1878_v48 = vld [vmem:[#allocation9 + $0x1e8] sm:$0xff] }
 0x421   :  { %6148 = vpow2.f32 %v4729_v6  ;;  %v7168_v6 = vpack.c.bf16 %v1845_v63, %v1841_v56  ;;  %v1876_v63 = vld [vmem:[#allocation9 + $0x1d8] sm:$0xff] }
 0x422   :  { %6150 = vtanh.f32 %v1540_v49  ;;  %v7164_v49 = vpack.c.bf16 %v1846_v45, %v1842_v44  ;;  %v1871_v44 = vld [vmem:[#allocation9 + $0x1b0] sm:$0xff]  ;;  %v1874_v45 = vld [vmem:[#allocation9 + $0x1c8] sm:$0xff] }
 0x423   :  { %v7209_v56 = vpack.c.bf16 %v1878_v48, %v1874_v45 }
 0x429   :  { %v6145_v7 = vpop.eup %6144 }
 0x42a   :  { %v6147_v14 = vpop.eup %6146  ;;  %v1552_v15 = vadd.f32 1.0, %v6145_v7  ;;  %v1843_v7 = vld [vmem:[#allocation9 + $0xd0] sm:$0xff] }
 0x42b   :  { %v1558_v20 = vadd.f32 1.0, %v6147_v14  ;;  %v6149_v21 = vpop.eup %6148  ;;  %v1847_v14 = vld [vmem:[#allocation9 + $0xf0] sm:$0xff] }
 0x42c   :  { %6152 = vrcp.f32 %v1552_v15  ;;  %v6151_v27 = vpop.eup %6150  ;;  %v1565_v40 = vadd.f32 1.0, %v6149_v21  ;;  %v7171_v15 = vpack.c.bf16 %v1847_v14, %v1843_v7  ;;  %v1854_v21 = vld [vmem:[#allocation9 + $0x128] sm:$0xff]  ;;  %v1880_v7 = vld [vmem:[#allocation9 + $0x1f8] sm:$0xff]  ;;  %v1873_v14 = vld [vmem:[#allocation9 + $0x1c0] sm:$0xff] }
 0x42d   :  { %6154 = vrcp.f32 %v1558_v20  ;;  %v1850_v20 = vld [vmem:[#allocation9 + $0x108] sm:$0xff] }
 0x42e   :  { %6156 = vrcp.f32 %v1565_v40  ;;  %v1853_v40 = vld [vmem:[#allocation9 + $0x120] sm:$0xff] }
 0x436   :  { %v6153_v28 = vpop.eup %6152 }
 0x437   :  { %v6155_v33 = vpop.eup %6154  ;;  %v1569_v34 = vmul.f32 %v6153_v28, %v6151_v27  ;;  %v1852_v27 = vld [vmem:[#allocation9 + $0x118] sm:$0xff]  ;;  %v7176_v28 = vpack.c.bf16 %v1854_v21, %v1850_v20  ;;  %v7212_v20 = vpack.c.bf16 %v1880_v7, %v1876_v63  ;;  %v1877_v21 = vld [vmem:[#allocation9 + $0x1e0] sm:$0xff] }
 0x438   :  { %v1568_v43 = vmul.f32 %v6155_v33, %v7079_v39  ;;  %v6157_v52 = vpop.eup %6156  ;;  %v7159_v39 = vpack.c.bf16 %v1839_v38, %v1835_v37  ;;  %v1856_v33 = vld [vmem:[#allocation9 + $0x138] sm:$0xff]  ;;  %v1867_v37 = vld [vmem:[#allocation9 + $0x190] sm:$0xff]  ;;  %v7203_v38 = vpack.c.bf16 %v1869_v42, %v1865_v32 }
 0x439   :  { %v7207_v54 = vpack.c.bf16 %v1871_v44, %v1867_v37 }
 0x43a   :  { %v7119_v51 = vadd.f32 %v1569_v34, %v1568_v43  ;;  %v1849_v34 = vld [vmem:[#allocation9 + $0x100] sm:$0xff]  ;;  %v7178_v43 = vpack.c.bf16 %v1856_v33, %v1852_v27  ;;  %v1875_v27 = vld [vmem:[#allocation9 + $0x1d0] sm:$0xff] }
 0x43b   :  { %v1879_v33 = vld [vmem:[#allocation9 + $0x1f0] sm:$0xff] }
 0x43c   :  { %6158 = vtanh.f32 %v7119_v51 }
 0x446   :  { %v6159_v61 = vpop.eup %6158 }
 0x447   :  { %v7122_v62 = vmul.f32 %v6159_v61, %v6157_v52  ;;  %v7180_v52 = vpack.c.bf16 %v1853_v40, %v1849_v34  ;;  %v1851_v61 = vld [vmem:[#allocation9 + $0x110] sm:$0xff]  ;;  %v7215_v34 = vpack.c.bf16 %v1877_v21, %v1873_v14  ;;  %v7219_v40 = vpack.c.bf16 %v1879_v33, %v1875_v27 }
 0x448   :  { %v7183_v4 = vpack.c.bf16 %v1855_v3, %v1851_v61 }
 0x449   :  { %1707 = vmatmul.mubr.f32.vlgmr.msra.gmra.mrb[6].mxu0 %v7122_v62  ;;  %1778 = vmatmul.mubr.f32.vlgmr.msra.gmra.mrb[6].mxu1 %v7122_v62 }
 0x44a   :  { %1945 = vmatprep.mubr.f32.mxu0 %v6584_v5  ;;  %2016 = vmatprep.mubr.f32.mxu1 %v6584_v5 }
 0x44b   :  { %5296 = vmatpush1.bf16.msra.mxu0 %v7132_v47  ;;  %5328 = vmatpush1.bf16.msra.mxu1 %v7135_v57 }
 0x44c   :  { %5298 = vmatprep.subr.bf16.mxu0 %v7140_v2  ;;  %5330 = vmatprep.subr.bf16.mxu1 %v7142_v13 }
 0x44f   :  { %5300 = vmatpush1.bf16.msra.mxu0 %v7144_v16  ;;  %5332 = vmatpush1.bf16.msra.mxu1 %v7147_v24 }
 0x450   :  { %5302 = vmatprep.subr.bf16.mxu0 %v7152_v31  ;;  %5334 = vmatprep.subr.bf16.mxu1 %v7154_v35 }
 0x453   :  { %5304 = vmatpush1.bf16.msra.mxu0 %v7156_v36  ;;  %5336 = vmatpush1.bf16.msra.mxu1 %v7159_v39 }
 0x454   :  { %5306 = vmatprep.subr.bf16.mxu0 %v7164_v49  ;;  %5338 = vmatprep.subr.bf16.mxu1 %v7166_v0 }
 0x457   :  { %5308 = vmatpush1.bf16.msra.mxu0 %v7168_v6  ;;  %5340 = vmatpush1.bf16.msra.mxu1 %v7171_v15 }
 0x458   :  { %5310 = vmatprep.subr.bf16.mxu0 %v7176_v28  ;;  %5342 = vmatprep.subr.bf16.mxu1 %v7178_v43 }
 0x45b   :  { %5312 = vmatpush1.bf16.msra.mxu0 %v7180_v52  ;;  %5344 = vmatpush1.bf16.msra.mxu1 %v7183_v4 }
 0x45c   :  { %5314 = vmatprep.subr.bf16.mxu0 %v7187_v25  ;;  %5346 = vmatprep.subr.bf16.mxu1 %v7190_v59 }
 0x45f   :  { %5316 = vmatpush1.bf16.msra.mxu0 %v7192_v1  ;;  %5348 = vmatpush1.bf16.msra.mxu1 %v7195_v60 }
 0x460   :  { %5318 = vmatprep.subr.bf16.mxu0 %v7198_v30  ;;  %5350 = vmatprep.subr.bf16.mxu1 %v7200_v41 }
 0x463   :  { %5320 = vmatpush1.bf16.msra.mxu0 %v7203_v38  ;;  %5352 = vmatpush1.bf16.msra.mxu1 %v7207_v54 }
 0x464   :  { %5322 = vmatprep.subr.bf16.mxu0 %v7209_v56  ;;  %5354 = vmatprep.subr.bf16.mxu1 %v7212_v20 }
 0x467   :  { %5324 = vmatpush1.bf16.msra.mxu0 %v7215_v34  ;;  %5356 = vmatpush1.bf16.msra.mxu1 %v7219_v40 }
 0x468   :  { %5358 = vmatprep.subr.bf16.mxu0 %v7128_v18  ;;  %5390 = vmatprep.subr.bf16.mxu1 %v7130_v26 }
 0x51c   :  { %v1708_v61 = vpop.f32.mrb[6].mxu0  ;;  %v1779_v3 = vpop.f32.mrb[6].mxu1 }
 0x51d   :  { %v4730_v17 = vmul.f32 -1.442695, %v1708_v61  ;;  %v1710_v19 = vpop.f32.mrb[7].mxu0  ;;  %v1781_v22 = vpop.f32.mrb[7].mxu1 }
 0x51e   :  { %v4731_v50 = vmul.f32 -1.442695, %v1710_v19  ;;  %v4732_v53 = vmul.f32 -1.442695, %v1781_v22 }
 0x51f   :  { %6160 = vpow2.f32 %v4730_v17 }
 0x520   :  { %6162 = vpow2.f32 %v4731_v50 }
 0x521   :  { %6164 = vpow2.f32 %v4732_v53 }
 0x522   :  { %6166 = vtanh.f32 %v1779_v3 }
 0x529   :  { %v6161_v58 = vpop.eup %6160 }
 0x52a   :  { %v6163_v8 = vpop.eup %6162  ;;  %v1791_v10 = vadd.f32 1.0, %v6161_v58 }
 0x52b   :  { %v1797_v11 = vadd.f32 1.0, %v6163_v8  ;;  %v6165_v23 = vpop.eup %6164 }
 0x52c   :  { %6168 = vrcp.f32 %v1791_v10  ;;  %v6167_v12 = vpop.eup %6166  ;;  %v1804_v37 = vadd.f32 1.0, %v6165_v23 }
 0x52d   :  { %6170 = vrcp.f32 %v1797_v11 }
 0x52e   :  { %6172 = vrcp.f32 %v1804_v37 }
 0x536   :  { %v6169_v29 = vpop.eup %6168 }
 0x537   :  { %v6171_v32 = vpop.eup %6170  ;;  %v1808_v42 = vmul.f32 %v6169_v29, %v6167_v12 }
 0x538   :  { %v1807_v44 = vmul.f32 %v6171_v32, %v7119_v51  ;;  %v6173_v48 = vpop.eup %6172 }
 0x53a   :  { %v7227_v45 = vadd.f32 %v1808_v42, %v1807_v44 }
 0x53c   :  { %6174 = vtanh.f32 %v7227_v45 }
 0x546   :  { %v6175_v63 = vpop.eup %6174 }
 0x547   :  { %v7230_v7 = vmul.f32 %v6175_v63, %v6173_v48 }
 0x549   :  { %1946 = vmatmul.mubr.f32.vlgmr.msra.gmra.mrb[8].mxu0 %v7230_v7  ;;  %2017 = vmatmul.mubr.f32.vlgmr.msra.gmra.mrb[8].mxu1 %v7230_v7 }
 0x54a   :  { %5360 = vmatpush1.bf16.msra.mxu0 %v7132_v47  ;;  %5392 = vmatpush1.bf16.msra.mxu1 %v7135_v57 }
 0x54b   :  { %5362 = vmatprep.subr.bf16.mxu0 %v7140_v2  ;;  %5394 = vmatprep.subr.bf16.mxu1 %v7142_v13 }
 0x54c   :  { %2184 = vmatprep.mubr.f32.mxu0 %v6584_v5  ;;  %2255 = vmatprep.mubr.f32.mxu1 %v6584_v5 }
 0x54e   :  { %5364 = vmatpush1.bf16.msra.mxu0 %v7144_v16  ;;  %5396 = vmatpush1.bf16.msra.mxu1 %v7147_v24 }
 0x54f   :  { %5366 = vmatprep.subr.bf16.mxu0 %v7152_v31  ;;  %5398 = vmatprep.subr.bf16.mxu1 %v7154_v35 }
 0x552   :  { %5368 = vmatpush1.bf16.msra.mxu0 %v7156_v36  ;;  %5400 = vmatpush1.bf16.msra.mxu1 %v7159_v39 }
 0x553   :  { %5370 = vmatprep.subr.bf16.mxu0 %v7164_v49  ;;  %5402 = vmatprep.subr.bf16.mxu1 %v7166_v0 }
 0x556   :  { %5372 = vmatpush1.bf16.msra.mxu0 %v7168_v6  ;;  %5404 = vmatpush1.bf16.msra.mxu1 %v7171_v15 }
 0x557   :  { %5374 = vmatprep.subr.bf16.mxu0 %v7176_v28  ;;  %5406 = vmatprep.subr.bf16.mxu1 %v7178_v43 }
 0x55a   :  { %5376 = vmatpush1.bf16.msra.mxu0 %v7180_v52  ;;  %5408 = vmatpush1.bf16.msra.mxu1 %v7183_v4 }
 0x55b   :  { %5378 = vmatprep.subr.bf16.mxu0 %v7187_v25  ;;  %5410 = vmatprep.subr.bf16.mxu1 %v7190_v59 }
 0x55e   :  { %5380 = vmatpush1.bf16.msra.mxu0 %v7192_v1  ;;  %5412 = vmatpush1.bf16.msra.mxu1 %v7195_v60 }
 0x55f   :  { %5382 = vmatprep.subr.bf16.mxu0 %v7198_v30  ;;  %5414 = vmatprep.subr.bf16.mxu1 %v7200_v41 }
 0x562   :  { %5384 = vmatpush1.bf16.msra.mxu0 %v7203_v38  ;;  %5416 = vmatpush1.bf16.msra.mxu1 %v7207_v54 }
 0x563   :  { %5386 = vmatprep.subr.bf16.mxu0 %v7209_v56  ;;  %5418 = vmatprep.subr.bf16.mxu1 %v7212_v20 }
 0x566   :  { %5388 = vmatpush1.bf16.msra.mxu0 %v7215_v34  ;;  %5420 = vmatpush1.bf16.msra.mxu1 %v7219_v40 }
 0x567   :  { %5422 = vmatprep.subr.bf16.mxu0 %v7128_v18  ;;  %5454 = vmatprep.subr.bf16.mxu1 %v7130_v26 }
 0x61c   :  { %v1947_v51 = vpop.f32.mrb[8].mxu0  ;;  %v2018_v14 = vpop.f32.mrb[8].mxu1 }
 0x61d   :  { %v4733_v21 = vmul.f32 -1.442695, %v1947_v51  ;;  %v1949_v27 = vpop.f32.mrb[9].mxu0  ;;  %v2020_v33 = vpop.f32.mrb[9].mxu1 }
 0x61e   :  { %v4734_v61 = vmul.f32 -1.442695, %v1949_v27  ;;  %v4735_v3 = vmul.f32 -1.442695, %v2020_v33 }
 0x61f   :  { %6176 = vpow2.f32 %v4733_v21 }
 0x620   :  { %6178 = vpow2.f32 %v4734_v61 }
 0x621   :  { %6180 = vpow2.f32 %v4735_v3 }
 0x622   :  { %6182 = vtanh.f32 %v2018_v14 }
 0x629   :  { %v6177_v17 = vpop.eup %6176 }
 0x62a   :  { %v6179_v19 = vpop.eup %6178  ;;  %v2030_v22 = vadd.f32 1.0, %v6177_v17 }
 0x62b   :  { %v2036_v50 = vadd.f32 1.0, %v6179_v19  ;;  %v6181_v53 = vpop.eup %6180 }
 0x62c   :  { %6184 = vrcp.f32 %v2030_v22  ;;  %v6183_v58 = vpop.eup %6182  ;;  %v2043_v23 = vadd.f32 1.0, %v6181_v53 }
 0x62d   :  { %6186 = vrcp.f32 %v2036_v50 }
 0x62e   :  { %6188 = vrcp.f32 %v2043_v23 }
 0x636   :  { %v6185_v8 = vpop.eup %6184 }
 0x637   :  { %v6187_v10 = vpop.eup %6186  ;;  %v2047_v11 = vmul.f32 %v6185_v8, %v6183_v58 }
 0x638   :  { %v2046_v12 = vmul.f32 %v6187_v10, %v7227_v45  ;;  %v6189_v32 = vpop.eup %6188 }
 0x63a   :  { %v7269_v29 = vadd.f32 %v2047_v11, %v2046_v12  ;;  %v2856_v12 = vld [vmem:[#allocation11 + $0x20] sm:$0xff] }
 0x63c   :  { %6190 = vtanh.f32 %v7269_v29 }
 0x646   :  { %v6191_v42 = vpop.eup %6190 }
 0x647   :  { %v7272_v37 = vmul.f32 %v6191_v42, %v6189_v32  ;;  %v2861_v32 = vld [vmem:[#allocation11 + $0x48] sm:$0xff]  ;;  %v2863_v42 = vld [vmem:[#allocation11 + $0x58] sm:$0xff] }
 0x649   :  { %2185 = vmatmul.mubr.f32.vlgmr.msra.gmra.mrb[10].mxu0 %v7272_v37  ;;  %2256 = vmatmul.mubr.f32.vlgmr.msra.gmra.mrb[10].mxu1 %v7272_v37 }
 0x64a   :  { %5424 = vmatpush1.bf16.msra.mxu0 %v7132_v47  ;;  %5456 = vmatpush1.bf16.msra.mxu1 %v7135_v57 }
 0x64b   :  { %5426 = vmatprep.subr.bf16.mxu0 %v7140_v2  ;;  %5458 = vmatprep.subr.bf16.mxu1 %v7142_v13 }
 0x64c   :  { %2423 = vmatprep.mubr.f32.mxu0 %v6584_v5  ;;  %2494 = vmatprep.mubr.f32.mxu1 %v6584_v5 }
 0x64e   :  { %5428 = vmatpush1.bf16.msra.mxu0 %v7144_v16  ;;  %5460 = vmatpush1.bf16.msra.mxu1 %v7147_v24 }
 0x64f   :  { %5430 = vmatprep.subr.bf16.mxu0 %v7152_v31  ;;  %5462 = vmatprep.subr.bf16.mxu1 %v7154_v35 }
 0x652   :  { %5432 = vmatpush1.bf16.msra.mxu0 %v7156_v36  ;;  %5464 = vmatpush1.bf16.msra.mxu1 %v7159_v39 }
 0x653   :  { %5434 = vmatprep.subr.bf16.mxu0 %v7164_v49  ;;  %5466 = vmatprep.subr.bf16.mxu1 %v7166_v0 }
 0x656   :  { %5436 = vmatpush1.bf16.msra.mxu0 %v7168_v6  ;;  %5468 = vmatpush1.bf16.msra.mxu1 %v7171_v15 }
 0x657   :  { %5438 = vmatprep.subr.bf16.mxu0 %v7176_v28  ;;  %5470 = vmatprep.subr.bf16.mxu1 %v7178_v43 }
 0x65a   :  { %5440 = vmatpush1.bf16.msra.mxu0 %v7180_v52  ;;  %5472 = vmatpush1.bf16.msra.mxu1 %v7183_v4 }
 0x65b   :  { %5442 = vmatprep.subr.bf16.mxu0 %v7187_v25  ;;  %5474 = vmatprep.subr.bf16.mxu1 %v7190_v59 }
 0x65e   :  { %5444 = vmatpush1.bf16.msra.mxu0 %v7192_v1  ;;  %5476 = vmatpush1.bf16.msra.mxu1 %v7195_v60 }
 0x65f   :  { %5446 = vmatprep.subr.bf16.mxu0 %v7198_v30  ;;  %5478 = vmatprep.subr.bf16.mxu1 %v7200_v41 }
 0x662   :  { %5448 = vmatpush1.bf16.msra.mxu0 %v7203_v38  ;;  %5480 = vmatpush1.bf16.msra.mxu1 %v7207_v54 }
 0x663   :  { %5450 = vmatprep.subr.bf16.mxu0 %v7209_v56  ;;  %5482 = vmatprep.subr.bf16.mxu1 %v7212_v20 }
 0x666   :  { %5452 = vmatpush1.bf16.msra.mxu0 %v7215_v34  ;;  %5484 = vmatpush1.bf16.msra.mxu1 %v7219_v40 }
 0x667   :  { %5486 = vmatprep.subr.bf16.mxu0 %v7128_v18  ;;  %5518 = vmatprep.subr.bf16.mxu1 %v7130_v26 }
 0x71c   :  { %v2186_v44 = vpop.f32.mrb[10].mxu0  ;;  %v2257_v45 = vpop.f32.mrb[10].mxu1 }
 0x71d   :  { %v4736_v48 = vmul.f32 -1.442695, %v2186_v44  ;;  %v2188_v63 = vpop.f32.mrb[11].mxu0  ;;  %v2259_v51 = vpop.f32.mrb[11].mxu1  ;;  %v5569_v44 = vpack.c.bf16 %v2863_v42, %v2861_v32  ;;  %v2769_v42 = vld [vmem:[%s7857_s2] sm:$0xff] }
 0x71e   :  { %v4737_v14 = vmul.f32 -1.442695, %v2188_v63  ;;  %v4738_v21 = vmul.f32 -1.442695, %v2259_v51  ;;  %v2865_v63 = vld [vmem:[#allocation11 + $0x68] sm:$0xff]  ;;  %v2867_v51 = vld [vmem:[#allocation11 + $0x78] sm:$0xff] }
 0x71f   :  { %6192 = vpow2.f32 %v4736_v48  ;;  %v2862_v48 = vld [vmem:[#allocation11 + $0x50] sm:$0xff] }
 0x720   :  { %6194 = vpow2.f32 %v4737_v14 }
 0x721   :  { %6196 = vpow2.f32 %v4738_v21  ;;  %v5573_v21 = vpack.c.bf16 %v2867_v51, %v2865_v63 }
 0x722   :  { %6198 = vtanh.f32 %v2257_v45  ;;  %v2860_v45 = vld [vmem:[#allocation11 + $0x40] sm:$0xff] }
 0x723   :  { %v5571_v14 = vpack.c.bf16 %v2862_v48, %v2860_v45  ;;  %v2978_v45 = vld [vmem:[%s7863_s8 + $0x18] sm:$0xff] }
 0x729   :  { %v6193_v27 = vpop.eup %6192 }
 0x72a   :  { %v6195_v33 = vpop.eup %6194  ;;  %v2269_v61 = vadd.f32 1.0, %v6193_v27  ;;  %v2864_v27 = vld [vmem:[#allocation11 + $0x60] sm:$0xff] }
 0x72b   :  { %v2275_v3 = vadd.f32 1.0, %v6195_v33  ;;  %v6197_v18 = vpop.eup %6196  ;;  %v2866_v33 = vld [vmem:[#allocation11 + $0x70] sm:$0xff] }
 0x72c   :  { %6200 = vrcp.f32 %v2269_v61  ;;  %v6199_v17 = vpop.eup %6198  ;;  %v2282_v50 = vadd.f32 1.0, %v6197_v18  ;;  %v2869_v61 = vld [vmem:[#allocation11 + $0x88] sm:$0xff]  ;;  %v5575_v18 = vpack.c.bf16 %v2866_v33, %v2864_v27  ;;  %v2981_v33 = vld [vmem:[%s7863_s8 + $0x30] sm:$0xff] }
 0x72d   :  { %6202 = vrcp.f32 %v2275_v3  ;;  %v2871_v3 = vld [vmem:[#allocation11 + $0x98] sm:$0xff] }
 0x72e   :  { %6204 = vrcp.f32 %v2282_v50  ;;  %v2875_v50 = vld [vmem:[#allocation11 + $0xb8] sm:$0xff] }
 0x736   :  { %v6201_v26 = vpop.eup %6200 }
 0x737   :  { %v6203_v19 = vpop.eup %6202  ;;  %v2286_v22 = vmul.f32 %v6201_v26, %v6199_v17  ;;  %v5577_v17 = vpack.c.bf16 %v2871_v3, %v2869_v61  ;;  %v2868_v26 = vld [vmem:[#allocation11 + $0x80] sm:$0xff]  ;;  %v2982_v61 = vld [vmem:[%s7863_s8 + $0x38] sm:$0xff] }
 0x738   :  { %v2285_v53 = vmul.f32 %v6203_v19, %v7269_v29  ;;  %v6205_v8 = vpop.eup %6204  ;;  %v2858_v29 = vld [vmem:[#allocation11 + $0x30] sm:$0xff]  ;;  %v5603_v3 = vpack.c.bf16 %v2982_v61, %v2981_v33  ;;  %v2887_v61 = vshrl.u32 %v145_v55, 7  ;;  %v3076_v55 = vld [vmem:[#allocation15 + $0x20] sm:$0xff] }
 0x739   :  { %v2870_v19 = vld [vmem:[#allocation11 + $0x90] sm:$0xff] }
 0x73a   :  { %v7311_v58 = vadd.f32 %v2286_v22, %v2285_v53  ;;  %v2873_v22 = vld [vmem:[#allocation11 + $0xa8] sm:$0xff]  ;;  %v5579_v53 = vpack.c.bf16 %v2870_v19, %v2868_v26  ;;  %v2985_v19 = vld [vmem:[%s7863_s8 + $0x50] sm:$0xff] }
 0x73c   :  { %6206 = vtanh.f32 %v7311_v58 }
 0x746   :  { %v6207_v10 = vpop.eup %6206 }
 0x747   :  { %v7314_v11 = vmul.f32 %v6207_v10, %v6205_v8  ;;  %v2872_v8 = vld [vmem:[#allocation11 + $0xa0] sm:$0xff]  ;;  %v2874_v10 = vld [vmem:[#allocation11 + $0xb0] sm:$0xff] }
 0x749   :  { %2424 = vmatmul.mubr.f32.vlgmr.msra.gmra.mrb[12].mxu0 %v7314_v11  ;;  %2495 = vmatmul.mubr.f32.vlgmr.msra.gmra.mrb[12].mxu1 %v7314_v11 }
 0x74a   :  { %5488 = vmatpush1.bf16.msra.mxu0 %v7132_v47  ;;  %5520 = vmatpush1.bf16.msra.mxu1 %v7135_v57  ;;  %v6586_v47 = vmov 0.0|0.0  }
 0x74b   :  { %5490 = vmatprep.subr.bf16.mxu0 %v7140_v2  ;;  %5522 = vmatprep.subr.bf16.mxu1 %v7142_v13 }
 0x74c   :  { %2662 = vmatprep.mubr.f32.mxu0 %v6584_v5  ;;  %2733 = vmatprep.mubr.f32.mxu1 %v6584_v5 }
 0x74e   :  { %5492 = vmatpush1.bf16.msra.mxu0 %v7144_v16  ;;  %5524 = vmatpush1.bf16.msra.mxu1 %v7147_v24 }
 0x74f   :  { %5494 = vmatprep.subr.bf16.mxu0 %v7152_v31  ;;  %5526 = vmatprep.subr.bf16.mxu1 %v7154_v35 }
 0x752   :  { %5496 = vmatpush1.bf16.msra.mxu0 %v7156_v36  ;;  %5528 = vmatpush1.bf16.msra.mxu1 %v7159_v39 }
 0x753   :  { %5498 = vmatprep.subr.bf16.mxu0 %v7164_v49  ;;  %5530 = vmatprep.subr.bf16.mxu1 %v7166_v0 }
 0x756   :  { %5500 = vmatpush1.bf16.msra.mxu0 %v7168_v6  ;;  %5532 = vmatpush1.bf16.msra.mxu1 %v7171_v15 }
 0x757   :  { %5502 = vmatprep.subr.bf16.mxu0 %v7176_v28  ;;  %5534 = vmatprep.subr.bf16.mxu1 %v7178_v43 }
 0x75a   :  { %5504 = vmatpush1.bf16.msra.mxu0 %v7180_v52  ;;  %5536 = vmatpush1.bf16.msra.mxu1 %v7183_v4 }
 0x75b   :  { %5506 = vmatprep.subr.bf16.mxu0 %v7187_v25  ;;  %5538 = vmatprep.subr.bf16.mxu1 %v7190_v59 }
 0x75e   :  { %5508 = vmatpush1.bf16.msra.mxu0 %v7192_v1  ;;  %5540 = vmatpush1.bf16.msra.mxu1 %v7195_v60 }
 0x75f   :  { %5510 = vmatprep.subr.bf16.mxu0 %v7198_v30  ;;  %5542 = vmatprep.subr.bf16.mxu1 %v7200_v41  ;;  %v5550_v41 = vpack.c.bf16 %v7082_v46, %v7040_v9  ;;  %v2853_v9 = vld [vmem:[#allocation11 + $0x8] sm:$0xff]  ;;  %v2855_v46 = vld [vmem:[#allocation11 + $0x18] sm:$0xff] }
 0x762   :  { %5512 = vmatpush1.bf16.msra.mxu0 %v7203_v38  ;;  %5544 = vmatpush1.bf16.msra.mxu1 %v7207_v54  ;;  %v5553_v38 = vpack.c.bf16 %v7230_v7, %v7122_v62  ;;  %v5556_v54 = vpack.c.bf16 %v7314_v11, %v7272_v37  ;;  %v2859_v62 = vld [vmem:[#allocation11 + $0x38] sm:$0xff]  ;;  %v5567_v37 = vpack.c.bf16 %v2858_v29, %v2856_v12  ;;  %v2877_v11 = vld [vmem:[#allocation11 + $0xc8] sm:$0xff] }
 0x763   :  { %5514 = vmatprep.subr.bf16.mxu0 %v7209_v56  ;;  %5546 = vmatprep.subr.bf16.mxu1 %v7212_v20  ;;  %v2852_v56 = vld [vmem:[#allocation11] sm:$0xff]  ;;  %v5561_v20 = vpack.c.bf16 %v2855_v46, %v2853_v9 }
 0x766   :  { %5516 = vmatpush1.bf16.msra.mxu0 %v7215_v34  ;;  %5548 = vmatpush1.bf16.msra.mxu1 %v7219_v40  ;;  %v2854_v34 = vld [vmem:[#allocation11 + $0x10] sm:$0xff]  ;;  %v2857_v40 = vld [vmem:[#allocation11 + $0x28] sm:$0xff] }
 0x767   :  { %5549 = vmatprep.subr.bf16.mxu0 %v6586_v47  ;;  %v5563_v7 = vpack.c.bf16 %v2854_v34, %v2852_v56  ;;  %v5565_v23 = vpack.c.bf16 %v2859_v62, %v2857_v40  ;;  %5562 = vmatprep.subr.bf16.mxu1 %v5561_v20 }
 0x81c   :  { %v2425_v57 = vpop.f32.mrb[12].mxu0  ;;  %v2496_v2 = vpop.f32.mrb[12].mxu1 }
 0x81d   :  { %v4739_v13 = vmul.f32 -1.442695, %v2425_v57  ;;  %v2427_v16 = vpop.f32.mrb[13].mxu0  ;;  %v2498_v24 = vpop.f32.mrb[13].mxu1  ;;  %v2879_v57 = vld [vmem:[#allocation11 + $0xd8] sm:$0xff] }
 0x81e   :  { %v4740_v31 = vmul.f32 -1.442695, %v2427_v16  ;;  %v4741_v35 = vmul.f32 -1.442695, %v2498_v24  ;;  %v2876_v16 = vld [vmem:[#allocation11 + $0xc0] sm:$0xff]  ;;  %v2878_v24 = vld [vmem:[#allocation11 + $0xd0] sm:$0xff] }
 0x81f   :  { %6208 = vpow2.f32 %v4739_v13  ;;  %v5585_v13 = vpack.c.bf16 %v2879_v57, %v2877_v11  ;;  %v2990_v11 = vld [vmem:[%s7863_s8 + $0x78] sm:$0xff] }
 0x820   :  { %6210 = vpow2.f32 %v4740_v31  ;;  %v2881_v31 = vld [vmem:[#allocation11 + $0xe8] sm:$0xff] }
 0x821   :  { %6212 = vpow2.f32 %v4741_v35  ;;  %v2883_v35 = vld [vmem:[#allocation11 + $0xf8] sm:$0xff] }
 0x822   :  { %6214 = vtanh.f32 %v2496_v2  ;;  %v5583_v2 = vpack.c.bf16 %v2874_v10, %v2872_v8  ;;  %v2989_v10 = vld [vmem:[%s7863_s8 + $0x70] sm:$0xff] }
 0x823   :  { %v5615_v57 = vpack.c.bf16 %v2990_v11, %v2989_v10  ;;  %v2969_v11 = vld [vmem:[%s7858_s3] sm:$0xff] }
 0x829   :  { %v6209_v36 = vpop.eup %6208 }
 0x82a   :  { %v6211_v39 = vpop.eup %6210  ;;  %v2508_v49 = vadd.f32 1.0, %v6209_v36  ;;  %v5587_v36 = vpack.c.bf16 %v2878_v24, %v2876_v16  ;;  %v3075_v16 = vld [vmem:[#allocation15 + $0x18] sm:$0xff] }
 0x82b   :  { %v2514_v0 = vadd.f32 1.0, %v6211_v39  ;;  %v6213_v6 = vpop.eup %6212  ;;  %v5589_v39 = vpack.c.bf16 %v2883_v35, %v2881_v31  ;;  %v3079_v31 = vld [vmem:[#allocation15 + $0x38] sm:$0xff] }
 0x82c   :  { %6216 = vrcp.f32 %v2508_v49  ;;  %v6215_v15 = vpop.eup %6214  ;;  %v2521_v4 = vadd.f32 1.0, %v6213_v6  ;;  %v2880_v49 = vld [vmem:[#allocation11 + $0xe0] sm:$0xff]  ;;  %v7437_v35 = vpack.c.bf16 %v3079_v31, %v3075_v16  ;;  %v3085_v16 = vld [vmem:[#allocation15 + $0x68] sm:$0xff] }
 0x82d   :  { %6218 = vrcp.f32 %v2514_v0  ;;  %v2882_v0 = vld [vmem:[#allocation11 + $0xf0] sm:$0xff] }
 0x82e   :  { %6220 = vrcp.f32 %v2521_v4  ;;  %v5591_v6 = vpack.c.bf16 %v2882_v0, %v2880_v49  ;;  %v3083_v0 = vld [vmem:[#allocation15 + $0x58] sm:$0xff] }
 0x836   :  { %v6217_v28 = vpop.eup %6216 }
 0x837   :  { %v6219_v43 = vpop.eup %6218  ;;  %v2525_v52 = vmul.f32 %v6217_v28, %v6215_v15 }
 0x838   :  { %v2524_v25 = vmul.f32 %v6219_v43, %v7311_v58  ;;  %v6221_v1 = vpop.eup %6220  ;;  %v5581_v58 = vpack.c.bf16 %v2875_v50, %v2873_v22  ;;  %v2986_v22 = vld [vmem:[%s7863_s8 + $0x58] sm:$0xff] }
 0x839   :  { %v5609_v50 = vpack.c.bf16 %v2986_v22, %v2985_v19 }
 0x83a   :  { %v7352_v59 = vadd.f32 %v2525_v52, %v2524_v25 }
 0x83c   :  { %6222 = vtanh.f32 %v7352_v59 }
 0x846   :  { %v6223_v60 = vpop.eup %6222 }
 0x847   :  { %v7355_v30 = vmul.f32 %v6223_v60, %v6221_v1 }
 0x849   :  { %2663 = vmatmul.mubr.f32.vlgmr.msra.gmra.mrb[14].mxu0 %v7355_v30  ;;  %2734 = vmatmul.mubr.f32.vlgmr.msra.gmra.mrb[14].mxu1 %v7355_v30 }
 0x84a   :  { %5551 = vmatpush3.bf16.msra.mxu0 %v5550_v41  ;;  %2960 = vmatprep.mubr.f32.mxu1 %v6584_v5 }
 0x84b   :  { %5552 = vmatprep.subr.bf16.mxu0 %v6586_v47  ;;  %4830 = vmatprep.mubr.msk.f32.mxu0 %vm6587_vm14, %v6584_v5 }
 0x84c   :  { %5564 = vmatpush1.bf16.msra.mxu1 %v5563_v7 }
 0x84d   :  { %5566 = vmatprep.subr.bf16.mxu1 %v5565_v23 }
 0x84e   :  { %5554 = vmatpush3.bf16.msra.mxu0 %v5553_v38 }
 0x84f   :  { %5555 = vmatprep.subr.bf16.mxu0 %v6586_v47 }
 0x850   :  { %5568 = vmatpush1.bf16.msra.mxu1 %v5567_v37  ;;  %v2977_v37 = vld [vmem:[%s7863_s8 + $0x10] sm:$0xff] }
 0x851   :  { %5570 = vmatprep.subr.bf16.mxu1 %v5569_v44  ;;  %v5597_v48 = vpack.c.bf16 %v2978_v45, %v2977_v37  ;;  %v3127_v45 = vld [vmem:[#allocation15 + $0x1b8] sm:$0xff] }
 0x852   :  { %5557 = vmatpush3.bf16.msra.mxu0 %v5556_v54 }
 0x853   :  { %5558 = vmatprep.subr.bf16.mxu0 %v6586_v47 }
 0x854   :  { %5572 = vmatpush1.bf16.msra.mxu1 %v5571_v14  ;;  %v2979_v14 = vld [vmem:[%s7863_s8 + $0x20] sm:$0xff] }
 0x855   :  { %5574 = vmatprep.subr.bf16.mxu1 %v5573_v21  ;;  %v2980_v21 = vld [vmem:[%s7863_s8 + $0x28] sm:$0xff] }
 0x856   :  { %v5600_v27 = vpack.c.bf16 %v2980_v21, %v2979_v14  ;;  %v3131_v21 = vld [vmem:[#allocation15 + $0x1d8] sm:$0xff] }
 0x858   :  { %5576 = vmatpush1.bf16.msra.mxu1 %v5575_v18  ;;  %v2983_v18 = vld [vmem:[%s7863_s8 + $0x40] sm:$0xff] }
 0x859   :  { %5578 = vmatprep.subr.bf16.mxu1 %v5577_v17  ;;  %v2984_v17 = vld [vmem:[%s7863_s8 + $0x48] sm:$0xff] }
 0x85a   :  { %v5606_v26 = vpack.c.bf16 %v2984_v17, %v2983_v18  ;;  %v2884_v18 = vld [vmem:[#allocation12] sm:$0x3]  ;;  %v2892_v17 = vsub.s32 1, %v2887_v61 }
 0x85c   :  { %5580 = vmatpush1.bf16.msra.mxu1 %v5579_v53  ;;  %v2987_v53 = vld [vmem:[%s7863_s8 + $0x60] sm:$0xff]  ;;  %v2893_v19 = vrot.slane %v2884_v18, %v2892_v17 }
 0x85d   :  { %5582 = vmatprep.subr.bf16.mxu1 %v5581_v58  ;;  %v2988_v58 = vld [vmem:[%s7863_s8 + $0x68] sm:$0xff] }
 0x85e   :  { %v5612_v8 = vpack.c.bf16 %v2988_v58, %v2987_v53 }
 0x860   :  { %5584 = vmatpush1.bf16.msra.mxu1 %v5583_v2  ;;  %v3073_v2 = vld [vmem:[#allocation15 + $0x8] sm:$0xff] }
 0x861   :  { %5586 = vmatprep.subr.bf16.mxu1 %v5585_v13  ;;  %v3077_v13 = vld [vmem:[#allocation15 + $0x28] sm:$0xff] }
 0x862   :  { %v7435_v24 = vpack.c.bf16 %v3077_v13, %v3073_v2  ;;  %v3081_v13 = vld [vmem:[#allocation15 + $0x48] sm:$0xff] }
 0x864   :  { %5588 = vmatpush1.bf16.msra.mxu1 %v5587_v36  ;;  %v3074_v36 = vld [vmem:[#allocation15 + $0x10] sm:$0xff] }
 0x865   :  { %5590 = vmatprep.subr.bf16.mxu1 %v5589_v39  ;;  %v3078_v39 = vld [vmem:[#allocation15 + $0x30] sm:$0xff] }
 0x866   :  { %v7440_v49 = vpack.c.bf16 %v3078_v39, %v3074_v36 }
 0x868   :  { %5592 = vmatpush1.bf16.msra.mxu1 %v5591_v6  ;;  %v3087_v6 = vld [vmem:[#allocation15 + $0x78] sm:$0xff] }
 0x869   :  { %5650 = vmatprep.subr.bf16.mxu1 %v7437_v35 }
 0x91c   :  { %v2664_v15 = vpop.f32.mrb[14].mxu0  ;;  %v2735_v28 = vpop.f32.mrb[14].mxu1 }
 0x91d   :  { %v4742_v43 = vmul.f32 -1.442695, %v2664_v15  ;;  %v2666_v52 = vpop.f32.mrb[15].mxu0  ;;  %v2737_v4 = vpop.f32.mrb[15].mxu1  ;;  %v3082_v15 = vld [vmem:[#allocation15 + $0x50] sm:$0xff] }
 0x91e   :  { %v4743_v25 = vmul.f32 -1.442695, %v2666_v52  ;;  %v4744_v1 = vmul.f32 -1.442695, %v2737_v4  ;;  %v3091_v52 = vld [vmem:[#allocation15 + $0x98] sm:$0xff] }
 0x91f   :  { %6224 = vpow2.f32 %v4742_v43  ;;  %v3095_v4 = vld [vmem:[#allocation15 + $0xb8] sm:$0xff] }
 0x920   :  { %6226 = vpow2.f32 %v4743_v25  ;;  %v7449_v25 = vpack.c.bf16 %v3095_v4, %v3091_v52  ;;  %v3093_v52 = vld [vmem:[#allocation15 + $0xa8] sm:$0xff] }
 0x921   :  { %6228 = vpow2.f32 %v4744_v1  ;;  %v3090_v1 = vld [vmem:[#allocation15 + $0x90] sm:$0xff] }
 0x922   :  { %6230 = vtanh.f32 %v2735_v28  ;;  %v3086_v28 = vld [vmem:[#allocation15 + $0x70] sm:$0xff] }
 0x923   :  { %v7447_v43 = vpack.c.bf16 %v3086_v28, %v3082_v15  ;;  %v3084_v15 = vld [vmem:[#allocation15 + $0x60] sm:$0xff]  ;;  %v3089_v28 = vld [vmem:[#allocation15 + $0x88] sm:$0xff] }
 0x929   :  { %v6225_v60 = vpop.eup %6224 }
 0x92a   :  { %v6227_v41 = vpop.eup %6226  ;;  %v2747_v38 = vadd.f32 1.0, %v6225_v60  ;;  %v3094_v60 = vld [vmem:[#allocation15 + $0xb0] sm:$0xff] }
 0x92b   :  { %v2753_v54 = vadd.f32 1.0, %v6227_v41  ;;  %v6229_v9 = vpop.eup %6228  ;;  %v7453_v41 = vpack.c.bf16 %v3094_v60, %v3090_v1  ;;  %v7496_v1 = vpack.c.bf16 %v3093_v52, %v3089_v28  ;;  %v3088_v60 = vld [vmem:[#allocation15 + $0x80] sm:$0xff] }
 0x92c   :  { %6232 = vrcp.f32 %v2747_v38  ;;  %v6231_v46 = vpop.eup %6230  ;;  %v2760_v40 = vadd.f32 1.0, %v6229_v9  ;;  %v3099_v38 = vld [vmem:[#allocation15 + $0xd8] sm:$0xff] }
 0x92d   :  { %6234 = vrcp.f32 %v2753_v54  ;;  %v3103_v54 = vld [vmem:[#allocation15 + $0xf8] sm:$0xff] }
 0x92e   :  { %6236 = vrcp.f32 %v2760_v40  ;;  %v7455_v9 = vpack.c.bf16 %v3103_v54, %v3099_v38  ;;  %v3111_v40 = vld [vmem:[#allocation15 + $0x138] sm:$0xff]  ;;  %v3092_v38 = vld [vmem:[#allocation15 + $0xa0] sm:$0xff]  ;;  %v3097_v54 = vld [vmem:[#allocation15 + $0xc8] sm:$0xff] }
 0x936   :  { %v6233_v56 = vpop.eup %6232 }
 0x937   :  { %v6235_v20 = vpop.eup %6234  ;;  %v2764_v34 = vmul.f32 %v6233_v56, %v6231_v46  ;;  %v3098_v46 = vld [vmem:[#allocation15 + $0xd0] sm:$0xff] }
 0x938   :  { %v2763_v62 = vmul.f32 %v6235_v20, %v7352_v59  ;;  %v6237_v23 = vpop.eup %6236  ;;  %v2975_v59 = vld [vmem:[%s7863_s8] sm:$0xff]  ;;  %v3102_v56 = vld [vmem:[#allocation15 + $0xf0] sm:$0xff] }
 0x939   :  { %v7459_v20 = vpack.c.bf16 %v3102_v56, %v3098_v46  ;;  %v3101_v46 = vld [vmem:[#allocation15 + $0xe8] sm:$0xff]  ;;  %v7499_v56 = vpack.c.bf16 %v3092_v38, %v3088_v60 }
 0x93a   :  { %v2765_v7 = vadd.f32 %v2764_v34, %v2763_v62  ;;  %v3107_v34 = vld [vmem:[#allocation15 + $0x118] sm:$0xff] }
 0x93b   :  { %v7461_v62 = vpack.c.bf16 %v3111_v40, %v3107_v34  ;;  %v7502_v34 = vpack.c.bf16 %v3101_v46, %v3097_v54  ;;  %v3096_v40 = vld [vmem:[#allocation15 + $0xc0] sm:$0xff] }
 0x93c   :  { %6238 = vtanh.f32 %v2765_v7  ;;  %v3106_v7 = vld [vmem:[#allocation15 + $0x110] sm:$0xff] }
 0x946   :  { %v6239_v12 = vpop.eup %6238 }
 0x947   :  { %v2767_v29 = vmul.f32 %v6239_v12, %v6237_v23  ;;  %v3110_v23 = vld [vmem:[#allocation15 + $0x130] sm:$0xff] }
 0x948   :  { %v7465_v12 = vpack.c.bf16 %v3110_v23, %v3106_v7  ;;  %v3100_v7 = vld [vmem:[#allocation15 + $0xe0] sm:$0xff]  ;;  %v3105_v23 = vld [vmem:[#allocation15 + $0x108] sm:$0xff] }
 0x949   :  { %v5559_v32 = vpack.c.bf16 %v2767_v29, %v7355_v30  ;;  %v2976_v30 = vld [vmem:[%s7863_s8 + $0x8] sm:$0xff]  ;;  %v3115_v29 = vld [vmem:[#allocation15 + $0x158] sm:$0xff] }
 0x94a   :  { %v5594_v44 = vpack.c.bf16 %v2976_v30, %v2975_v59  ;;  %v3114_v59 = vld [vmem:[#allocation15 + $0x150] sm:$0xff] }
 0x94b   :  { %5560 = vmatpush3.bf16.msra.mxu0 %v5559_v32  ;;  %v3119_v32 = vld [vmem:[#allocation15 + $0x178] sm:$0xff]  ;;  %v3118_v30 = vld [vmem:[#allocation15 + $0x170] sm:$0xff] }
 0x94c   :  { %5593 = vmatprep.subr.bf16.mxu0 %v6586_v47  ;;  %v7471_v37 = vpack.c.bf16 %v3118_v30, %v3114_v59  ;;  %v3104_v30 = vld [vmem:[#allocation15 + $0x100] sm:$0xff] }
 0x94e   :  { %4831 = vmatmul.mubr.msk.f32.vlgmr.msra.gmra.mrb[28].mxu0 %vm2778_vm15, %v2769_v42  ;;  %v7467_v42 = vpack.c.bf16 %v3119_v32, %v3115_v29  ;;  %v3109_v29 = vld [vmem:[#allocation15 + $0x128] sm:$0xff]  ;;  %v7505_v32 = vpack.c.bf16 %v3100_v7, %v3096_v40 }
 0x94f   :  { %4865 = vmatprep.mubr.msk.f32.mxu0 %vm6587_vm14, %v6584_v5  ;;  %5595 = vmatpush3.bf16.msra.mxu0 %v5594_v44  ;;  %v3123_v44 = vld [vmem:[#allocation15 + $0x198] sm:$0xff]  ;;  %v7508_v59 = vpack.c.bf16 %v3109_v29, %v3105_v23 }
 0x950   :  { %5596 = vmatprep.subr.bf16.mxu0 %v6586_v47 }
 0x953   :  { %5598 = vmatpush3.bf16.msra.mxu0 %v5597_v48  ;;  %v7473_v48 = vpack.c.bf16 %v3127_v45, %v3123_v44  ;;  %v3108_v44 = vld [vmem:[#allocation15 + $0x120] sm:$0xff]  ;;  %v3113_v45 = vld [vmem:[#allocation15 + $0x148] sm:$0xff] }
 0x954   :  { %5599 = vmatprep.subr.bf16.mxu0 %v6586_v47 }
 0x957   :  { %5601 = vmatpush3.bf16.msra.mxu0 %v5600_v27  ;;  %v3135_v27 = vld [vmem:[#allocation15 + $0x1f8] sm:$0xff] }
 0x958   :  { %5602 = vmatprep.subr.bf16.mxu0 %v6586_v47  ;;  %v7479_v33 = vpack.c.bf16 %v3135_v27, %v3131_v21  ;;  %v3112_v27 = vld [vmem:[#allocation15 + $0x140] sm:$0xff] }
 0x95b   :  { %5604 = vmatpush3.bf16.msra.mxu0 %v5603_v3  ;;  %v2888_v3 = vsub.s32 0, %v2887_v61  ;;  %v3116_v61 = vld [vmem:[#allocation15 + $0x160] sm:$0xff] }
 0x95c   :  { %5605 = vmatprep.subr.bf16.mxu0 %v6586_v47  ;;  %v7517_v17 = vpack.c.bf16 %v3116_v61, %v3112_v27 }
 0x95f   :  { %5607 = vmatpush3.bf16.msra.mxu0 %v5606_v26  ;;  %v2889_v26 = vrot.slane %v2884_v18, %v2888_v3  ;;  %v3121_v3 = vld [vmem:[#allocation15 + $0x188] sm:$0xff] }
 0x960   :  { %5608 = vmatprep.subr.bf16.mxu0 %v6586_v47  ;;  %v3125_v18 = vld [vmem:[#allocation15 + $0x1a8] sm:$0xff] }
 0x963   :  { %5610 = vmatpush3.bf16.msra.mxu0 %v5609_v50 }
 0x964   :  { %5611 = vmatprep.subr.bf16.mxu0 %v6586_v47 }
 0x967   :  { %5613 = vmatpush3.bf16.msra.mxu0 %v5612_v8 }
 0x968   :  { %5614 = vmatprep.subr.bf16.mxu0 %v6586_v47  ;;  %v7443_v47 = vpack.c.bf16 %v3087_v6, %v3083_v0  ;;  %v7489_v0 = vpack.c.bf16 %v3085_v16, %v3081_v13  ;;  %v3080_v6 = vld [vmem:[#allocation15 + $0x40] sm:$0xff]  ;;  %v4746_v16 = vld [vmem:[%s7864_s9] ss:$0 sm:$0xff] }
 0x969   :  { %v7492_v4 = vpack.c.bf16 %v3084_v15, %v3080_v6 }
 0x96b   :  { %5616 = vmatpush3.bf16.msra.mxu0 %v5615_v57  ;;  %v3072_v57 = vld [vmem:[#allocation15] sm:$0xff] }
 0x96c   :  { %5618 = vmatprep.subr.bf16.mxu0 %v7435_v24  ;;  %v7487_v36 = vpack.c.bf16 %v3076_v55, %v3072_v57  ;;  %v3130_v57 = vld [vmem:[#allocation15 + $0x1d0] sm:$0xff] }
 0xa21   :  { %v2848_v63 = vpop.f32.mrb[28].mxu0 }
 0xa22   :  { %v4832_v51 = vpop.f32.mrb[29].mxu0  ;;  %2961 = vmatmul.mubr.f32.vlgmr.msra.gmra.mrb[28].mxu1 %v2848_v63  ;;  %v3122_v63 = vld [vmem:[#allocation15 + $0x190] sm:$0xff] }
 0xa23   :  { %3271 = vmatprep.mubr.f32.mxu1 %v6584_v5  ;;  %5652 = vmatpush1.bf16.msra.mxu1 %v7440_v49  ;;  %v3126_v51 = vld [vmem:[#allocation15 + $0x1b0] sm:$0xff] }
 0xa24   :  { %5654 = vmatprep.subr.bf16.mxu1 %v7443_v47  ;;  %v7477_v14 = vpack.c.bf16 %v3126_v51, %v3122_v63  ;;  %v3117_v63 = vld [vmem:[#allocation15 + $0x168] sm:$0xff]  ;;  %v7511_v51 = vpack.c.bf16 %v3108_v44, %v3104_v30 }
 0xa25   :  { %v7514_v21 = vpack.c.bf16 %v3117_v63, %v3113_v45 }
 0xa27   :  { %5656 = vmatpush1.bf16.msra.mxu1 %v7447_v43 }
 0xa28   :  { %5658 = vmatprep.subr.bf16.mxu1 %v7449_v25 }
 0xa2b   :  { %5660 = vmatpush1.bf16.msra.mxu1 %v7453_v41 }
 0xa2c   :  { %5662 = vmatprep.subr.bf16.mxu1 %v7455_v9 }
 0xa2f   :  { %5664 = vmatpush1.bf16.msra.mxu1 %v7459_v20 }
 0xa30   :  { %5666 = vmatprep.subr.bf16.mxu1 %v7461_v62 }
 0xa33   :  { %5668 = vmatpush1.bf16.msra.mxu1 %v7465_v12 }
 0xa34   :  { %5670 = vmatprep.subr.bf16.mxu1 %v7467_v42 }
 0xa37   :  { %5672 = vmatpush1.bf16.msra.mxu1 %v7471_v37 }
 0xa38   :  { %5674 = vmatprep.subr.bf16.mxu1 %v7473_v48 }
 0xa3b   :  { %5676 = vmatpush1.bf16.msra.mxu1 %v7477_v14 }
 0xa3c   :  { %5678 = vmatprep.subr.bf16.mxu1 %v7479_v33 }
 0xaf5   :  { %v2962_v22 = vpop.f32.mrb[28].mxu1 }
 0xaf6   :  { %v2963_v50 = vadd.f32 %v2962_v22, %v2889_v26  ;;  %v2964_v53 = vpop.f32.mrb[29].mxu1  ;;  %v7520_v26 = vpack.c.bf16 %v3125_v18, %v3121_v3  ;;  %v3124_v22 = vld [vmem:[#allocation15 + $0x1a0] sm:$0xff] }
 0xaf7   :  { %v2965_v58 = vadd.f32 %v2964_v53, %v2893_v19  ;;  %v3120_v19 = vld [vmem:[#allocation15 + $0x180] sm:$0xff]  ;;  %v3133_v53 = vld [vmem:[#allocation15 + $0x1e8] sm:$0xff] }
 0xaf8   :  { %2967 = vst [vmem:[#allocation19] sm:$0xff] %v2963_v50 }
 0xaf9   :  { %2968 = vst [vmem:[#allocation21] sm:$0xff] %v2965_v58  ;;  %v2970_v8 = vmul.f32 0.5, %v2965_v58  ;;  %v7523_v58 = vpack.c.bf16 %v3124_v22, %v3120_v19 }
 0xafb   :  { %v2971_v10 = vmul.f32 1.442695, %v2970_v8 }
 0xafd   :  { %6240 = vpow2.f32 %v2971_v10  ;;  %v3128_v10 = vld [vmem:[#allocation15 + $0x1c0] sm:$0xff] }
 0xb07   :  { %v6241_v2 = vpop.eup %6240 }
 0xb08   :  { %v2973_v31 = vmul.f32 %v6241_v2, %v2969_v11  ;;  %v3132_v11 = vld [vmem:[#allocation15 + $0x1e0] sm:$0xff]  ;;  %v3134_v2 = vld [vmem:[#allocation15 + $0x1f0] sm:$0xff] }
 0xb09   :  { %v7530_v55 = vpack.c.bf16 %v3132_v11, %v3128_v10  ;;  %v7532_v13 = vpack.c.bf16 %v3134_v2, %v3130_v57 }
 0xb0a   :  { %v2974_v39 = vadd.f32 %v2973_v31, %v2963_v50  ;;  %v3129_v50 = vld [vmem:[#allocation15 + $0x1c8] sm:$0xff] }
 0xb0b   :  { %v7526_v8 = vpack.c.bf16 %v3133_v53, %v3129_v50  ;;  %5680 = vmatpush1.bf16.msra.mxu1 %v7532_v13 }
 0xb0c   :  { %4866 = vmatmul.mubr.f32.vlgmr.msra.gmra.mrb[30].mxu0 %v2974_v39  ;;  %5714 = vmatprep.subr.bf16.mxu1 %v7437_v35 }
 0xb0d   :  { %5620 = vmatpush1.bf16.msra.mxu0 %v7487_v36  ;;  %3200 = vmatprep.mubr.f32.mxu0 %v6584_v5 }
 0xb0e   :  { %5622 = vmatprep.subr.bf16.mxu0 %v7489_v0 }
 0xb11   :  { %5624 = vmatpush1.bf16.msra.mxu0 %v7492_v4 }
 0xb12   :  { %5626 = vmatprep.subr.bf16.mxu0 %v7496_v1 }
 0xb15   :  { %5628 = vmatpush1.bf16.msra.mxu0 %v7499_v56 }
 0xb16   :  { %5630 = vmatprep.subr.bf16.mxu0 %v7502_v34 }
 0xb19   :  { %5632 = vmatpush1.bf16.msra.mxu0 %v7505_v32 }
 0xb1a   :  { %5634 = vmatprep.subr.bf16.mxu0 %v7508_v59 }
 0xb1d   :  { %5636 = vmatpush1.bf16.msra.mxu0 %v7511_v51 }
 0xb1e   :  { %5638 = vmatprep.subr.bf16.mxu0 %v7514_v21 }
 0xb21   :  { %5640 = vmatpush1.bf16.msra.mxu0 %v7517_v17 }
 0xb22   :  { %5642 = vmatprep.subr.bf16.mxu0 %v7520_v26 }
 0xb25   :  { %5644 = vmatpush1.bf16.msra.mxu0 %v7523_v58 }
 0xb26   :  { %5646 = vmatprep.subr.bf16.mxu0 %v7526_v8 }
 0xb29   :  { %5648 = vmatpush1.bf16.msra.mxu0 %v7530_v55 }
 0xb2a   :  { %5682 = vmatprep.subr.bf16.mxu0 %v7435_v24 }
 0xbdf   :  { %v3064_v31 = vpop.f32.mrb[30].mxu0 }
 0xbe0   :  { %v3065_v39 = vadd.f32 %v4746_v16, %v3064_v31  ;;  %v4867_v6 = vpop.f32.mrb[31].mxu0 }
 0xbe2   :  { %3201 = vmatmul.mubr.f32.vlgmr.msra.gmra.mrb[16].mxu0 %v3065_v39  ;;  %3272 = vmatmul.mubr.f32.vlgmr.msra.gmra.mrb[16].mxu1 %v3065_v39 }
 0xbe3   :  { %5684 = vmatpush1.bf16.msra.mxu0 %v7487_v36  ;;  %5716 = vmatpush1.bf16.msra.mxu1 %v7440_v49 }
 0xbe4   :  { %5686 = vmatprep.subr.bf16.mxu0 %v7489_v0  ;;  %5718 = vmatprep.subr.bf16.mxu1 %v7443_v47 }
 0xbe5   :  { %3439 = vmatprep.mubr.f32.mxu0 %v6584_v5  ;;  %3510 = vmatprep.mubr.f32.mxu1 %v6584_v5 }
 0xbe7   :  { %5688 = vmatpush1.bf16.msra.mxu0 %v7492_v4  ;;  %5720 = vmatpush1.bf16.msra.mxu1 %v7447_v43 }
 0xbe8   :  { %5690 = vmatprep.subr.bf16.mxu0 %v7496_v1  ;;  %5722 = vmatprep.subr.bf16.mxu1 %v7449_v25 }
 0xbeb   :  { %5692 = vmatpush1.bf16.msra.mxu0 %v7499_v56  ;;  %5724 = vmatpush1.bf16.msra.mxu1 %v7453_v41 }
 0xbec   :  { %5694 = vmatprep.subr.bf16.mxu0 %v7502_v34  ;;  %5726 = vmatprep.subr.bf16.mxu1 %v7455_v9 }
 0xbef   :  { %5696 = vmatpush1.bf16.msra.mxu0 %v7505_v32  ;;  %5728 = vmatpush1.bf16.msra.mxu1 %v7459_v20 }
 0xbf0   :  { %5698 = vmatprep.subr.bf16.mxu0 %v7508_v59  ;;  %5730 = vmatprep.subr.bf16.mxu1 %v7461_v62 }
 0xbf3   :  { %5700 = vmatpush1.bf16.msra.mxu0 %v7511_v51  ;;  %5732 = vmatpush1.bf16.msra.mxu1 %v7465_v12 }
 0xbf4   :  { %5702 = vmatprep.subr.bf16.mxu0 %v7514_v21  ;;  %5734 = vmatprep.subr.bf16.mxu1 %v7467_v42 }
 0xbf7   :  { %5704 = vmatpush1.bf16.msra.mxu0 %v7517_v17  ;;  %5736 = vmatpush1.bf16.msra.mxu1 %v7471_v37 }
 0xbf8   :  { %5706 = vmatprep.subr.bf16.mxu0 %v7520_v26  ;;  %5738 = vmatprep.subr.bf16.mxu1 %v7473_v48 }
 0xbfb   :  { %5708 = vmatpush1.bf16.msra.mxu0 %v7523_v58  ;;  %5740 = vmatpush1.bf16.msra.mxu1 %v7477_v14 }
 0xbfc   :  { %5710 = vmatprep.subr.bf16.mxu0 %v7526_v8  ;;  %5742 = vmatprep.subr.bf16.mxu1 %v7479_v33 }
 0xbff   :  { %5712 = vmatpush1.bf16.msra.mxu0 %v7530_v55  ;;  %5744 = vmatpush1.bf16.msra.mxu1 %v7532_v13 }
 0xc00   :  { %5746 = vmatprep.subr.bf16.mxu0 %v7435_v24  ;;  %5778 = vmatprep.subr.bf16.mxu1 %v7437_v35 }
 0xcb5   :  { %v3202_v15 = vpop.f32.mrb[16].mxu0  ;;  %v3273_v28 = vpop.f32.mrb[16].mxu1 }
 0xcb6   :  { %v4747_v52 = vmul.f32 -1.442695, %v3202_v15  ;;  %v3204_v60 = vpop.f32.mrb[17].mxu0  ;;  %v3275_v38 = vpop.f32.mrb[17].mxu1 }
 0xcb7   :  { %v4748_v54 = vmul.f32 -1.442695, %v3204_v60  ;;  %v4749_v46 = vmul.f32 -1.442695, %v3275_v38 }
 0xcb8   :  { %6242 = vpow2.f32 %v4747_v52 }
 0xcb9   :  { %6244 = vpow2.f32 %v4748_v54 }
 0xcba   :  { %6246 = vpow2.f32 %v4749_v46 }
 0xcbb   :  { %6248 = vtanh.f32 %v3273_v28 }
 0xcc2   :  { %v6243_v40 = vpop.eup %6242 }
 0xcc3   :  { %v6245_v7 = vpop.eup %6244  ;;  %v3285_v23 = vadd.f32 1.0, %v6243_v40 }
 0xcc4   :  { %v3291_v29 = vadd.f32 1.0, %v6245_v7  ;;  %v6247_v30 = vpop.eup %6246 }
 0xcc5   :  { %6250 = vrcp.f32 %v3285_v23  ;;  %v6249_v44 = vpop.eup %6248  ;;  %v3298_v61 = vadd.f32 1.0, %v6247_v30 }
 0xcc6   :  { %6252 = vrcp.f32 %v3291_v29 }
 0xcc7   :  { %6254 = vrcp.f32 %v3298_v61  ;;  %v4041_v61 = vld [vmem:[#allocation15 + $0x68] sm:$0xff] }
 0xccf   :  { %v6251_v45 = vpop.eup %6250 }
 0xcd0   :  { %v6253_v63 = vpop.eup %6252  ;;  %v3302_v27 = vmul.f32 %v6251_v45, %v6249_v44  ;;  %v4030_v44 = vld [vmem:[#allocation15 + $0x10] sm:$0xff] }
 0xcd1   :  { %v3301_v3 = vmul.f32 0.0, %v6253_v63  ;;  %v6255_v19 = vpop.eup %6254  ;;  %v4034_v45 = vld [vmem:[#allocation15 + $0x30] sm:$0xff] }
 0xcd2   :  { %v7673_v63 = vpack.c.bf16 %v4034_v45, %v4030_v44  ;;  %v4068_v44 = vld [vmem:[#allocation15 + $0x140] sm:$0xff] }
 0xcd3   :  { %v7575_v18 = vadd.f32 %v3302_v27, %v3301_v3  ;;  %v4037_v27 = vld [vmem:[#allocation15 + $0x48] sm:$0xff]  ;;  %v4039_v3 = vld [vmem:[#allocation15 + $0x58] sm:$0xff]  ;;  %v4072_v45 = vld [vmem:[#allocation15 + $0x160] sm:$0xff] }
 0xcd5   :  { %6256 = vtanh.f32 %v7575_v18 }
 0xcdf   :  { %v6257_v22 = vpop.eup %6256 }
 0xce0   :  { %v7578_v50 = vmul.f32 %v6257_v22, %v6255_v19  ;;  %v4043_v19 = vld [vmem:[#allocation15 + $0x78] sm:$0xff]  ;;  %v4036_v22 = vld [vmem:[#allocation15 + $0x40] sm:$0xff] }
 0xce2   :  { %3440 = vmatmul.mubr.f32.vlgmr.msra.gmra.mrb[18].mxu0 %v7578_v50  ;;  %3511 = vmatmul.mubr.f32.vlgmr.msra.gmra.mrb[18].mxu1 %v7578_v50 }
 0xce3   :  { %5748 = vmatpush1.bf16.msra.mxu0 %v7487_v36  ;;  %5780 = vmatpush1.bf16.msra.mxu1 %v7440_v49 }
 0xce4   :  { %5750 = vmatprep.subr.bf16.mxu0 %v7489_v0  ;;  %5782 = vmatprep.subr.bf16.mxu1 %v7443_v47 }
 0xce5   :  { %3678 = vmatprep.mubr.f32.mxu0 %v6584_v5  ;;  %3749 = vmatprep.mubr.f32.mxu1 %v6584_v5 }
 0xce7   :  { %5752 = vmatpush1.bf16.msra.mxu0 %v7492_v4  ;;  %5784 = vmatpush1.bf16.msra.mxu1 %v7447_v43 }
 0xce8   :  { %5754 = vmatprep.subr.bf16.mxu0 %v7496_v1  ;;  %5786 = vmatprep.subr.bf16.mxu1 %v7449_v25 }
 0xceb   :  { %5756 = vmatpush1.bf16.msra.mxu0 %v7499_v56  ;;  %5788 = vmatpush1.bf16.msra.mxu1 %v7453_v41 }
 0xcec   :  { %5758 = vmatprep.subr.bf16.mxu0 %v7502_v34  ;;  %5790 = vmatprep.subr.bf16.mxu1 %v7455_v9 }
 0xcef   :  { %5760 = vmatpush1.bf16.msra.mxu0 %v7505_v32  ;;  %5792 = vmatpush1.bf16.msra.mxu1 %v7459_v20 }
 0xcf0   :  { %5762 = vmatprep.subr.bf16.mxu0 %v7508_v59  ;;  %5794 = vmatprep.subr.bf16.mxu1 %v7461_v62 }
 0xcf3   :  { %5764 = vmatpush1.bf16.msra.mxu0 %v7511_v51  ;;  %5796 = vmatpush1.bf16.msra.mxu1 %v7465_v12 }
 0xcf4   :  { %5766 = vmatprep.subr.bf16.mxu0 %v7514_v21  ;;  %5798 = vmatprep.subr.bf16.mxu1 %v7467_v42 }
 0xcf7   :  { %5768 = vmatpush1.bf16.msra.mxu0 %v7517_v17  ;;  %5800 = vmatpush1.bf16.msra.mxu1 %v7471_v37 }
 0xcf8   :  { %5770 = vmatprep.subr.bf16.mxu0 %v7520_v26  ;;  %5802 = vmatprep.subr.bf16.mxu1 %v7473_v48 }
 0xcfb   :  { %5772 = vmatpush1.bf16.msra.mxu0 %v7523_v58  ;;  %5804 = vmatpush1.bf16.msra.mxu1 %v7477_v14 }
 0xcfc   :  { %5774 = vmatprep.subr.bf16.mxu0 %v7526_v8  ;;  %5806 = vmatprep.subr.bf16.mxu1 %v7479_v33 }
 0xcff   :  { %5776 = vmatpush1.bf16.msra.mxu0 %v7530_v55  ;;  %5808 = vmatpush1.bf16.msra.mxu1 %v7532_v13 }
 0xd00   :  { %5810 = vmatprep.subr.bf16.mxu0 %v7435_v24  ;;  %5842 = vmatprep.subr.bf16.mxu1 %v7437_v35 }
 0xdb5   :  { %v3441_v53 = vpop.f32.mrb[18].mxu0  ;;  %v3512_v10 = vpop.f32.mrb[18].mxu1 }
 0xdb6   :  { %v4750_v11 = vmul.f32 -1.442695, %v3441_v53  ;;  %v3443_v57 = vpop.f32.mrb[19].mxu0  ;;  %v3514_v2 = vpop.f32.mrb[19].mxu1  ;;  %v4040_v53 = vld [vmem:[#allocation15 + $0x60] sm:$0xff] }
 0xdb7   :  { %v4751_v16 = vmul.f32 -1.442695, %v3443_v57  ;;  %v4752_v31 = vmul.f32 -1.442695, %v3514_v2  ;;  %v4038_v57 = vld [vmem:[#allocation15 + $0x50] sm:$0xff] }
 0xdb8   :  { %6258 = vpow2.f32 %v4750_v11  ;;  %v7682_v11 = vpack.c.bf16 %v4040_v53, %v4036_v22  ;;  %v4042_v2 = vld [vmem:[#allocation15 + $0x70] sm:$0xff]  ;;  %v4077_v22 = vld [vmem:[#allocation15 + $0x188] sm:$0xff] }
 0xdb9   :  { %6260 = vpow2.f32 %v4751_v16  ;;  %v7685_v16 = vpack.c.bf16 %v4042_v2, %v4038_v57  ;;  %v4081_v57 = vld [vmem:[#allocation15 + $0x1a8] sm:$0xff]  ;;  %v4079_v2 = vld [vmem:[#allocation15 + $0x198] sm:$0xff] }
 0xdba   :  { %6262 = vpow2.f32 %v4752_v31  ;;  %v4045_v31 = vld [vmem:[#allocation15 + $0x88] sm:$0xff] }
 0xdbb   :  { %6264 = vtanh.f32 %v3512_v10  ;;  %v7680_v10 = vpack.c.bf16 %v4043_v19, %v4039_v3  ;;  %v4070_v3 = vld [vmem:[#allocation15 + $0x150] sm:$0xff] }
 0xdbc   :  { %v4074_v19 = vld [vmem:[#allocation15 + $0x170] sm:$0xff] }
 0xdbd   :  { %v7733_v53 = vpack.c.bf16 %v4074_v19, %v4070_v3 }
 0xdc2   :  { %v6259_v39 = vpop.eup %6258 }
 0xdc3   :  { %v6261_v6 = vpop.eup %6260  ;;  %v3524_v15 = vadd.f32 1.0, %v6259_v39  ;;  %v4049_v39 = vld [vmem:[#allocation15 + $0xa8] sm:$0xff] }
 0xdc4   :  { %v3530_v28 = vadd.f32 1.0, %v6261_v6  ;;  %v6263_v24 = vpop.eup %6262  ;;  %v4047_v6 = vld [vmem:[#allocation15 + $0x98] sm:$0xff] }
 0xdc5   :  { %6266 = vrcp.f32 %v3524_v15  ;;  %v6265_v52 = vpop.eup %6264  ;;  %v3537_v54 = vadd.f32 1.0, %v6263_v24  ;;  %v7690_v15 = vpack.c.bf16 %v4049_v39, %v4045_v31  ;;  %v4044_v24 = vld [vmem:[#allocation15 + $0x80] sm:$0xff]  ;;  %v4083_v31 = vld [vmem:[#allocation15 + $0x1b8] sm:$0xff]  ;;  %v7736_v39 = vpack.c.bf16 %v4081_v57, %v4077_v22 }
 0xdc6   :  { %6268 = vrcp.f32 %v3530_v28  ;;  %v4051_v28 = vld [vmem:[#allocation15 + $0xb8] sm:$0xff] }
 0xdc7   :  { %6270 = vrcp.f32 %v3537_v54  ;;  %v4050_v54 = vld [vmem:[#allocation15 + $0xb0] sm:$0xff] }
 0xdcf   :  { %v6267_v35 = vpop.eup %6266 }
 0xdd0   :  { %v6269_v60 = vpop.eup %6268  ;;  %v3541_v38 = vmul.f32 %v6267_v35, %v6265_v52  ;;  %v4048_v52 = vld [vmem:[#allocation15 + $0xa0] sm:$0xff]  ;;  %v7692_v35 = vpack.c.bf16 %v4051_v28, %v4047_v6  ;;  %v7738_v6 = vpack.c.bf16 %v4083_v31, %v4079_v2 }
 0xdd1   :  { %v3540_v46 = vmul.f32 %v6269_v60, %v7575_v18  ;;  %v6271_v7 = vpop.eup %6270  ;;  %v7678_v18 = vpack.c.bf16 %v4041_v61, %v4037_v27  ;;  %v7694_v60 = vpack.c.bf16 %v4048_v52, %v4044_v24  ;;  %v7730_v61 = vpack.c.bf16 %v4072_v45, %v4068_v44  ;;  %v4076_v28 = vld [vmem:[#allocation15 + $0x180] sm:$0xff]  ;;  %v4078_v52 = vld [vmem:[#allocation15 + $0x190] sm:$0xff] }
 0xdd2   :  { %v4080_v24 = vld [vmem:[#allocation15 + $0x1a0] sm:$0xff] }
 0xdd3   :  { %v7617_v40 = vadd.f32 %v3541_v38, %v3540_v46  ;;  %v4046_v38 = vld [vmem:[#allocation15 + $0x90] sm:$0xff] }
 0xdd4   :  { %v7697_v46 = vpack.c.bf16 %v4050_v54, %v4046_v38  ;;  %v7741_v38 = vpack.c.bf16 %v4080_v24, %v4076_v28  ;;  %v4082_v54 = vld [vmem:[#allocation15 + $0x1b0] sm:$0xff] }
 0xdd5   :  { %6272 = vtanh.f32 %v7617_v40 }
 0xddf   :  { %v6273_v23 = vpop.eup %6272 }
 0xde0   :  { %v7620_v29 = vmul.f32 %v6273_v23, %v6271_v7  ;;  %v4057_v7 = vld [vmem:[#allocation15 + $0xe8] sm:$0xff]  ;;  %v4055_v23 = vld [vmem:[#allocation15 + $0xd8] sm:$0xff] }
 0xde2   :  { %3679 = vmatmul.mubr.f32.vlgmr.msra.gmra.mrb[20].mxu0 %v7620_v29  ;;  %3750 = vmatmul.mubr.f32.vlgmr.msra.gmra.mrb[20].mxu1 %v7620_v29 }
 0xde3   :  { %5812 = vmatpush1.bf16.msra.mxu0 %v7487_v36  ;;  %5844 = vmatpush1.bf16.msra.mxu1 %v7440_v49 }
 0xde4   :  { %5814 = vmatprep.subr.bf16.mxu0 %v7489_v0  ;;  %5846 = vmatprep.subr.bf16.mxu1 %v7443_v47 }
 0xde5   :  { %3917 = vmatprep.mubr.f32.mxu0 %v6584_v5  ;;  %3988 = vmatprep.mubr.f32.mxu1 %v6584_v5 }
 0xde7   :  { %5816 = vmatpush1.bf16.msra.mxu0 %v7492_v4  ;;  %5848 = vmatpush1.bf16.msra.mxu1 %v7447_v43 }
 0xde8   :  { %5818 = vmatprep.subr.bf16.mxu0 %v7496_v1  ;;  %5850 = vmatprep.subr.bf16.mxu1 %v7449_v25 }
 0xdeb   :  { %5820 = vmatpush1.bf16.msra.mxu0 %v7499_v56  ;;  %5852 = vmatpush1.bf16.msra.mxu1 %v7453_v41 }
 0xdec   :  { %5822 = vmatprep.subr.bf16.mxu0 %v7502_v34  ;;  %5854 = vmatprep.subr.bf16.mxu1 %v7455_v9 }
 0xdef   :  { %5824 = vmatpush1.bf16.msra.mxu0 %v7505_v32  ;;  %5856 = vmatpush1.bf16.msra.mxu1 %v7459_v20 }
 0xdf0   :  { %5826 = vmatprep.subr.bf16.mxu0 %v7508_v59  ;;  %5858 = vmatprep.subr.bf16.mxu1 %v7461_v62 }
 0xdf3   :  { %5828 = vmatpush1.bf16.msra.mxu0 %v7511_v51  ;;  %5860 = vmatpush1.bf16.msra.mxu1 %v7465_v12  ;;  %v4029_v51 = vld [vmem:[#allocation15 + $0x8] sm:$0xff] }
 0xdf4   :  { %5830 = vmatprep.subr.bf16.mxu0 %v7514_v21  ;;  %5862 = vmatprep.subr.bf16.mxu1 %v7467_v42  ;;  %v4033_v21 = vld [vmem:[#allocation15 + $0x28] sm:$0xff] }
 0xdf7   :  { %5832 = vmatpush1.bf16.msra.mxu0 %v7517_v17  ;;  %5864 = vmatpush1.bf16.msra.mxu1 %v7471_v37  ;;  %v4031_v17 = vld [vmem:[#allocation15 + $0x18] sm:$0xff] }
 0xdf8   :  { %5834 = vmatprep.subr.bf16.mxu0 %v7520_v26  ;;  %5866 = vmatprep.subr.bf16.mxu1 %v7473_v48  ;;  %v7666_v26 = vpack.c.bf16 %v4033_v21, %v4029_v51  ;;  %v4069_v21 = vld [vmem:[#allocation15 + $0x148] sm:$0xff] }
 0xdfb   :  { %5836 = vmatpush1.bf16.msra.mxu0 %v7523_v58  ;;  %5868 = vmatpush1.bf16.msra.mxu1 %v7477_v14  ;;  %v4035_v58 = vld [vmem:[#allocation15 + $0x38] sm:$0xff] }
 0xdfc   :  { %5838 = vmatprep.subr.bf16.mxu0 %v7526_v8  ;;  %5870 = vmatprep.subr.bf16.mxu1 %v7479_v33  ;;  %v4028_v8 = vld [vmem:[#allocation15] sm:$0xff] }
 0xdff   :  { %5840 = vmatpush1.bf16.msra.mxu0 %v7530_v55  ;;  %5872 = vmatpush1.bf16.msra.mxu1 %v7532_v13  ;;  %v4032_v55 = vld [vmem:[#allocation15 + $0x20] sm:$0xff]  ;;  %v7668_v13 = vpack.c.bf16 %v4035_v58, %v4031_v17  ;;  %v4073_v17 = vld [vmem:[#allocation15 + $0x168] sm:$0xff]  ;;  %v4071_v58 = vld [vmem:[#allocation15 + $0x158] sm:$0xff] }
 0xe00   :  { %v7670_v30 = vpack.c.bf16 %v4032_v55, %v4028_v8  ;;  %5874 = vmatprep.subr.bf16.mxu0 %v7666_v26  ;;  %v7725_v8 = vpack.c.bf16 %v4073_v17, %v4069_v21  ;;  %v4075_v55 = vld [vmem:[#allocation15 + $0x178] sm:$0xff] }
 0xe01   :  { %5906 = vmatprep.subr.bf16.mxu1 %v7668_v13  ;;  %v7728_v27 = vpack.c.bf16 %v4075_v55, %v4071_v58 }
 0xeb5   :  { %v3680_v49 = vpop.f32.mrb[20].mxu0  ;;  %v3751_v47 = vpop.f32.mrb[20].mxu1 }
 0xeb6   :  { %v4753_v43 = vmul.f32 -1.442695, %v3680_v49  ;;  %v3682_v25 = vpop.f32.mrb[21].mxu0  ;;  %v3753_v41 = vpop.f32.mrb[21].mxu1 }
 0xeb7   :  { %v4754_v9 = vmul.f32 -1.442695, %v3682_v25  ;;  %v4755_v20 = vmul.f32 -1.442695, %v3753_v41  ;;  %v4056_v25 = vld [vmem:[#allocation15 + $0xe0] sm:$0xff] }
 0xeb8   :  { %6274 = vpow2.f32 %v4753_v43  ;;  %v4052_v43 = vld [vmem:[#allocation15 + $0xc0] sm:$0xff] }
 0xeb9   :  { %6276 = vpow2.f32 %v4754_v9  ;;  %v7706_v9 = vpack.c.bf16 %v4056_v25, %v4052_v43  ;;  %v4087_v43 = vld [vmem:[#allocation15 + $0x1d8] sm:$0xff] }
 0xeba   :  { %6278 = vpow2.f32 %v4755_v20  ;;  %v4054_v20 = vld [vmem:[#allocation15 + $0xd0] sm:$0xff]  ;;  %v4091_v25 = vld [vmem:[#allocation15 + $0x1f8] sm:$0xff] }
 0xebb   :  { %6280 = vtanh.f32 %v3751_v47  ;;  %v4059_v47 = vld [vmem:[#allocation15 + $0xf8] sm:$0xff] }
 0xebc   :  { %v7704_v41 = vpack.c.bf16 %v4059_v47, %v4055_v23  ;;  %v7745_v23 = vpack.c.bf16 %v4082_v54, %v4078_v52 }
 0xec2   :  { %v6275_v62 = vpop.eup %6274 }
 0xec3   :  { %v6277_v12 = vpop.eup %6276  ;;  %v3763_v42 = vadd.f32 1.0, %v6275_v62  ;;  %v4058_v62 = vld [vmem:[#allocation15 + $0xf0] sm:$0xff] }
 0xec4   :  { %v3769_v37 = vadd.f32 1.0, %v6277_v12  ;;  %v6279_v48 = vpop.eup %6278  ;;  %v7709_v12 = vpack.c.bf16 %v4058_v62, %v4054_v20  ;;  %v4084_v20 = vld [vmem:[#allocation15 + $0x1c0] sm:$0xff]  ;;  %v7750_v62 = vpack.c.bf16 %v4091_v25, %v4087_v43  ;;  %v4514_v25 = vld [vmem:[#allocation17 + $0x30] sm:$0xff] }
 0xec5   :  { %6282 = vrcp.f32 %v3763_v42  ;;  %v6281_v14 = vpop.eup %6280  ;;  %v3776_v4 = vadd.f32 1.0, %v6279_v48  ;;  %v4061_v42 = vld [vmem:[#allocation15 + $0x108] sm:$0xff]  ;;  %v4063_v48 = vld [vmem:[#allocation15 + $0x118] sm:$0xff] }
 0xec6   :  { %6284 = vrcp.f32 %v3769_v37  ;;  %v4065_v37 = vld [vmem:[#allocation15 + $0x128] sm:$0xff] }
 0xec7   :  { %6286 = vrcp.f32 %v3776_v4 }
 0xecf   :  { %v6283_v33 = vpop.eup %6282 }
 0xed0   :  { %v6285_v36 = vpop.eup %6284  ;;  %v3780_v0 = vmul.f32 %v6283_v33, %v6281_v14  ;;  %v7714_v14 = vpack.c.bf16 %v4065_v37, %v4061_v42  ;;  %v4067_v33 = vld [vmem:[#allocation15 + $0x138] sm:$0xff]  ;;  %v4088_v42 = vld [vmem:[#allocation15 + $0x1e0] sm:$0xff]  ;;  %v4086_v37 = vld [vmem:[#allocation15 + $0x1d0] sm:$0xff] }
 0xed1   :  { %v3779_v1 = vmul.f32 %v6285_v36, %v7617_v40  ;;  %v6287_v34 = vpop.eup %6286  ;;  %v4053_v40 = vld [vmem:[#allocation15 + $0xc8] sm:$0xff]  ;;  %v4060_v36 = vld [vmem:[#allocation15 + $0x100] sm:$0xff]  ;;  %v7716_v4 = vpack.c.bf16 %v4067_v33, %v4063_v48  ;;  %v4090_v48 = vld [vmem:[#allocation15 + $0x1f0] sm:$0xff]  ;;  %v7753_v33 = vpack.c.bf16 %v4088_v42, %v4084_v20 }
 0xed2   :  { %v7702_v49 = vpack.c.bf16 %v4057_v7, %v4053_v40  ;;  %v4085_v40 = vld [vmem:[#allocation15 + $0x1c8] sm:$0xff]  ;;  %v4515_v20 = vld [vmem:[#allocation17 + $0x38] sm:$0xff]  ;;  %v4516_v42 = vld [vmem:[#allocation17 + $0x40] sm:$0xff] }
 0xed3   :  { %v7657_v56 = vadd.f32 %v3780_v0, %v3779_v1  ;;  %v4064_v0 = vld [vmem:[#allocation15 + $0x120] sm:$0xff]  ;;  %v4089_v7 = vld [vmem:[#allocation15 + $0x1e8] sm:$0xff] }
 0xed4   :  { %v7718_v1 = vpack.c.bf16 %v4064_v0, %v4060_v36  ;;  %v7747_v47 = vpack.c.bf16 %v4089_v7, %v4085_v40  ;;  %v7757_v36 = vpack.c.bf16 %v4090_v48, %v4086_v37  ;;  %v4517_v37 = vld [vmem:[#allocation17 + $0x48] sm:$0xff] }
 0xed5   :  { %6288 = vtanh.f32 %v7657_v56  ;;  %v6017_v48 = vpack.c.bf16 %v4517_v37, %v4516_v42 }
 0xedf   :  { %v6289_v32 = vpop.eup %6288 }
 0xee0   :  { %v7660_v59 = vmul.f32 %v6289_v32, %v6287_v34  ;;  %v4062_v34 = vld [vmem:[#allocation15 + $0x110] sm:$0xff] }
 0xee1   :  { %v4066_v32 = vld [vmem:[#allocation15 + $0x130] sm:$0xff] }
 0xee2   :  { %3918 = vmatmul.mubr.f32.vlgmr.msra.gmra.mrb[22].mxu0 %v7660_v59  ;;  %3989 = vmatmul.mubr.f32.vlgmr.msra.gmra.mrb[22].mxu1 %v7660_v59  ;;  %v7721_v51 = vpack.c.bf16 %v4066_v32, %v4062_v34 }
 0xee3   :  { %4156 = vmatprep.mubr.f32.mxu0 %v6584_v5  ;;  %4227 = vmatprep.mubr.f32.mxu1 %v6584_v5 }
 0xee4   :  { %5876 = vmatpush1.bf16.msra.mxu0 %v7670_v30  ;;  %5908 = vmatpush1.bf16.msra.mxu1 %v7673_v63 }
 0xee5   :  { %5878 = vmatprep.subr.bf16.mxu0 %v7678_v18  ;;  %5910 = vmatprep.subr.bf16.mxu1 %v7680_v10 }
 0xee8   :  { %5880 = vmatpush1.bf16.msra.mxu0 %v7682_v11  ;;  %5912 = vmatpush1.bf16.msra.mxu1 %v7685_v16 }
 0xee9   :  { %5882 = vmatprep.subr.bf16.mxu0 %v7690_v15  ;;  %5914 = vmatprep.subr.bf16.mxu1 %v7692_v35 }
 0xeec   :  { %5884 = vmatpush1.bf16.msra.mxu0 %v7694_v60  ;;  %5916 = vmatpush1.bf16.msra.mxu1 %v7697_v46 }
 0xeed   :  { %5886 = vmatprep.subr.bf16.mxu0 %v7702_v49  ;;  %5918 = vmatprep.subr.bf16.mxu1 %v7704_v41 }
 0xef0   :  { %5888 = vmatpush1.bf16.msra.mxu0 %v7706_v9  ;;  %5920 = vmatpush1.bf16.msra.mxu1 %v7709_v12 }
 0xef1   :  { %5890 = vmatprep.subr.bf16.mxu0 %v7714_v14  ;;  %5922 = vmatprep.subr.bf16.mxu1 %v7716_v4 }
 0xef4   :  { %5892 = vmatpush1.bf16.msra.mxu0 %v7718_v1  ;;  %5924 = vmatpush1.bf16.msra.mxu1 %v7721_v51 }
 0xef5   :  { %5894 = vmatprep.subr.bf16.mxu0 %v7725_v8  ;;  %5926 = vmatprep.subr.bf16.mxu1 %v7728_v27 }
 0xef8   :  { %5896 = vmatpush1.bf16.msra.mxu0 %v7730_v61  ;;  %5928 = vmatpush1.bf16.msra.mxu1 %v7733_v53 }
 0xef9   :  { %5898 = vmatprep.subr.bf16.mxu0 %v7736_v39  ;;  %5930 = vmatprep.subr.bf16.mxu1 %v7738_v6 }
 0xefc   :  { %5900 = vmatpush1.bf16.msra.mxu0 %v7741_v38  ;;  %5932 = vmatpush1.bf16.msra.mxu1 %v7745_v23 }
 0xefd   :  { %5902 = vmatprep.subr.bf16.mxu0 %v7747_v47  ;;  %5934 = vmatprep.subr.bf16.mxu1 %v7750_v62 }
 0xf00   :  { %5904 = vmatpush1.bf16.msra.mxu0 %v7753_v33  ;;  %5936 = vmatpush1.bf16.msra.mxu1 %v7757_v36 }
 0xf01   :  { %5938 = vmatprep.subr.bf16.mxu0 %v7666_v26  ;;  %5970 = vmatprep.subr.bf16.mxu1 %v7668_v13 }
 0xfb5   :  { %v3919_v0 = vpop.f32.mrb[22].mxu0  ;;  %v3990_v34 = vpop.f32.mrb[22].mxu1 }
 0xfb6   :  { %v4756_v32 = vmul.f32 -1.442695, %v3919_v0  ;;  %v3921_v21 = vpop.f32.mrb[23].mxu0  ;;  %v3992_v17 = vpop.f32.mrb[23].mxu1 }
 0xfb7   :  { %v4757_v58 = vmul.f32 -1.442695, %v3921_v21  ;;  %v4758_v55 = vmul.f32 -1.442695, %v3992_v17  ;;  %v4522_v21 = vld [vmem:[#allocation17 + $0x70] sm:$0xff]  ;;  %v4523_v17 = vld [vmem:[#allocation17 + $0x78] sm:$0xff] }
 0xfb8   :  { %6290 = vpow2.f32 %v4756_v32  ;;  %v4521_v32 = vld [vmem:[#allocation17 + $0x68] sm:$0xff] }
 0xfb9   :  { %6292 = vpow2.f32 %v4757_v58  ;;  %v6029_v58 = vpack.c.bf16 %v4523_v17, %v4522_v21 }
 0xfba   :  { %6294 = vpow2.f32 %v4758_v55 }
 0xfbb   :  { %6296 = vtanh.f32 %v3990_v34  ;;  %v4520_v34 = vld [vmem:[#allocation17 + $0x60] sm:$0xff] }
 0xfc2   :  { %v6291_v44 = vpop.eup %6290 }
 0xfc3   :  { %v6293_v45 = vpop.eup %6292  ;;  %v4002_v3 = vadd.f32 1.0, %v6291_v44 }
 0xfc4   :  { %v4008_v19 = vadd.f32 1.0, %v6293_v45  ;;  %v6295_v26 = vpop.eup %6294 }
 0xfc5   :  { %6298 = vrcp.f32 %v4002_v3  ;;  %v6297_v22 = vpop.eup %6296  ;;  %v4015_v31 = vadd.f32 1.0, %v6295_v26 }
 0xfc6   :  { %6300 = vrcp.f32 %v4008_v19 }
 0xfc7   :  { %6302 = vrcp.f32 %v4015_v31 }
 0xfcf   :  { %v6299_v13 = vpop.eup %6298 }
 0xfd0   :  { %v6301_v57 = vpop.eup %6300  ;;  %v4019_v2 = vmul.f32 %v6299_v13, %v6297_v22 }
 0xfd1   :  { %v4018_v28 = vmul.f32 %v6301_v57, %v7657_v56  ;;  %v6303_v52 = vpop.eup %6302  ;;  %v4509_v56 = vld [vmem:[#allocation17 + $0x8] sm:$0xff] }
 0xfd3   :  { %v7765_v24 = vadd.f32 %v4019_v2, %v4018_v28 }
 0xfd5   :  { %6304 = vtanh.f32 %v7765_v24 }
 0xfdf   :  { %v6305_v54 = vpop.eup %6304 }
 0xfe0   :  { %v7768_v40 = vmul.f32 %v6305_v54, %v6303_v52 }
 0xfe2   :  { %4157 = vmatmul.mubr.f32.vlgmr.msra.gmra.mrb[24].mxu0 %v7768_v40  ;;  %4228 = vmatmul.mubr.f32.vlgmr.msra.gmra.mrb[24].mxu1 %v7768_v40 }
 0xfe3   :  { %5972 = vmatpush1.bf16.msra.mxu1 %v7673_v63  ;;  %5940 = vmatpush1.bf16.msra.mxu0 %v7670_v30 }
 0xfe4   :  { %5974 = vmatprep.subr.bf16.mxu1 %v7680_v10  ;;  %5942 = vmatprep.subr.bf16.mxu0 %v7678_v18 }
 0xfe5   :  { %4395 = vmatprep.mubr.f32.mxu0 %v6584_v5  ;;  %4466 = vmatprep.mubr.f32.mxu1 %v6584_v5  ;;  %v4508_v5 = vld [vmem:[#allocation17] sm:$0xff] }
 0xfe6   :  { %v6001_v30 = vpack.c.bf16 %v4509_v56, %v4508_v5  ;;  %v4765_v5 = vld [vmem:[%s7868_s13] ss:$0 sm:$0xff]  ;;  %s6588_s13 = smov [#allocation19]  }
 0xfe7   :  { %5976 = vmatpush1.bf16.msra.mxu1 %v7685_v16  ;;  %5944 = vmatpush1.bf16.msra.mxu0 %v7682_v11  ;;  %s4650_s17 = sshll.u32 %s6588_s13, 4  ;;  %s4651_s17 = int_to_ptr.vmem [resolvable:$true] %s4650_s17 }
 0xfe8   :  { %5978 = vmatprep.subr.bf16.mxu1 %v7692_v35  ;;  %5946 = vmatprep.subr.bf16.mxu0 %v7690_v15  ;;  %s6492_s21 = scalar_lea.vmem %s4651_s17, 128  ;;  %p6497_p1 = scmp.lt.s32.totalorder %s4651_s17, %s4651_s17 }
 0xfe9   :  { %p6493_p0 = scmp.ne.s32.totalorder %s4651_s17, %s6492_s21  ;;  %p6498_p2 = scmp.lt.s32.totalorder %s6492_s21, %s6492_s21 }
 0xfeb   :  { %5980 = vmatpush1.bf16.msra.mxu1 %v7697_v46  ;;  %5948 = vmatpush1.bf16.msra.mxu0 %v7694_v60  ;;  %p6499_p3 = por %p6498_p2, %p6497_p1 }
 0xfec   :  { %5982 = vmatprep.subr.bf16.mxu1 %v7704_v41  ;;  %5950 = vmatprep.subr.bf16.mxu0 %v7702_v49 }
 0xfed   :  { %p6500_p4 = pnand %p6499_p3, %p6493_p0 }
 0xfef   :  { %5984 = vmatpush1.bf16.msra.mxu1 %v7709_v12  ;;  %5952 = vmatpush1.bf16.msra.mxu0 %v7706_v9 }
 0xff0   :  { %5986 = vmatprep.subr.bf16.mxu1 %v7716_v4  ;;  %5954 = vmatprep.subr.bf16.mxu0 %v7714_v14 }
 0xff3   :  { %5988 = vmatpush1.bf16.msra.mxu1 %v7721_v51  ;;  %5956 = vmatpush1.bf16.msra.mxu0 %v7718_v1 }
 0xff4   :  { %5990 = vmatprep.subr.bf16.mxu1 %v7728_v27  ;;  %5958 = vmatprep.subr.bf16.mxu0 %v7725_v8 }
 0xff7   :  { %5992 = vmatpush1.bf16.msra.mxu1 %v7733_v53  ;;  %5960 = vmatpush1.bf16.msra.mxu0 %v7730_v61  ;;  %v4510_v61 = vld [vmem:[#allocation17 + $0x10] sm:$0xff]  ;;  %v4511_v53 = vld [vmem:[#allocation17 + $0x18] sm:$0xff] }
 0xff8   :  { %5994 = vmatprep.subr.bf16.mxu1 %v7738_v6  ;;  %5962 = vmatprep.subr.bf16.mxu0 %v7736_v39  ;;  %v6005_v7 = vpack.c.bf16 %v4511_v53, %v4510_v61 }
 0xffb   :  { %5996 = vmatpush1.bf16.msra.mxu1 %v7745_v23  ;;  %5964 = vmatpush1.bf16.msra.mxu0 %v7741_v38  ;;  %v4512_v23 = vld [vmem:[#allocation17 + $0x20] sm:$0xff] }
 0xffc   :  { %5998 = vmatprep.subr.bf16.mxu1 %v7750_v62  ;;  %5966 = vmatprep.subr.bf16.mxu0 %v7747_v47  ;;  %v4513_v47 = vld [vmem:[#allocation17 + $0x28] sm:$0xff]  ;;  %v6013_v62 = vpack.c.bf16 %v4515_v20, %v4514_v25 }
 0xffd   :  { %v6009_v43 = vpack.c.bf16 %v4513_v47, %v4512_v23 }
 0xfff   :  { %6000 = vmatpush1.bf16.msra.mxu1 %v7757_v36  ;;  %5968 = vmatpush1.bf16.msra.mxu0 %v7753_v33  ;;  %v4518_v33 = vld [vmem:[#allocation17 + $0x50] sm:$0xff]  ;;  %v4519_v36 = vld [vmem:[#allocation17 + $0x58] sm:$0xff] }
0x1000   :  { %6002 = vmatprep.subr.bf16.mxu1 %v6001_v30  ;;  %v6021_v0 = vpack.c.bf16 %v4519_v36, %v4518_v33 }
0x10b5   :  { %v4158_v63 = vpop.f32.mrb[24].mxu0  ;;  %v4229_v18 = vpop.f32.mrb[24].mxu1 }
0x10b6   :  { %v4759_v10 = vmul.f32 -1.442695, %v4158_v63  ;;  %v4160_v11 = vpop.f32.mrb[25].mxu0  ;;  %v4231_v16 = vpop.f32.mrb[25].mxu1 }
0x10b7   :  { %v4760_v15 = vmul.f32 -1.442695, %v4160_v11  ;;  %v4761_v35 = vmul.f32 -1.442695, %v4231_v16 }
0x10b8   :  { %6306 = vpow2.f32 %v4759_v10 }
0x10b9   :  { %6308 = vpow2.f32 %v4760_v15 }
0x10ba   :  { %6310 = vpow2.f32 %v4761_v35 }
0x10bb   :  { %6312 = vtanh.f32 %v4229_v18 }
0x10c2   :  { %v6307_v60 = vpop.eup %6306 }
0x10c3   :  { %v6309_v46 = vpop.eup %6308  ;;  %v4241_v49 = vadd.f32 1.0, %v6307_v60 }
0x10c4   :  { %v4247_v41 = vadd.f32 1.0, %v6309_v46  ;;  %v6311_v9 = vpop.eup %6310 }
0x10c5   :  { %6314 = vrcp.f32 %v4241_v49  ;;  %v6313_v12 = vpop.eup %6312  ;;  %v4254_v51 = vadd.f32 1.0, %v6311_v9 }
0x10c6   :  { %6316 = vrcp.f32 %v4247_v41 }
0x10c7   :  { %6318 = vrcp.f32 %v4254_v51 }
0x10cf   :  { %v6315_v14 = vpop.eup %6314 }
0x10d0   :  { %v6317_v4 = vpop.eup %6316  ;;  %v4258_v1 = vmul.f32 %v6315_v14, %v6313_v12 }
0x10d1   :  { %v4257_v8 = vmul.f32 %v6317_v4, %v7765_v24  ;;  %v6319_v39 = vpop.eup %6318 }
0x10d3   :  { %v7805_v27 = vadd.f32 %v4258_v1, %v4257_v8 }
0x10d5   :  { %6320 = vtanh.f32 %v7805_v27 }
0x10df   :  { %v6321_v6 = vpop.eup %6320 }
0x10e0   :  { %v4261_v38 = vmul.f32 %v6321_v6, %v6319_v39 }
0x10e2   :  { %4396 = vmatmul.mubr.f32.vlgmr.msra.gmra.mrb[26].mxu0 %v4261_v38  ;;  %4467 = vmatmul.mubr.f32.vlgmr.msra.gmra.mrb[26].mxu1 %v4261_v38 }
0x10e3   :  { %6004 = vmatpush3.bf16.msra.mxu1 %v6001_v30  ;;  %4900 = vmatprep.mubr.f32.mxu1 %v7578_v50  ;;  %v6025_v50 = vpack.c.bf16 %v4521_v32, %v4520_v34 }
0x10e4   :  { %6006 = vmatprep.subr.bf16.mxu1 %v6005_v7 }
0x10e7   :  { %6008 = vmatpush3.bf16.msra.mxu1 %v6005_v7 }
0x10e8   :  { %6010 = vmatprep.subr.bf16.mxu1 %v6009_v43 }
0x10eb   :  { %6012 = vmatpush3.bf16.msra.mxu1 %v6009_v43 }
0x10ec   :  { %6014 = vmatprep.subr.bf16.mxu1 %v6013_v62 }
0x10ef   :  { %6016 = vmatpush3.bf16.msra.mxu1 %v6013_v62 }
0x10f0   :  { %6018 = vmatprep.subr.bf16.mxu1 %v6017_v48 }
0x10f3   :  { %6020 = vmatpush3.bf16.msra.mxu1 %v6017_v48 }
0x10f4   :  { %6022 = vmatprep.subr.bf16.mxu1 %v6021_v0 }
0x10f7   :  { %6024 = vmatpush3.bf16.msra.mxu1 %v6021_v0 }
0x10f8   :  { %6026 = vmatprep.subr.bf16.mxu1 %v6025_v50 }
0x10fb   :  { %6028 = vmatpush3.bf16.msra.mxu1 %v6025_v50 }
0x10fc   :  { %6030 = vmatprep.subr.bf16.mxu1 %v6029_v58 }
0x10ff   :  { %6032 = vmatpush3.bf16.msra.mxu1 %v6029_v58 }
0x1102   :  { %4901 = vmatmul.mubr.f32.vlgmr.msra.gmra.mrb[30].mxu1 %v7620_v29 }
0x1103   :  { %4903 = vmatprep.mubr.f32.mxu1 %v7660_v59 }
0x1106   :  { %4904 = vmatmul.mubr.f32.gmra.mrb[32].mxu1 %v7768_v40 }
0x1107   :  { %4906 = vmatprep.mubr.f32.mxu1 %v4261_v38 }
0x11b5   :  { %v4397_v55 = vpop.f32.mrb[26].mxu0  ;;  %v4468_v44 = vpop.f32.mrb[26].mxu1 }
0x11b6   :  { %v4762_v45 = vmul.f32 -1.442695, %v4397_v55  ;;  %v4399_v3 = vpop.f32.mrb[27].mxu0  ;;  %v4470_v19 = vpop.f32.mrb[27].mxu1 }
0x11b7   :  { %v4763_v26 = vmul.f32 -1.442695, %v4399_v3  ;;  %v4764_v22 = vmul.f32 -1.442695, %v4470_v19 }
0x11b8   :  { %6322 = vpow2.f32 %v4762_v45 }
0x11b9   :  { %6324 = vpow2.f32 %v4763_v26 }
0x11ba   :  { %6326 = vpow2.f32 %v4764_v22 }
0x11bb   :  { %6328 = vtanh.f32 %v4468_v44 }
0x11c2   :  { %v6323_v13 = vpop.eup %6322 }
0x11c3   :  { %v6325_v57 = vpop.eup %6324  ;;  %v4480_v2 = vadd.f32 1.0, %v6323_v13 }
0x11c4   :  { %v4486_v29 = vadd.f32 1.0, %v6325_v57  ;;  %v6327_v59 = vpop.eup %6326 }
0x11c5   :  { %6330 = vrcp.f32 %v4480_v2  ;;  %v6329_v31 = vpop.eup %6328  ;;  %v4493_v54 = vadd.f32 1.0, %v6327_v59 }
0x11c6   :  { %6332 = vrcp.f32 %v4486_v29 }
0x11c7   :  { %6334 = vrcp.f32 %v4493_v54 }
0x11cf   :  { %v6331_v28 = vpop.eup %6330 }
0x11d0   :  { %v6333_v24 = vpop.eup %6332  ;;  %v4497_v52 = vmul.f32 %v6331_v28, %v6329_v31 }
0x11d1   :  { %v4496_v40 = vmul.f32 %v6333_v24, %v7805_v27  ;;  %v6335_v60 = vpop.eup %6334 }
0x11d3   :  { %v4498_v56 = vadd.f32 %v4497_v52, %v4496_v40 }
0x11d5   :  { %v4902_v30 = vpop.f32.mrb[30].mxu1  ;;  %6336 = vtanh.f32 %v4498_v56 }
0x11d6   :  { %v4603_v63 = vadd.f32 %v4902_v30, %v4765_v5  ;;  %v4597_v18 = vpop.f32.mrb[31].mxu1 }
0x11d7   :  { %v4598_v10 = vadd.f32 %v4765_v5, %v4597_v18 }
0x11d8   :  { %4627 = vst [vmem:[#allocation18 + $0x8] sm:$0xff] %v4603_v63 }
0x11d9   :  { %4626 = vst [vmem:[#allocation18] sm:$0xff] %v4598_v10  ;;  %v4905_v11 = vpop.f32.mrb[32].mxu1 }
0x11da   :  { %v4613_v16 = vadd.f32 %v4905_v11, %v4765_v5  ;;  %v4607_v15 = vpop.f32.mrb[33].mxu1 }
0x11db   :  { %v4608_v35 = vadd.f32 %v4765_v5, %v4607_v15 }
0x11dc   :  { %4629 = vst [vmem:[#allocation18 + $0x18] sm:$0xff] %v4613_v16 }
0x11dd   :  { %4628 = vst [vmem:[#allocation18 + $0x10] sm:$0xff] %v4608_v35 }
0x11df   :  { %v6337_v46 = vpop.eup %6336 }
0x11e0   :  { %v4500_v49 = vmul.f32 %v6337_v46, %v6335_v60 }
0x11e2   :  { %4907 = vmatmul.mubr.f32.gmra.mrb[34].mxu1 %v4500_v49 }
0x11e3   :  { %6503 = shalt.err (!%p6500_p4)
}
0x11e4   :  { %s6504_s30 = scalar_lea.hbm %s7870_s15, 128 }
0x11e5   :  { %p6505_p5 = scmp.ne.s32.totalorder %s7870_s15, %s6504_s30  ;;  %p6508_p6 = scmp.lt.u32.totalorder %s6504_s30, %s7870_s15 }
0x11e7   :  { %p6510_p7 = pnand %p6508_p6, %p6505_p5 }
0x11e9   :  { %6513 = shalt.err (!%p6510_p7)
}
0x11ea   :  { %4653 = dma.vmem_to_hbm [thread:$0]  %s4651_s17, 128, %s7870_s15, [#allocation20]  }
0x11eb   :  { %s6589_s27 = smov [#allocation21]  }
0x11ec   :  { %s4660_s28 = sshll.u32 %s6589_s27, 4  ;;  %s4661_s28 = int_to_ptr.vmem [resolvable:$true] %s4660_s28 }
0x11ed   :  { %s6514_s29 = scalar_lea.vmem %s4661_s28, 128  ;;  %p6519_p9 = scmp.lt.s32.totalorder %s4661_s28, %s4661_s28 }
0x11ee   :  { %p6515_p8 = scmp.ne.s32.totalorder %s4661_s28, %s6514_s29  ;;  %p6520_p10 = scmp.lt.s32.totalorder %s6514_s29, %s6514_s29 }
0x11f0   :  { %p6521_p11 = por %p6520_p10, %p6519_p9 }
0x11f2   :  { %p6522_p12 = pnand %p6521_p11, %p6515_p8 }
0x11f4   :  { %6525 = shalt.err (!%p6522_p12)
}
0x11f5   :  { %s6526_s7 = scalar_lea.hbm %s7871_s16, 128 }
0x11f6   :  { %p6527_p13 = scmp.ne.s32.totalorder %s7871_s16, %s6526_s7  ;;  %p6530_p0 = scmp.lt.u32.totalorder %s6526_s7, %s7871_s16 }
0x11f8   :  { %p6532_p1 = pnand %p6530_p0, %p6527_p13 }
0x11fa   :  { %6535 = shalt.err (!%p6532_p1)
}
0x11fb   :  { %4663 = dma.vmem_to_hbm [thread:$0]  %s4661_s28, 128, %s7871_s16, [#allocation20]  }
0x11fc   :  { %s6590_s5 = smov [#allocation18]  }
0x11fd   :  { %s4637_s9 = sshll.u32 %s6590_s5, 4  ;;  %s4638_s9 = int_to_ptr.vmem [resolvable:$true] %s4637_s9 }
0x11fe   :  { %s6536_s22 = scalar_lea.vmem %s4638_s9, 768  ;;  %p6541_p3 = scmp.lt.s32.totalorder %s4638_s9, %s4638_s9 }
0x11ff   :  { %p6537_p2 = scmp.ne.s32.totalorder %s4638_s9, %s6536_s22  ;;  %p6542_p4 = scmp.lt.s32.totalorder %s6536_s22, %s6536_s22 }
0x1201   :  { %p6543_p5 = por %p6542_p4, %p6541_p3 }
0x1203   :  { %p6544_p6 = pnand %p6543_p5, %p6537_p2 }
0x12b5   :  { %v4908_v41 = vpop.f32.mrb[34].mxu1 }
0x12b6   :  { %v4623_v9 = vadd.f32 %v4908_v41, %v4765_v5  ;;  %v4617_v12 = vpop.f32.mrb[35].mxu1 }
0x12b7   :  { %v4618_v14 = vadd.f32 %v4765_v5, %v4617_v12 }
0x12b8   :  { %4631 = vst [vmem:[#allocation18 + $0x28] sm:$0xff] %v4623_v9 }
0x12b9   :  { %4630 = vst [vmem:[#allocation18 + $0x20] sm:$0xff] %v4618_v14 }
0x12ba   :  { %6547 = shalt.err (!%p6544_p6)
}
0x12bb   :  { %s6548_s16 = scalar_lea.hbm %s7869_s14, 768 }
0x12bc   :  { %p6549_p7 = scmp.ne.s32.totalorder %s7869_s14, %s6548_s16  ;;  %p6552_p8 = scmp.lt.u32.totalorder %s6548_s16, %s7869_s14 }
0x12be   :  { %p6554_p9 = pnand %p6552_p8, %p6549_p7 }
0x12c0   :  { %6557 = shalt.err (!%p6554_p9)
}
0x12c1   :  { %4643 = dma.vmem_to_hbm [thread:$0]  %s4638_s9, 768, %s7869_s14, [#allocation8], %s6581_s10, %s6581_s10, %s6582_s18  }
0x12c2   :  { %6566 = dma.done.wait [#allocation8], 768  }
0x12c3   :  { %6567 = vsyncadd [#allocation8], 4294966528 }
0x12c4   :  { %6568 = dma.done.wait [#allocation20], 256  }
0x12c5   :  { %6569 = vsyncadd [#allocation20], 4294967040 }
0x12c6   :  { %4673 = vsyncpa [#allocation7], 1 }
0x12c7   :  { %4674 = vsyncpa [#allocation10], 1 }
0x12c8   :  { %4675 = vsyncpa [#allocation13], 1 }
0x12c9   :  { %4676 = vsyncpa [#allocation16], 1 }
0x12ca   :  { %4677 = vsyncpa [#allocation8], 1 }
0x12cb   :  { %4678 = vsyncpa [#allocation20], 1 }

</bundles_post_ra>
